<compile_context>
chip_gen: v5e
topology: v5e:2x2
jax: 0.10.0
libtpu: 0.0.40
codegen_flags: <defaults>
</compile_context>

<pallas_src>
import functools

import jax
import jax.numpy as jnp
from jax.experimental import pallas as pl
from jax.experimental.pallas import tpu as pltpu


# ----------------------------------------------------------------------------
# Pallas kernels
# ----------------------------------------------------------------------------
def _swish(y):
    # y * sigmoid(y); exp and approx-reciprocal both land in the (idle) EUP slot.
    return y * pl.reciprocal(1.0 + jnp.exp(-y), approx=True)


def _conv_kernel(x_ref, w_ref, b_ref, o_ref, *, ic, oc, k, d, wout):
    """Dilated (1,k) conv (+ folded BN) + Swish, W on the lane axis.

    x_ref : (ic, tm, Wp)    bf16  rows (n,h) on sublanes, padded W on lanes
    w_ref : (oc*ic*k,)      f32   SMEM, BN scale already folded in
    b_ref : (oc,)           f32   SMEM, conv bias + BN shift folded
    o_ref : (oc, tm, wout)  f32
    """
    tm = x_ref.shape[1]
    for c in range(oc):
        acc = jnp.zeros((tm, wout), jnp.float32)
        for i in range(ic):
            for j in range(k):
                wv = w_ref[(c * ic + i) * k + j]
                acc = acc + wv * x_ref[i, :, j * d:j * d + wout].astype(jnp.float32)
        o_ref[c] = _swish(acc + b_ref[c]).astype(o_ref.dtype)


def _conv_pool_kernel(xe_ref, xo_ref, w_ref, b_ref, o_ref, *, ic, oc, k, d, wfin):
    """Same conv + Swish, fused with MaxPool2d((1,2),(1,2)).

    The padded width axis was pre-split into even/odd parity planes
    (xe_ref / xo_ref, each (ic, tm, ceil(Wp/2))): the absolute input index of
    tap j for pooled output pair w' is 2*w' + (parity) + j*d, so within the
    right parity plane it is a *contiguous* lane slice -- no strided access,
    no reshape in-kernel.  The pool itself is an elementwise maximum (after
    Swish, which is non-monotone, so the order matters and is preserved).
    """
    tm = xe_ref.shape[1]
    planes = (xe_ref, xo_ref)
    for c in range(oc):
        acc_e = jnp.zeros((tm, wfin), jnp.float32)
        acc_o = jnp.zeros((tm, wfin), jnp.float32)
        for i in range(ic):
            for j in range(k):
                wv = w_ref[(c * ic + i) * k + j]
                te = j * d          # absolute tap offset for even output positions
                to = 1 + j * d      # absolute tap offset for odd output positions
                acc_e = acc_e + wv * planes[te % 2][i, :, te // 2:te // 2 + wfin].astype(jnp.float32)
                acc_o = acc_o + wv * planes[to % 2][i, :, to // 2:to // 2 + wfin].astype(jnp.float32)
        ye = _swish(acc_e + b_ref[c])
        yo = _swish(acc_o + b_ref[c])
        o_ref[c] = jnp.maximum(ye, yo).astype(o_ref.dtype)


# ----------------------------------------------------------------------------
# Wrapper (padding, layout plumbing, parameter folding, tiling)
# ----------------------------------------------------------------------------
def _round_up(a, b):
    return (a + b - 1) // b * b


def _pick_row_tile(rows, bytes_per_row, budget=6 * 1024 * 1024):
    """Largest row tile (multiple of 16, <=1024) whose double-buffered
    per-step working set stays under ~6 MiB -> fits every generation's
    scoped-VMEM default (16 MiB on v5e, 32 MiB on v6e/v7x)."""
    tm = budget // (2 * max(1, bytes_per_row))
    tm = max(16, min(1024, (tm // 16) * 16))
    return min(tm, _round_up(rows, 16))


_SMEM_SPEC = pl.BlockSpec(memory_space=pltpu.MemorySpace.SMEM)


def cnnmax_forward(x, params, *, k, d, p, active_downsampling, eps=1e-5):
    weight, bias, gamma, beta, rmean, rvar = params      # weight: (OC, IC, 1, K)
    N, IC, H, W = x.shape
    OC = weight.shape[0]

    # Fold eval-mode BatchNorm + conv bias:  y = conv(x, W*scale) + shift
    scale = gamma / jnp.sqrt(rvar + eps)
    shift = (beta + (bias - rmean) * scale).astype(jnp.float32)               # (OC,)
    wf = (weight[:, :, 0, :] * scale[:, None, None]).astype(jnp.float32).reshape(-1)

    Wp = W + 2 * p
    Wout = Wp - d * (k - 1)
    R = N * H

    # pad1: ConstantPad2d((p, p, 0, 0)) -> pad only W; then W-on-lanes layout.
    xr = jnp.pad(x, ((0, 0), (0, 0), (0, 0), (p, p)))     # (N, IC, H, Wp)
    xr = jnp.transpose(xr, (1, 0, 2, 3)).reshape(IC, R, Wp)

    if active_downsampling:
        Wfin = Wout // 2                                  # floor, like MaxPool2d
        Wpe = Wp + (Wp % 2)                               # even width for parity split
        if Wpe != Wp:
            xr = jnp.pad(xr, ((0, 0), (0, 0), (0, Wpe - Wp)))
        Wh = Wpe // 2
        bytes_per_row = 2 * IC * Wh * 2 + OC * Wfin * 4   # bf16 in (both planes) + f32 out
        tm = _pick_row_tile(R, bytes_per_row)
        Rpad = _round_up(R, tm)
        if Rpad != R:
            xr = jnp.pad(xr, ((0, 0), (0, Rpad - R), (0, 0)))
        xr = xr.astype(jnp.bfloat16)
        xe = xr[:, :, 0::2]                               # even-parity W positions
        xo = xr[:, :, 1::2]                               # odd-parity  W positions

        kernel = functools.partial(_conv_pool_kernel, ic=IC, oc=OC, k=k, d=d, wfin=Wfin)
        out = pl.pallas_call(
            kernel,
            out_shape=jax.ShapeDtypeStruct((OC, Rpad, Wfin), jnp.float32),
            grid=(Rpad // tm,),
            in_specs=[
                pl.BlockSpec((IC, tm, Wh), lambda i: (0, i, 0)),
                pl.BlockSpec((IC, tm, Wh), lambda i: (0, i, 0)),
                _SMEM_SPEC,
                _SMEM_SPEC,
            ],
            out_specs=pl.BlockSpec((OC, tm, Wfin), lambda i: (0, i, 0)),
            compiler_params=pltpu.CompilerParams(dimension_semantics=("parallel",)),
        )(xe, xo, wf, shift)
        Wlast = Wfin
    else:
        bytes_per_row = IC * Wp * 2 + OC * Wout * 4       # bf16 in + f32 out
        tm = _pick_row_tile(R, bytes_per_row)
        Rpad = _round_up(R, tm)
        if Rpad != R:
            xr = jnp.pad(xr, ((0, 0), (0, Rpad - R), (0, 0)))
        xr = xr.astype(jnp.bfloat16)

        kernel = functools.partial(_conv_kernel, ic=IC, oc=OC, k=k, d=d, wout=Wout)
        out = pl.pallas_call(
            kernel,
            out_shape=jax.ShapeDtypeStruct((OC, Rpad, Wout), jnp.float32),
            grid=(Rpad // tm,),
            in_specs=[
                pl.BlockSpec((IC, tm, Wp), lambda i: (0, i, 0)),
                _SMEM_SPEC,
                _SMEM_SPEC,
            ],
            out_specs=pl.BlockSpec((OC, tm, Wout), lambda i: (0, i, 0)),
            compiler_params=pltpu.CompilerParams(dimension_semantics=("parallel",)),
        )(xr, wf, shift)
        Wlast = Wout

    # back to NCHW
    out = out[:, :R, :].reshape(OC, N, H, Wlast)
    return jnp.transpose(out, (1, 0, 2, 3))


# ----------------------------------------------------------------------------
# Pure-JAX reference (independent path via lax.conv) for a smoke check
# ----------------------------------------------------------------------------
def cnnmax_reference(x, params, *, k, d, p, active_downsampling, eps=1e-5):
    weight, bias, gamma, beta, rmean, rvar = params
    xp = jnp.pad(x, ((0, 0), (0, 0), (0, 0), (p, p)))
    y = jax.lax.conv_general_dilated(
        xp, weight, window_strides=(1, 1), padding="VALID",
        rhs_dilation=(1, d), dimension_numbers=("NCHW", "OIHW", "NCHW"))
    y = y + bias[None, :, None, None]
    y = (y - rmean[None, :, None, None]) / jnp.sqrt(rvar[None, :, None, None] + eps)
    y = gamma[None, :, None, None] * y + beta[None, :, None, None]
    y = y * jax.nn.sigmoid(y)
    if active_downsampling:
        Wfin = y.shape[-1] // 2
        y = jnp.maximum(y[..., 0:2 * Wfin:2], y[..., 1:2 * Wfin:2])
    return y


if __name__ == "__main__":
    # CNNMax(ic=4, oc=8, k=3, d=2, p=2)
    N, IC, OC, H, W = 2, 4, 8, 4, 16
    K, D, P = 3, 2, 2

    key = jax.random.PRNGKey(0)
    kx, kw, kb, kg, kbe, km, kv = jax.random.split(key, 7)
    x = jax.random.normal(kx, (N, IC, H, W), dtype=jnp.float32)
    weight = jax.random.normal(kw, (OC, IC, 1, K), dtype=jnp.float32) / jnp.sqrt(IC * K)
    bias = 0.1 * jax.random.normal(kb, (OC,), dtype=jnp.float32)
    gamma = 1.0 + 0.1 * jax.random.normal(kg, (OC,), dtype=jnp.float32)
    beta = 0.1 * jax.random.normal(kbe, (OC,), dtype=jnp.float32)
    rmean = 0.1 * jax.random.normal(km, (OC,), dtype=jnp.float32)
    rvar = jax.random.uniform(kv, (OC,), dtype=jnp.float32, minval=0.5, maxval=1.5)
    params = (weight, bias, gamma, beta, rmean, rvar)

    for downsample in (True, False):
        out = cnnmax_forward(x, params, k=K, d=D, p=P, active_downsampling=downsample)
        out = jax.block_until_ready(out)
        ref = cnnmax_reference(x, params, k=K, d=D, p=P, active_downsampling=downsample)

        wout = W + 2 * P - D * (K - 1)
        expected = (N, OC, H, wout // 2 if downsample else wout)
        assert out.shape == expected, (out.shape, expected)

        # Loose tolerance: bf16 activation stream (f32 accumulate) vs XLA f32 conv.
        err = float(jnp.max(jnp.abs(out - ref)))
        if err > 5e-2:
            raise AssertionError(f"mismatch vs reference (downsample={downsample}): "
                                 f"max abs err = {err}")

    print("KERNEL_OK")
</pallas_src>

<mosaic_0001>
module attributes {stable_mosaic.version = 11 : i64} {
  func.func @_conv_pool_kernel(%arg0: i32, %arg1: memref<4x16x10xbf16, #tpu.memory_space<vmem>>, %arg2: memref<4x16x10xbf16, #tpu.memory_space<vmem>>, %arg3: memref<96xf32, #tpu.memory_space<smem>>, %arg4: memref<8xf32, #tpu.memory_space<smem>>, %arg5: memref<8x16x8xf32, #tpu.memory_space<vmem>>) attributes {dimension_semantics = [#tpu.dimension_semantics<parallel>], iteration_bounds = array<i64: 1>, scalar_prefetch = 0 : i64, scratch_operands = 0 : i64, tpu.core_type = #tpu.core_type<tc>, window_params = [{transform_indices = @transform_0, window_bounds = array<i64: 4, 16, 10>}, {transform_indices = @transform_1, window_bounds = array<i64: 4, 16, 10>}, {transform_indices = @transform_2, window_bounds = array<i64: 96>}, {transform_indices = @transform_3, window_bounds = array<i64: 8>}, {transform_indices = @transform_4, window_bounds = array<i64: 8, 16, 8>}]} {
    %cst = arith.constant 0.000000e+00 : f32
    %0 = vector.broadcast %cst : f32 to vector<16x8xf32>
    %cst_0 = arith.constant 0.000000e+00 : f32
    %1 = vector.broadcast %cst_0 : f32 to vector<16x8xf32>
    %c0 = arith.constant 0 : index
    %2 = memref.load %arg3[%c0] : memref<96xf32, #tpu.memory_space<smem>>
    %c0_1 = arith.constant 0 : index
    %c0_2 = arith.constant 0 : index
    %c0_3 = arith.constant 0 : index
    %3 = vector.load %arg1[%c0_1, %c0_2, %c0_3] : memref<4x16x10xbf16, #tpu.memory_space<vmem>>, vector<1x16x8xbf16>
    %4 = vector.shape_cast %3 : vector<1x16x8xbf16> to vector<16x8xbf16>
    %5 = arith.extf %4 : vector<16x8xbf16> to vector<16x8xf32>
    %6 = vector.broadcast %2 : f32 to vector<16x8xf32>
    %7 = arith.mulf %6, %5 : vector<16x8xf32>
    %8 = arith.addf %0, %7 : vector<16x8xf32>
    %c0_4 = arith.constant 0 : index
    %c0_5 = arith.constant 0 : index
    %c0_6 = arith.constant 0 : index
    %9 = vector.load %arg2[%c0_4, %c0_5, %c0_6] : memref<4x16x10xbf16, #tpu.memory_space<vmem>>, vector<1x16x8xbf16>
    %10 = vector.shape_cast %9 : vector<1x16x8xbf16> to vector<16x8xbf16>
    %11 = arith.extf %10 : vector<16x8xbf16> to vector<16x8xf32>
    %12 = vector.broadcast %2 : f32 to vector<16x8xf32>
    %13 = arith.mulf %12, %11 : vector<16x8xf32>
    %14 = arith.addf %1, %13 : vector<16x8xf32>
    %c1 = arith.constant 1 : index
    %15 = memref.load %arg3[%c1] : memref<96xf32, #tpu.memory_space<smem>>
    %c0_7 = arith.constant 0 : index
    %c0_8 = arith.constant 0 : index
    %c1_9 = arith.constant 1 : index
    %16 = vector.load %arg1[%c0_7, %c0_8, %c1_9] : memref<4x16x10xbf16, #tpu.memory_space<vmem>>, vector<1x16x8xbf16>
    %17 = vector.shape_cast %16 : vector<1x16x8xbf16> to vector<16x8xbf16>
    %18 = arith.extf %17 : vector<16x8xbf16> to vector<16x8xf32>
    %19 = vector.broadcast %15 : f32 to vector<16x8xf32>
    %20 = arith.mulf %19, %18 : vector<16x8xf32>
    %21 = arith.addf %8, %20 : vector<16x8xf32>
    %c0_10 = arith.constant 0 : index
    %c0_11 = arith.constant 0 : index
    %c1_12 = arith.constant 1 : index
    %22 = vector.load %arg2[%c0_10, %c0_11, %c1_12] : memref<4x16x10xbf16, #tpu.memory_space<vmem>>, vector<1x16x8xbf16>
    %23 = vector.shape_cast %22 : vector<1x16x8xbf16> to vector<16x8xbf16>
    %24 = arith.extf %23 : vector<16x8xbf16> to vector<16x8xf32>
    %25 = vector.broadcast %15 : f32 to vector<16x8xf32>
    %26 = arith.mulf %25, %24 : vector<16x8xf32>
    %27 = arith.addf %14, %26 : vector<16x8xf32>
    %c2 = arith.constant 2 : index
    %28 = memref.load %arg3[%c2] : memref<96xf32, #tpu.memory_space<smem>>
    %c0_13 = arith.constant 0 : index
    %c0_14 = arith.constant 0 : index
    %c2_15 = arith.constant 2 : index
    %29 = vector.load %arg1[%c0_13, %c0_14, %c2_15] : memref<4x16x10xbf16, #tpu.memory_space<vmem>>, vector<1x16x8xbf16>
    %30 = vector.shape_cast %29 : vector<1x16x8xbf16> to vector<16x8xbf16>
    %31 = arith.extf %30 : vector<16x8xbf16> to vector<16x8xf32>
    %32 = vector.broadcast %28 : f32 to vector<16x8xf32>
    %33 = arith.mulf %32, %31 : vector<16x8xf32>
    %34 = arith.addf %21, %33 : vector<16x8xf32>
    %c0_16 = arith.constant 0 : index
    %c0_17 = arith.constant 0 : index
    %c2_18 = arith.constant 2 : index
    %35 = vector.load %arg2[%c0_16, %c0_17, %c2_18] : memref<4x16x10xbf16, #tpu.memory_space<vmem>>, vector<1x16x8xbf16>
    %36 = vector.shape_cast %35 : vector<1x16x8xbf16> to vector<16x8xbf16>
    %37 = arith.extf %36 : vector<16x8xbf16> to vector<16x8xf32>
    %38 = vector.broadcast %28 : f32 to vector<16x8xf32>
    %39 = arith.mulf %38, %37 : vector<16x8xf32>
    %40 = arith.addf %27, %39 : vector<16x8xf32>
    %c3 = arith.constant 3 : index
    %41 = memref.load %arg3[%c3] : memref<96xf32, #tpu.memory_space<smem>>
    %c1_19 = arith.constant 1 : index
    %c0_20 = arith.constant 0 : index
    %c0_21 = arith.constant 0 : index
    %42 = vector.load %arg1[%c1_19, %c0_20, %c0_21] : memref<4x16x10xbf16, #tpu.memory_space<vmem>>, vector<1x16x8xbf16>
    %43 = vector.shape_cast %42 : vector<1x16x8xbf16> to vector<16x8xbf16>
    %44 = arith.extf %43 : vector<16x8xbf16> to vector<16x8xf32>
    %45 = vector.broadcast %41 : f32 to vector<16x8xf32>
    %46 = arith.mulf %45, %44 : vector<16x8xf32>
    %47 = arith.addf %34, %46 : vector<16x8xf32>
    %c1_22 = arith.constant 1 : index
    %c0_23 = arith.constant 0 : index
    %c0_24 = arith.constant 0 : index
    %48 = vector.load %arg2[%c1_22, %c0_23, %c0_24] : memref<4x16x10xbf16, #tpu.memory_space<vmem>>, vector<1x16x8xbf16>
    %49 = vector.shape_cast %48 : vector<1x16x8xbf16> to vector<16x8xbf16>
    %50 = arith.extf %49 : vector<16x8xbf16> to vector<16x8xf32>
    %51 = vector.broadcast %41 : f32 to vector<16x8xf32>
    %52 = arith.mulf %51, %50 : vector<16x8xf32>
    %53 = arith.addf %40, %52 : vector<16x8xf32>
    %c4 = arith.constant 4 : index
    %54 = memref.load %arg3[%c4] : memref<96xf32, #tpu.memory_space<smem>>
    %c1_25 = arith.constant 1 : index
    %c0_26 = arith.constant 0 : index
    %c1_27 = arith.constant 1 : index
    %55 = vector.load %arg1[%c1_25, %c0_26, %c1_27] : memref<4x16x10xbf16, #tpu.memory_space<vmem>>, vector<1x16x8xbf16>
    %56 = vector.shape_cast %55 : vector<1x16x8xbf16> to vector<16x8xbf16>
    %57 = arith.extf %56 : vector<16x8xbf16> to vector<16x8xf32>
    %58 = vector.broadcast %54 : f32 to vector<16x8xf32>
    %59 = arith.mulf %58, %57 : vector<16x8xf32>
    %60 = arith.addf %47, %59 : vector<16x8xf32>
    %c1_28 = arith.constant 1 : index
    %c0_29 = arith.constant 0 : index
    %c1_30 = arith.constant 1 : index
    %61 = vector.load %arg2[%c1_28, %c0_29, %c1_30] : memref<4x16x10xbf16, #tpu.memory_space<vmem>>, vector<1x16x8xbf16>
    %62 = vector.shape_cast %61 : vector<1x16x8xbf16> to vector<16x8xbf16>
    %63 = arith.extf %62 : vector<16x8xbf16> to vector<16x8xf32>
    %64 = vector.broadcast %54 : f32 to vector<16x8xf32>
    %65 = arith.mulf %64, %63 : vector<16x8xf32>
    %66 = arith.addf %53, %65 : vector<16x8xf32>
    %c5 = arith.constant 5 : index
    %67 = memref.load %arg3[%c5] : memref<96xf32, #tpu.memory_space<smem>>
    %c1_31 = arith.constant 1 : index
    %c0_32 = arith.constant 0 : index
    %c2_33 = arith.constant 2 : index
    %68 = vector.load %arg1[%c1_31, %c0_32, %c2_33] : memref<4x16x10xbf16, #tpu.memory_space<vmem>>, vector<1x16x8xbf16>
    %69 = vector.shape_cast %68 : vector<1x16x8xbf16> to vector<16x8xbf16>
    %70 = arith.extf %69 : vector<16x8xbf16> to vector<16x8xf32>
    %71 = vector.broadcast %67 : f32 to vector<16x8xf32>
    %72 = arith.mulf %71, %70 : vector<16x8xf32>
    %73 = arith.addf %60, %72 : vector<16x8xf32>
    %c1_34 = arith.constant 1 : index
    %c0_35 = arith.constant 0 : index
    %c2_36 = arith.constant 2 : index
    %74 = vector.load %arg2[%c1_34, %c0_35, %c2_36] : memref<4x16x10xbf16, #tpu.memory_space<vmem>>, vector<1x16x8xbf16>
    %75 = vector.shape_cast %74 : vector<1x16x8xbf16> to vector<16x8xbf16>
    %76 = arith.extf %75 : vector<16x8xbf16> to vector<16x8xf32>
    %77 = vector.broadcast %67 : f32 to vector<16x8xf32>
    %78 = arith.mulf %77, %76 : vector<16x8xf32>
    %79 = arith.addf %66, %78 : vector<16x8xf32>
    %c6 = arith.constant 6 : index
    %80 = memref.load %arg3[%c6] : memref<96xf32, #tpu.memory_space<smem>>
    %c2_37 = arith.constant 2 : index
    %c0_38 = arith.constant 0 : index
    %c0_39 = arith.constant 0 : index
    %81 = vector.load %arg1[%c2_37, %c0_38, %c0_39] : memref<4x16x10xbf16, #tpu.memory_space<vmem>>, vector<1x16x8xbf16>
    %82 = vector.shape_cast %81 : vector<1x16x8xbf16> to vector<16x8xbf16>
    %83 = arith.extf %82 : vector<16x8xbf16> to vector<16x8xf32>
    %84 = vector.broadcast %80 : f32 to vector<16x8xf32>
    %85 = arith.mulf %84, %83 : vector<16x8xf32>
    %86 = arith.addf %73, %85 : vector<16x8xf32>
    %c2_40 = arith.constant 2 : index
    %c0_41 = arith.constant 0 : index
    %c0_42 = arith.constant 0 : index
    %87 = vector.load %arg2[%c2_40, %c0_41, %c0_42] : memref<4x16x10xbf16, #tpu.memory_space<vmem>>, vector<1x16x8xbf16>
    %88 = vector.shape_cast %87 : vector<1x16x8xbf16> to vector<16x8xbf16>
    %89 = arith.extf %88 : vector<16x8xbf16> to vector<16x8xf32>
    %90 = vector.broadcast %80 : f32 to vector<16x8xf32>
    %91 = arith.mulf %90, %89 : vector<16x8xf32>
    %92 = arith.addf %79, %91 : vector<16x8xf32>
    %c7 = arith.constant 7 : index
    %93 = memref.load %arg3[%c7] : memref<96xf32, #tpu.memory_space<smem>>
    %c2_43 = arith.constant 2 : index
    %c0_44 = arith.constant 0 : index
    %c1_45 = arith.constant 1 : index
    %94 = vector.load %arg1[%c2_43, %c0_44, %c1_45] : memref<4x16x10xbf16, #tpu.memory_space<vmem>>, vector<1x16x8xbf16>
    %95 = vector.shape_cast %94 : vector<1x16x8xbf16> to vector<16x8xbf16>
    %96 = arith.extf %95 : vector<16x8xbf16> to vector<16x8xf32>
    %97 = vector.broadcast %93 : f32 to vector<16x8xf32>
    %98 = arith.mulf %97, %96 : vector<16x8xf32>
    %99 = arith.addf %86, %98 : vector<16x8xf32>
    %c2_46 = arith.constant 2 : index
    %c0_47 = arith.constant 0 : index
    %c1_48 = arith.constant 1 : index
    %100 = vector.load %arg2[%c2_46, %c0_47, %c1_48] : memref<4x16x10xbf16, #tpu.memory_space<vmem>>, vector<1x16x8xbf16>
    %101 = vector.shape_cast %100 : vector<1x16x8xbf16> to vector<16x8xbf16>
    %102 = arith.extf %101 : vector<16x8xbf16> to vector<16x8xf32>
    %103 = vector.broadcast %93 : f32 to vector<16x8xf32>
    %104 = arith.mulf %103, %102 : vector<16x8xf32>
    %105 = arith.addf %92, %104 : vector<16x8xf32>
    %c8 = arith.constant 8 : index
    %106 = memref.load %arg3[%c8] : memref<96xf32, #tpu.memory_space<smem>>
    %c2_49 = arith.constant 2 : index
    %c0_50 = arith.constant 0 : index
    %c2_51 = arith.constant 2 : index
    %107 = vector.load %arg1[%c2_49, %c0_50, %c2_51] : memref<4x16x10xbf16, #tpu.memory_space<vmem>>, vector<1x16x8xbf16>
    %108 = vector.shape_cast %107 : vector<1x16x8xbf16> to vector<16x8xbf16>
    %109 = arith.extf %108 : vector<16x8xbf16> to vector<16x8xf32>
    %110 = vector.broadcast %106 : f32 to vector<16x8xf32>
    %111 = arith.mulf %110, %109 : vector<16x8xf32>
    %112 = arith.addf %99, %111 : vector<16x8xf32>
    %c2_52 = arith.constant 2 : index
    %c0_53 = arith.constant 0 : index
    %c2_54 = arith.constant 2 : index
    %113 = vector.load %arg2[%c2_52, %c0_53, %c2_54] : memref<4x16x10xbf16, #tpu.memory_space<vmem>>, vector<1x16x8xbf16>
    %114 = vector.shape_cast %113 : vector<1x16x8xbf16> to vector<16x8xbf16>
    %115 = arith.extf %114 : vector<16x8xbf16> to vector<16x8xf32>
    %116 = vector.broadcast %106 : f32 to vector<16x8xf32>
    %117 = arith.mulf %116, %115 : vector<16x8xf32>
    %118 = arith.addf %105, %117 : vector<16x8xf32>
    %c9 = arith.constant 9 : index
    %119 = memref.load %arg3[%c9] : memref<96xf32, #tpu.memory_space<smem>>
    %c3_55 = arith.constant 3 : index
    %c0_56 = arith.constant 0 : index
    %c0_57 = arith.constant 0 : index
    %120 = vector.load %arg1[%c3_55, %c0_56, %c0_57] : memref<4x16x10xbf16, #tpu.memory_space<vmem>>, vector<1x16x8xbf16>
    %121 = vector.shape_cast %120 : vector<1x16x8xbf16> to vector<16x8xbf16>
    %122 = arith.extf %121 : vector<16x8xbf16> to vector<16x8xf32>
    %123 = vector.broadcast %119 : f32 to vector<16x8xf32>
    %124 = arith.mulf %123, %122 : vector<16x8xf32>
    %125 = arith.addf %112, %124 : vector<16x8xf32>
    %c3_58 = arith.constant 3 : index
    %c0_59 = arith.constant 0 : index
    %c0_60 = arith.constant 0 : index
    %126 = vector.load %arg2[%c3_58, %c0_59, %c0_60] : memref<4x16x10xbf16, #tpu.memory_space<vmem>>, vector<1x16x8xbf16>
    %127 = vector.shape_cast %126 : vector<1x16x8xbf16> to vector<16x8xbf16>
    %128 = arith.extf %127 : vector<16x8xbf16> to vector<16x8xf32>
    %129 = vector.broadcast %119 : f32 to vector<16x8xf32>
    %130 = arith.mulf %129, %128 : vector<16x8xf32>
    %131 = arith.addf %118, %130 : vector<16x8xf32>
    %c10 = arith.constant 10 : index
    %132 = memref.load %arg3[%c10] : memref<96xf32, #tpu.memory_space<smem>>
    %c3_61 = arith.constant 3 : index
    %c0_62 = arith.constant 0 : index
    %c1_63 = arith.constant 1 : index
    %133 = vector.load %arg1[%c3_61, %c0_62, %c1_63] : memref<4x16x10xbf16, #tpu.memory_space<vmem>>, vector<1x16x8xbf16>
    %134 = vector.shape_cast %133 : vector<1x16x8xbf16> to vector<16x8xbf16>
    %135 = arith.extf %134 : vector<16x8xbf16> to vector<16x8xf32>
    %136 = vector.broadcast %132 : f32 to vector<16x8xf32>
    %137 = arith.mulf %136, %135 : vector<16x8xf32>
    %138 = arith.addf %125, %137 : vector<16x8xf32>
    %c3_64 = arith.constant 3 : index
    %c0_65 = arith.constant 0 : index
    %c1_66 = arith.constant 1 : index
    %139 = vector.load %arg2[%c3_64, %c0_65, %c1_66] : memref<4x16x10xbf16, #tpu.memory_space<vmem>>, vector<1x16x8xbf16>
    %140 = vector.shape_cast %139 : vector<1x16x8xbf16> to vector<16x8xbf16>
    %141 = arith.extf %140 : vector<16x8xbf16> to vector<16x8xf32>
    %142 = vector.broadcast %132 : f32 to vector<16x8xf32>
    %143 = arith.mulf %142, %141 : vector<16x8xf32>
    %144 = arith.addf %131, %143 : vector<16x8xf32>
    %c11 = arith.constant 11 : index
    %145 = memref.load %arg3[%c11] : memref<96xf32, #tpu.memory_space<smem>>
    %c3_67 = arith.constant 3 : index
    %c0_68 = arith.constant 0 : index
    %c2_69 = arith.constant 2 : index
    %146 = vector.load %arg1[%c3_67, %c0_68, %c2_69] : memref<4x16x10xbf16, #tpu.memory_space<vmem>>, vector<1x16x8xbf16>
    %147 = vector.shape_cast %146 : vector<1x16x8xbf16> to vector<16x8xbf16>
    %148 = arith.extf %147 : vector<16x8xbf16> to vector<16x8xf32>
    %149 = vector.broadcast %145 : f32 to vector<16x8xf32>
    %150 = arith.mulf %149, %148 : vector<16x8xf32>
    %151 = arith.addf %138, %150 : vector<16x8xf32>
    %c3_70 = arith.constant 3 : index
    %c0_71 = arith.constant 0 : index
    %c2_72 = arith.constant 2 : index
    %152 = vector.load %arg2[%c3_70, %c0_71, %c2_72] : memref<4x16x10xbf16, #tpu.memory_space<vmem>>, vector<1x16x8xbf16>
    %153 = vector.shape_cast %152 : vector<1x16x8xbf16> to vector<16x8xbf16>
    %154 = arith.extf %153 : vector<16x8xbf16> to vector<16x8xf32>
    %155 = vector.broadcast %145 : f32 to vector<16x8xf32>
    %156 = arith.mulf %155, %154 : vector<16x8xf32>
    %157 = arith.addf %144, %156 : vector<16x8xf32>
    %c0_73 = arith.constant 0 : index
    %158 = memref.load %arg4[%c0_73] : memref<8xf32, #tpu.memory_space<smem>>
    %159 = vector.broadcast %158 : f32 to vector<16x8xf32>
    %160 = arith.addf %151, %159 : vector<16x8xf32>
    %cst_74 = arith.constant 0.000000e+00 : f32
    %161 = vector.broadcast %cst_74 : f32 to vector<16x8xf32>
    %162 = arith.subf %161, %160 : vector<16x8xf32>
    %163 = math.exp %162 : vector<16x8xf32>
    %cst_75 = arith.constant 1.000000e+00 : f32
    %164 = vector.broadcast %cst_75 : f32 to vector<16x8xf32>
    %165 = arith.addf %164, %163 : vector<16x8xf32>
    %166 = tpu.reciprocal %165 {approx = true} : vector<16x8xf32> -> vector<16x8xf32>
    %167 = arith.mulf %160, %166 : vector<16x8xf32>
    %c0_76 = arith.constant 0 : index
    %168 = memref.load %arg4[%c0_76] : memref<8xf32, #tpu.memory_space<smem>>
    %169 = vector.broadcast %168 : f32 to vector<16x8xf32>
    %170 = arith.addf %157, %169 : vector<16x8xf32>
    %cst_77 = arith.constant 0.000000e+00 : f32
    %171 = vector.broadcast %cst_77 : f32 to vector<16x8xf32>
    %172 = arith.subf %171, %170 : vector<16x8xf32>
    %173 = math.exp %172 : vector<16x8xf32>
    %cst_78 = arith.constant 1.000000e+00 : f32
    %174 = vector.broadcast %cst_78 : f32 to vector<16x8xf32>
    %175 = arith.addf %174, %173 : vector<16x8xf32>
    %176 = tpu.reciprocal %175 {approx = true} : vector<16x8xf32> -> vector<16x8xf32>
    %177 = arith.mulf %170, %176 : vector<16x8xf32>
    %178 = arith.maximumf %167, %177 : vector<16x8xf32>
    %c0_79 = arith.constant 0 : index
    %c0_80 = arith.constant 0 : index
    %c0_81 = arith.constant 0 : index
    %179 = vector.load %arg5[%c0_79, %c0_80, %c0_81] : memref<8x16x8xf32, #tpu.memory_space<vmem>>, vector<1x16x8xf32>
    %180 = vector.shape_cast %179 : vector<1x16x8xf32> to vector<16x8xf32>
    %181 = vector.shape_cast %178 : vector<16x8xf32> to vector<1x16x8xf32>
    tpu.vector_store %arg5[%c0_79, %c0_80, %c0_81], %181 {strides = array<i32>} : memref<8x16x8xf32, #tpu.memory_space<vmem>>, vector<1x16x8xf32>,
    %cst_82 = arith.constant 0.000000e+00 : f32
    %182 = vector.broadcast %cst_82 : f32 to vector<16x8xf32>
    %cst_83 = arith.constant 0.000000e+00 : f32
    %183 = vector.broadcast %cst_83 : f32 to vector<16x8xf32>
    %c12 = arith.constant 12 : index
    %184 = memref.load %arg3[%c12] : memref<96xf32, #tpu.memory_space<smem>>
    %c0_84 = arith.constant 0 : index
    %c0_85 = arith.constant 0 : index
    %c0_86 = arith.constant 0 : index
    %185 = vector.load %arg1[%c0_84, %c0_85, %c0_86] : memref<4x16x10xbf16, #tpu.memory_space<vmem>>, vector<1x16x8xbf16>
    %186 = vector.shape_cast %185 : vector<1x16x8xbf16> to vector<16x8xbf16>
    %187 = arith.extf %186 : vector<16x8xbf16> to vector<16x8xf32>
    %188 = vector.broadcast %184 : f32 to vector<16x8xf32>
    %189 = arith.mulf %188, %187 : vector<16x8xf32>
    %190 = arith.addf %182, %189 : vector<16x8xf32>
    %c0_87 = arith.constant 0 : index
    %c0_88 = arith.constant 0 : index
    %c0_89 = arith.constant 0 : index
    %191 = vector.load %arg2[%c0_87, %c0_88, %c0_89] : memref<4x16x10xbf16, #tpu.memory_space<vmem>>, vector<1x16x8xbf16>
    %192 = vector.shape_cast %191 : vector<1x16x8xbf16> to vector<16x8xbf16>
    %193 = arith.extf %192 : vector<16x8xbf16> to vector<16x8xf32>
    %194 = vector.broadcast %184 : f32 to vector<16x8xf32>
    %195 = arith.mulf %194, %193 : vector<16x8xf32>
    %196 = arith.addf %183, %195 : vector<16x8xf32>
    %c13 = arith.constant 13 : index
    %197 = memref.load %arg3[%c13] : memref<96xf32, #tpu.memory_space<smem>>
    %c0_90 = arith.constant 0 : index
    %c0_91 = arith.constant 0 : index
    %c1_92 = arith.constant 1 : index
    %198 = vector.load %arg1[%c0_90, %c0_91, %c1_92] : memref<4x16x10xbf16, #tpu.memory_space<vmem>>, vector<1x16x8xbf16>
    %199 = vector.shape_cast %198 : vector<1x16x8xbf16> to vector<16x8xbf16>
    %200 = arith.extf %199 : vector<16x8xbf16> to vector<16x8xf32>
    %201 = vector.broadcast %197 : f32 to vector<16x8xf32>
    %202 = arith.mulf %201, %200 : vector<16x8xf32>
    %203 = arith.addf %190, %202 : vector<16x8xf32>
    %c0_93 = arith.constant 0 : index
    %c0_94 = arith.constant 0 : index
    %c1_95 = arith.constant 1 : index
    %204 = vector.load %arg2[%c0_93, %c0_94, %c1_95] : memref<4x16x10xbf16, #tpu.memory_space<vmem>>, vector<1x16x8xbf16>
    %205 = vector.shape_cast %204 : vector<1x16x8xbf16> to vector<16x8xbf16>
    %206 = arith.extf %205 : vector<16x8xbf16> to vector<16x8xf32>
    %207 = vector.broadcast %197 : f32 to vector<16x8xf32>
    %208 = arith.mulf %207, %206 : vector<16x8xf32>
    %209 = arith.addf %196, %208 : vector<16x8xf32>
    %c14 = arith.constant 14 : index
    %210 = memref.load %arg3[%c14] : memref<96xf32, #tpu.memory_space<smem>>
    %c0_96 = arith.constant 0 : index
    %c0_97 = arith.constant 0 : index
    %c2_98 = arith.constant 2 : index
    %211 = vector.load %arg1[%c0_96, %c0_97, %c2_98] : memref<4x16x10xbf16, #tpu.memory_space<vmem>>, vector<1x16x8xbf16>
    %212 = vector.shape_cast %211 : vector<1x16x8xbf16> to vector<16x8xbf16>
    %213 = arith.extf %212 : vector<16x8xbf16> to vector<16x8xf32>
    %214 = vector.broadcast %210 : f32 to vector<16x8xf32>
    %215 = arith.mulf %214, %213 : vector<16x8xf32>
    %216 = arith.addf %203, %215 : vector<16x8xf32>
    %c0_99 = arith.constant 0 : index
    %c0_100 = arith.constant 0 : index
    %c2_101 = arith.constant 2 : index
    %217 = vector.load %arg2[%c0_99, %c0_100, %c2_101] : memref<4x16x10xbf16, #tpu.memory_space<vmem>>, vector<1x16x8xbf16>
    %218 = vector.shape_cast %217 : vector<1x16x8xbf16> to vector<16x8xbf16>
    %219 = arith.extf %218 : vector<16x8xbf16> to vector<16x8xf32>
    %220 = vector.broadcast %210 : f32 to vector<16x8xf32>
    %221 = arith.mulf %220, %219 : vector<16x8xf32>
    %222 = arith.addf %209, %221 : vector<16x8xf32>
    %c15 = arith.constant 15 : index
    %223 = memref.load %arg3[%c15] : memref<96xf32, #tpu.memory_space<smem>>
    %c1_102 = arith.constant 1 : index
    %c0_103 = arith.constant 0 : index
    %c0_104 = arith.constant 0 : index
    %224 = vector.load %arg1[%c1_102, %c0_103, %c0_104] : memref<4x16x10xbf16, #tpu.memory_space<vmem>>, vector<1x16x8xbf16>
    %225 = vector.shape_cast %224 : vector<1x16x8xbf16> to vector<16x8xbf16>
    %226 = arith.extf %225 : vector<16x8xbf16> to vector<16x8xf32>
    %227 = vector.broadcast %223 : f32 to vector<16x8xf32>
    %228 = arith.mulf %227, %226 : vector<16x8xf32>
    %229 = arith.addf %216, %228 : vector<16x8xf32>
    %c1_105 = arith.constant 1 : index
    %c0_106 = arith.constant 0 : index
    %c0_107 = arith.constant 0 : index
    %230 = vector.load %arg2[%c1_105, %c0_106, %c0_107] : memref<4x16x10xbf16, #tpu.memory_space<vmem>>, vector<1x16x8xbf16>
    %231 = vector.shape_cast %230 : vector<1x16x8xbf16> to vector<16x8xbf16>
    %232 = arith.extf %231 : vector<16x8xbf16> to vector<16x8xf32>
    %233 = vector.broadcast %223 : f32 to vector<16x8xf32>
    %234 = arith.mulf %233, %232 : vector<16x8xf32>
    %235 = arith.addf %222, %234 : vector<16x8xf32>
    %c16 = arith.constant 16 : index
    %236 = memref.load %arg3[%c16] : memref<96xf32, #tpu.memory_space<smem>>
    %c1_108 = arith.constant 1 : index
    %c0_109 = arith.constant 0 : index
    %c1_110 = arith.constant 1 : index
    %237 = vector.load %arg1[%c1_108, %c0_109, %c1_110] : memref<4x16x10xbf16, #tpu.memory_space<vmem>>, vector<1x16x8xbf16>
    %238 = vector.shape_cast %237 : vector<1x16x8xbf16> to vector<16x8xbf16>
    %239 = arith.extf %238 : vector<16x8xbf16> to vector<16x8xf32>
    %240 = vector.broadcast %236 : f32 to vector<16x8xf32>
    %241 = arith.mulf %240, %239 : vector<16x8xf32>
    %242 = arith.addf %229, %241 : vector<16x8xf32>
    %c1_111 = arith.constant 1 : index
    %c0_112 = arith.constant 0 : index
    %c1_113 = arith.constant 1 : index
    %243 = vector.load %arg2[%c1_111, %c0_112, %c1_113] : memref<4x16x10xbf16, #tpu.memory_space<vmem>>, vector<1x16x8xbf16>
    %244 = vector.shape_cast %243 : vector<1x16x8xbf16> to vector<16x8xbf16>
    %245 = arith.extf %244 : vector<16x8xbf16> to vector<16x8xf32>
    %246 = vector.broadcast %236 : f32 to vector<16x8xf32>
    %247 = arith.mulf %246, %245 : vector<16x8xf32>
    %248 = arith.addf %235, %247 : vector<16x8xf32>
    %c17 = arith.constant 17 : index
    %249 = memref.load %arg3[%c17] : memref<96xf32, #tpu.memory_space<smem>>
    %c1_114 = arith.constant 1 : index
    %c0_115 = arith.constant 0 : index
    %c2_116 = arith.constant 2 : index
    %250 = vector.load %arg1[%c1_114, %c0_115, %c2_116] : memref<4x16x10xbf16, #tpu.memory_space<vmem>>, vector<1x16x8xbf16>
    %251 = vector.shape_cast %250 : vector<1x16x8xbf16> to vector<16x8xbf16>
    %252 = arith.extf %251 : vector<16x8xbf16> to vector<16x8xf32>
    %253 = vector.broadcast %249 : f32 to vector<16x8xf32>
    %254 = arith.mulf %253, %252 : vector<16x8xf32>
    %255 = arith.addf %242, %254 : vector<16x8xf32>
    %c1_117 = arith.constant 1 : index
    %c0_118 = arith.constant 0 : index
    %c2_119 = arith.constant 2 : index
    %256 = vector.load %arg2[%c1_117, %c0_118, %c2_119] : memref<4x16x10xbf16, #tpu.memory_space<vmem>>, vector<1x16x8xbf16>
    %257 = vector.shape_cast %256 : vector<1x16x8xbf16> to vector<16x8xbf16>
    %258 = arith.extf %257 : vector<16x8xbf16> to vector<16x8xf32>
    %259 = vector.broadcast %249 : f32 to vector<16x8xf32>
    %260 = arith.mulf %259, %258 : vector<16x8xf32>
    %261 = arith.addf %248, %260 : vector<16x8xf32>
    %c18 = arith.constant 18 : index
    %262 = memref.load %arg3[%c18] : memref<96xf32, #tpu.memory_space<smem>>
    %c2_120 = arith.constant 2 : index
    %c0_121 = arith.constant 0 : index
    %c0_122 = arith.constant 0 : index
    %263 = vector.load %arg1[%c2_120, %c0_121, %c0_122] : memref<4x16x10xbf16, #tpu.memory_space<vmem>>, vector<1x16x8xbf16>
    %264 = vector.shape_cast %263 : vector<1x16x8xbf16> to vector<16x8xbf16>
    %265 = arith.extf %264 : vector<16x8xbf16> to vector<16x8xf32>
    %266 = vector.broadcast %262 : f32 to vector<16x8xf32>
    %267 = arith.mulf %266, %265 : vector<16x8xf32>
    %268 = arith.addf %255, %267 : vector<16x8xf32>
    %c2_123 = arith.constant 2 : index
    %c0_124 = arith.constant 0 : index
    %c0_125 = arith.constant 0 : index
    %269 = vector.load %arg2[%c2_123, %c0_124, %c0_125] : memref<4x16x10xbf16, #tpu.memory_space<vmem>>, vector<1x16x8xbf16>
    %270 = vector.shape_cast %269 : vector<1x16x8xbf16> to vector<16x8xbf16>
    %271 = arith.extf %270 : vector<16x8xbf16> to vector<16x8xf32>
    %272 = vector.broadcast %262 : f32 to vector<16x8xf32>
    %273 = arith.mulf %272, %271 : vector<16x8xf32>
    %274 = arith.addf %261, %273 : vector<16x8xf32>
    %c19 = arith.constant 19 : index
    %275 = memref.load %arg3[%c19] : memref<96xf32, #tpu.memory_space<smem>>
    %c2_126 = arith.constant 2 : index
    %c0_127 = arith.constant 0 : index
    %c1_128 = arith.constant 1 : index
    %276 = vector.load %arg1[%c2_126, %c0_127, %c1_128] : memref<4x16x10xbf16, #tpu.memory_space<vmem>>, vector<1x16x8xbf16>
    %277 = vector.shape_cast %276 : vector<1x16x8xbf16> to vector<16x8xbf16>
    %278 = arith.extf %277 : vector<16x8xbf16> to vector<16x8xf32>
    %279 = vector.broadcast %275 : f32 to vector<16x8xf32>
    %280 = arith.mulf %279, %278 : vector<16x8xf32>
    %281 = arith.addf %268, %280 : vector<16x8xf32>
    %c2_129 = arith.constant 2 : index
    %c0_130 = arith.constant 0 : index
    %c1_131 = arith.constant 1 : index
    %282 = vector.load %arg2[%c2_129, %c0_130, %c1_131] : memref<4x16x10xbf16, #tpu.memory_space<vmem>>, vector<1x16x8xbf16>
    %283 = vector.shape_cast %282 : vector<1x16x8xbf16> to vector<16x8xbf16>
    %284 = arith.extf %283 : vector<16x8xbf16> to vector<16x8xf32>
    %285 = vector.broadcast %275 : f32 to vector<16x8xf32>
    %286 = arith.mulf %285, %284 : vector<16x8xf32>
    %287 = arith.addf %274, %286 : vector<16x8xf32>
    %c20 = arith.constant 20 : index
    %288 = memref.load %arg3[%c20] : memref<96xf32, #tpu.memory_space<smem>>
    %c2_132 = arith.constant 2 : index
    %c0_133 = arith.constant 0 : index
    %c2_134 = arith.constant 2 : index
    %289 = vector.load %arg1[%c2_132, %c0_133, %c2_134] : memref<4x16x10xbf16, #tpu.memory_space<vmem>>, vector<1x16x8xbf16>
    %290 = vector.shape_cast %289 : vector<1x16x8xbf16> to vector<16x8xbf16>
    %291 = arith.extf %290 : vector<16x8xbf16> to vector<16x8xf32>
    %292 = vector.broadcast %288 : f32 to vector<16x8xf32>
    %293 = arith.mulf %292, %291 : vector<16x8xf32>
    %294 = arith.addf %281, %293 : vector<16x8xf32>
    %c2_135 = arith.constant 2 : index
    %c0_136 = arith.constant 0 : index
    %c2_137 = arith.constant 2 : index
    %295 = vector.load %arg2[%c2_135, %c0_136, %c2_137] : memref<4x16x10xbf16, #tpu.memory_space<vmem>>, vector<1x16x8xbf16>
    %296 = vector.shape_cast %295 : vector<1x16x8xbf16> to vector<16x8xbf16>
    %297 = arith.extf %296 : vector<16x8xbf16> to vector<16x8xf32>
    %298 = vector.broadcast %288 : f32 to vector<16x8xf32>
    %299 = arith.mulf %298, %297 : vector<16x8xf32>
    %300 = arith.addf %287, %299 : vector<16x8xf32>
    %c21 = arith.constant 21 : index
    %301 = memref.load %arg3[%c21] : memref<96xf32, #tpu.memory_space<smem>>
    %c3_138 = arith.constant 3 : index
    %c0_139 = arith.constant 0 : index
    %c0_140 = arith.constant 0 : index
    %302 = vector.load %arg1[%c3_138, %c0_139, %c0_140] : memref<4x16x10xbf16, #tpu.memory_space<vmem>>, vector<1x16x8xbf16>
    %303 = vector.shape_cast %302 : vector<1x16x8xbf16> to vector<16x8xbf16>
    %304 = arith.extf %303 : vector<16x8xbf16> to vector<16x8xf32>
    %305 = vector.broadcast %301 : f32 to vector<16x8xf32>
    %306 = arith.mulf %305, %304 : vector<16x8xf32>
    %307 = arith.addf %294, %306 : vector<16x8xf32>
    %c3_141 = arith.constant 3 : index
    %c0_142 = arith.constant 0 : index
    %c0_143 = arith.constant 0 : index
    %308 = vector.load %arg2[%c3_141, %c0_142, %c0_143] : memref<4x16x10xbf16, #tpu.memory_space<vmem>>, vector<1x16x8xbf16>
    %309 = vector.shape_cast %308 : vector<1x16x8xbf16> to vector<16x8xbf16>
    %310 = arith.extf %309 : vector<16x8xbf16> to vector<16x8xf32>
    %311 = vector.broadcast %301 : f32 to vector<16x8xf32>
    %312 = arith.mulf %311, %310 : vector<16x8xf32>
    %313 = arith.addf %300, %312 : vector<16x8xf32>
    %c22 = arith.constant 22 : index
    %314 = memref.load %arg3[%c22] : memref<96xf32, #tpu.memory_space<smem>>
    %c3_144 = arith.constant 3 : index
    %c0_145 = arith.constant 0 : index
    %c1_146 = arith.constant 1 : index
    %315 = vector.load %arg1[%c3_144, %c0_145, %c1_146] : memref<4x16x10xbf16, #tpu.memory_space<vmem>>, vector<1x16x8xbf16>
    %316 = vector.shape_cast %315 : vector<1x16x8xbf16> to vector<16x8xbf16>
    %317 = arith.extf %316 : vector<16x8xbf16> to vector<16x8xf32>
    %318 = vector.broadcast %314 : f32 to vector<16x8xf32>
    %319 = arith.mulf %318, %317 : vector<16x8xf32>
    %320 = arith.addf %307, %319 : vector<16x8xf32>
    %c3_147 = arith.constant 3 : index
    %c0_148 = arith.constant 0 : index
    %c1_149 = arith.constant 1 : index
    %321 = vector.load %arg2[%c3_147, %c0_148, %c1_149] : memref<4x16x10xbf16, #tpu.memory_space<vmem>>, vector<1x16x8xbf16>
    %322 = vector.shape_cast %321 : vector<1x16x8xbf16> to vector<16x8xbf16>
    %323 = arith.extf %322 : vector<16x8xbf16> to vector<16x8xf32>
    %324 = vector.broadcast %314 : f32 to vector<16x8xf32>
    %325 = arith.mulf %324, %323 : vector<16x8xf32>
    %326 = arith.addf %313, %325 : vector<16x8xf32>
    %c23 = arith.constant 23 : index
    %327 = memref.load %arg3[%c23] : memref<96xf32, #tpu.memory_space<smem>>
    %c3_150 = arith.constant 3 : index
    %c0_151 = arith.constant 0 : index
    %c2_152 = arith.constant 2 : index
    %328 = vector.load %arg1[%c3_150, %c0_151, %c2_152] : memref<4x16x10xbf16, #tpu.memory_space<vmem>>, vector<1x16x8xbf16>
    %329 = vector.shape_cast %328 : vector<1x16x8xbf16> to vector<16x8xbf16>
    %330 = arith.extf %329 : vector<16x8xbf16> to vector<16x8xf32>
    %331 = vector.broadcast %327 : f32 to vector<16x8xf32>
    %332 = arith.mulf %331, %330 : vector<16x8xf32>
    %333 = arith.addf %320, %332 : vector<16x8xf32>
    %c3_153 = arith.constant 3 : index
    %c0_154 = arith.constant 0 : index
    %c2_155 = arith.constant 2 : index
    %334 = vector.load %arg2[%c3_153, %c0_154, %c2_155] : memref<4x16x10xbf16, #tpu.memory_space<vmem>>, vector<1x16x8xbf16>
    %335 = vector.shape_cast %334 : vector<1x16x8xbf16> to vector<16x8xbf16>
    %336 = arith.extf %335 : vector<16x8xbf16> to vector<16x8xf32>
    %337 = vector.broadcast %327 : f32 to vector<16x8xf32>
    %338 = arith.mulf %337, %336 : vector<16x8xf32>
    %339 = arith.addf %326, %338 : vector<16x8xf32>
    %c1_156 = arith.constant 1 : index
    %340 = memref.load %arg4[%c1_156] : memref<8xf32, #tpu.memory_space<smem>>
    %341 = vector.broadcast %340 : f32 to vector<16x8xf32>
    %342 = arith.addf %333, %341 : vector<16x8xf32>
    %cst_157 = arith.constant 0.000000e+00 : f32
    %343 = vector.broadcast %cst_157 : f32 to vector<16x8xf32>
    %344 = arith.subf %343, %342 : vector<16x8xf32>
    %345 = math.exp %344 : vector<16x8xf32>
    %cst_158 = arith.constant 1.000000e+00 : f32
    %346 = vector.broadcast %cst_158 : f32 to vector<16x8xf32>
    %347 = arith.addf %346, %345 : vector<16x8xf32>
    %348 = tpu.reciprocal %347 {approx = true} : vector<16x8xf32> -> vector<16x8xf32>
    %349 = arith.mulf %342, %348 : vector<16x8xf32>
    %c1_159 = arith.constant 1 : index
    %350 = memref.load %arg4[%c1_159] : memref<8xf32, #tpu.memory_space<smem>>
    %351 = vector.broadcast %350 : f32 to vector<16x8xf32>
    %352 = arith.addf %339, %351 : vector<16x8xf32>
    %cst_160 = arith.constant 0.000000e+00 : f32
    %353 = vector.broadcast %cst_160 : f32 to vector<16x8xf32>
    %354 = arith.subf %353, %352 : vector<16x8xf32>
    %355 = math.exp %354 : vector<16x8xf32>
    %cst_161 = arith.constant 1.000000e+00 : f32
    %356 = vector.broadcast %cst_161 : f32 to vector<16x8xf32>
    %357 = arith.addf %356, %355 : vector<16x8xf32>
    %358 = tpu.reciprocal %357 {approx = true} : vector<16x8xf32> -> vector<16x8xf32>
    %359 = arith.mulf %352, %358 : vector<16x8xf32>
    %360 = arith.maximumf %349, %359 : vector<16x8xf32>
    %c1_162 = arith.constant 1 : index
    %c0_163 = arith.constant 0 : index
    %c0_164 = arith.constant 0 : index
    %361 = vector.load %arg5[%c1_162, %c0_163, %c0_164] : memref<8x16x8xf32, #tpu.memory_space<vmem>>, vector<1x16x8xf32>
    %362 = vector.shape_cast %361 : vector<1x16x8xf32> to vector<16x8xf32>
    %363 = vector.shape_cast %360 : vector<16x8xf32> to vector<1x16x8xf32>
    tpu.vector_store %arg5[%c1_162, %c0_163, %c0_164], %363 {strides = array<i32>} : memref<8x16x8xf32, #tpu.memory_space<vmem>>, vector<1x16x8xf32>,
    %cst_165 = arith.constant 0.000000e+00 : f32
    %364 = vector.broadcast %cst_165 : f32 to vector<16x8xf32>
    %cst_166 = arith.constant 0.000000e+00 : f32
    %365 = vector.broadcast %cst_166 : f32 to vector<16x8xf32>
    %c24 = arith.constant 24 : index
    %366 = memref.load %arg3[%c24] : memref<96xf32, #tpu.memory_space<smem>>
    %c0_167 = arith.constant 0 : index
    %c0_168 = arith.constant 0 : index
    %c0_169 = arith.constant 0 : index
    %367 = vector.load %arg1[%c0_167, %c0_168, %c0_169] : memref<4x16x10xbf16, #tpu.memory_space<vmem>>, vector<1x16x8xbf16>
    %368 = vector.shape_cast %367 : vector<1x16x8xbf16> to vector<16x8xbf16>
    %369 = arith.extf %368 : vector<16x8xbf16> to vector<16x8xf32>
    %370 = vector.broadcast %366 : f32 to vector<16x8xf32>
    %371 = arith.mulf %370, %369 : vector<16x8xf32>
    %372 = arith.addf %364, %371 : vector<16x8xf32>
    %c0_170 = arith.constant 0 : index
    %c0_171 = arith.constant 0 : index
    %c0_172 = arith.constant 0 : index
    %373 = vector.load %arg2[%c0_170, %c0_171, %c0_172] : memref<4x16x10xbf16, #tpu.memory_space<vmem>>, vector<1x16x8xbf16>
    %374 = vector.shape_cast %373 : vector<1x16x8xbf16> to vector<16x8xbf16>
    %375 = arith.extf %374 : vector<16x8xbf16> to vector<16x8xf32>
    %376 = vector.broadcast %366 : f32 to vector<16x8xf32>
    %377 = arith.mulf %376, %375 : vector<16x8xf32>
    %378 = arith.addf %365, %377 : vector<16x8xf32>
    %c25 = arith.constant 25 : index
    %379 = memref.load %arg3[%c25] : memref<96xf32, #tpu.memory_space<smem>>
    %c0_173 = arith.constant 0 : index
    %c0_174 = arith.constant 0 : index
    %c1_175 = arith.constant 1 : index
    %380 = vector.load %arg1[%c0_173, %c0_174, %c1_175] : memref<4x16x10xbf16, #tpu.memory_space<vmem>>, vector<1x16x8xbf16>
    %381 = vector.shape_cast %380 : vector<1x16x8xbf16> to vector<16x8xbf16>
    %382 = arith.extf %381 : vector<16x8xbf16> to vector<16x8xf32>
    %383 = vector.broadcast %379 : f32 to vector<16x8xf32>
    %384 = arith.mulf %383, %382 : vector<16x8xf32>
    %385 = arith.addf %372, %384 : vector<16x8xf32>
    %c0_176 = arith.constant 0 : index
    %c0_177 = arith.constant 0 : index
    %c1_178 = arith.constant 1 : index
    %386 = vector.load %arg2[%c0_176, %c0_177, %c1_178] : memref<4x16x10xbf16, #tpu.memory_space<vmem>>, vector<1x16x8xbf16>
    %387 = vector.shape_cast %386 : vector<1x16x8xbf16> to vector<16x8xbf16>
    %388 = arith.extf %387 : vector<16x8xbf16> to vector<16x8xf32>
    %389 = vector.broadcast %379 : f32 to vector<16x8xf32>
    %390 = arith.mulf %389, %388 : vector<16x8xf32>
    %391 = arith.addf %378, %390 : vector<16x8xf32>
    %c26 = arith.constant 26 : index
    %392 = memref.load %arg3[%c26] : memref<96xf32, #tpu.memory_space<smem>>
    %c0_179 = arith.constant 0 : index
    %c0_180 = arith.constant 0 : index
    %c2_181 = arith.constant 2 : index
    %393 = vector.load %arg1[%c0_179, %c0_180, %c2_181] : memref<4x16x10xbf16, #tpu.memory_space<vmem>>, vector<1x16x8xbf16>
    %394 = vector.shape_cast %393 : vector<1x16x8xbf16> to vector<16x8xbf16>
    %395 = arith.extf %394 : vector<16x8xbf16> to vector<16x8xf32>
    %396 = vector.broadcast %392 : f32 to vector<16x8xf32>
    %397 = arith.mulf %396, %395 : vector<16x8xf32>
    %398 = arith.addf %385, %397 : vector<16x8xf32>
    %c0_182 = arith.constant 0 : index
    %c0_183 = arith.constant 0 : index
    %c2_184 = arith.constant 2 : index
    %399 = vector.load %arg2[%c0_182, %c0_183, %c2_184] : memref<4x16x10xbf16, #tpu.memory_space<vmem>>, vector<1x16x8xbf16>
    %400 = vector.shape_cast %399 : vector<1x16x8xbf16> to vector<16x8xbf16>
    %401 = arith.extf %400 : vector<16x8xbf16> to vector<16x8xf32>
    %402 = vector.broadcast %392 : f32 to vector<16x8xf32>
    %403 = arith.mulf %402, %401 : vector<16x8xf32>
    %404 = arith.addf %391, %403 : vector<16x8xf32>
    %c27 = arith.constant 27 : index
    %405 = memref.load %arg3[%c27] : memref<96xf32, #tpu.memory_space<smem>>
    %c1_185 = arith.constant 1 : index
    %c0_186 = arith.constant 0 : index
    %c0_187 = arith.constant 0 : index
    %406 = vector.load %arg1[%c1_185, %c0_186, %c0_187] : memref<4x16x10xbf16, #tpu.memory_space<vmem>>, vector<1x16x8xbf16>
    %407 = vector.shape_cast %406 : vector<1x16x8xbf16> to vector<16x8xbf16>
    %408 = arith.extf %407 : vector<16x8xbf16> to vector<16x8xf32>
    %409 = vector.broadcast %405 : f32 to vector<16x8xf32>
    %410 = arith.mulf %409, %408 : vector<16x8xf32>
    %411 = arith.addf %398, %410 : vector<16x8xf32>
    %c1_188 = arith.constant 1 : index
    %c0_189 = arith.constant 0 : index
    %c0_190 = arith.constant 0 : index
    %412 = vector.load %arg2[%c1_188, %c0_189, %c0_190] : memref<4x16x10xbf16, #tpu.memory_space<vmem>>, vector<1x16x8xbf16>
    %413 = vector.shape_cast %412 : vector<1x16x8xbf16> to vector<16x8xbf16>
    %414 = arith.extf %413 : vector<16x8xbf16> to vector<16x8xf32>
    %415 = vector.broadcast %405 : f32 to vector<16x8xf32>
    %416 = arith.mulf %415, %414 : vector<16x8xf32>
    %417 = arith.addf %404, %416 : vector<16x8xf32>
    %c28 = arith.constant 28 : index
    %418 = memref.load %arg3[%c28] : memref<96xf32, #tpu.memory_space<smem>>
    %c1_191 = arith.constant 1 : index
    %c0_192 = arith.constant 0 : index
    %c1_193 = arith.constant 1 : index
    %419 = vector.load %arg1[%c1_191, %c0_192, %c1_193] : memref<4x16x10xbf16, #tpu.memory_space<vmem>>, vector<1x16x8xbf16>
    %420 = vector.shape_cast %419 : vector<1x16x8xbf16> to vector<16x8xbf16>
    %421 = arith.extf %420 : vector<16x8xbf16> to vector<16x8xf32>
    %422 = vector.broadcast %418 : f32 to vector<16x8xf32>
    %423 = arith.mulf %422, %421 : vector<16x8xf32>
    %424 = arith.addf %411, %423 : vector<16x8xf32>
    %c1_194 = arith.constant 1 : index
    %c0_195 = arith.constant 0 : index
    %c1_196 = arith.constant 1 : index
    %425 = vector.load %arg2[%c1_194, %c0_195, %c1_196] : memref<4x16x10xbf16, #tpu.memory_space<vmem>>, vector<1x16x8xbf16>
    %426 = vector.shape_cast %425 : vector<1x16x8xbf16> to vector<16x8xbf16>
    %427 = arith.extf %426 : vector<16x8xbf16> to vector<16x8xf32>
    %428 = vector.broadcast %418 : f32 to vector<16x8xf32>
    %429 = arith.mulf %428, %427 : vector<16x8xf32>
    %430 = arith.addf %417, %429 : vector<16x8xf32>
    %c29 = arith.constant 29 : index
    %431 = memref.load %arg3[%c29] : memref<96xf32, #tpu.memory_space<smem>>
    %c1_197 = arith.constant 1 : index
    %c0_198 = arith.constant 0 : index
    %c2_199 = arith.constant 2 : index
    %432 = vector.load %arg1[%c1_197, %c0_198, %c2_199] : memref<4x16x10xbf16, #tpu.memory_space<vmem>>, vector<1x16x8xbf16>
    %433 = vector.shape_cast %432 : vector<1x16x8xbf16> to vector<16x8xbf16>
    %434 = arith.extf %433 : vector<16x8xbf16> to vector<16x8xf32>
    %435 = vector.broadcast %431 : f32 to vector<16x8xf32>
    %436 = arith.mulf %435, %434 : vector<16x8xf32>
    %437 = arith.addf %424, %436 : vector<16x8xf32>
    %c1_200 = arith.constant 1 : index
    %c0_201 = arith.constant 0 : index
    %c2_202 = arith.constant 2 : index
    %438 = vector.load %arg2[%c1_200, %c0_201, %c2_202] : memref<4x16x10xbf16, #tpu.memory_space<vmem>>, vector<1x16x8xbf16>
    %439 = vector.shape_cast %438 : vector<1x16x8xbf16> to vector<16x8xbf16>
    %440 = arith.extf %439 : vector<16x8xbf16> to vector<16x8xf32>
    %441 = vector.broadcast %431 : f32 to vector<16x8xf32>
    %442 = arith.mulf %441, %440 : vector<16x8xf32>
    %443 = arith.addf %430, %442 : vector<16x8xf32>
    %c30 = arith.constant 30 : index
    %444 = memref.load %arg3[%c30] : memref<96xf32, #tpu.memory_space<smem>>
    %c2_203 = arith.constant 2 : index
    %c0_204 = arith.constant 0 : index
    %c0_205 = arith.constant 0 : index
    %445 = vector.load %arg1[%c2_203, %c0_204, %c0_205] : memref<4x16x10xbf16, #tpu.memory_space<vmem>>, vector<1x16x8xbf16>
    %446 = vector.shape_cast %445 : vector<1x16x8xbf16> to vector<16x8xbf16>
    %447 = arith.extf %446 : vector<16x8xbf16> to vector<16x8xf32>
    %448 = vector.broadcast %444 : f32 to vector<16x8xf32>
    %449 = arith.mulf %448, %447 : vector<16x8xf32>
    %450 = arith.addf %437, %449 : vector<16x8xf32>
    %c2_206 = arith.constant 2 : index
    %c0_207 = arith.constant 0 : index
    %c0_208 = arith.constant 0 : index
    %451 = vector.load %arg2[%c2_206, %c0_207, %c0_208] : memref<4x16x10xbf16, #tpu.memory_space<vmem>>, vector<1x16x8xbf16>
    %452 = vector.shape_cast %451 : vector<1x16x8xbf16> to vector<16x8xbf16>
    %453 = arith.extf %452 : vector<16x8xbf16> to vector<16x8xf32>
    %454 = vector.broadcast %444 : f32 to vector<16x8xf32>
    %455 = arith.mulf %454, %453 : vector<16x8xf32>
    %456 = arith.addf %443, %455 : vector<16x8xf32>
    %c31 = arith.constant 31 : index
    %457 = memref.load %arg3[%c31] : memref<96xf32, #tpu.memory_space<smem>>
    %c2_209 = arith.constant 2 : index
    %c0_210 = arith.constant 0 : index
    %c1_211 = arith.constant 1 : index
    %458 = vector.load %arg1[%c2_209, %c0_210, %c1_211] : memref<4x16x10xbf16, #tpu.memory_space<vmem>>, vector<1x16x8xbf16>
    %459 = vector.shape_cast %458 : vector<1x16x8xbf16> to vector<16x8xbf16>
    %460 = arith.extf %459 : vector<16x8xbf16> to vector<16x8xf32>
    %461 = vector.broadcast %457 : f32 to vector<16x8xf32>
    %462 = arith.mulf %461, %460 : vector<16x8xf32>
    %463 = arith.addf %450, %462 : vector<16x8xf32>
    %c2_212 = arith.constant 2 : index
    %c0_213 = arith.constant 0 : index
    %c1_214 = arith.constant 1 : index
    %464 = vector.load %arg2[%c2_212, %c0_213, %c1_214] : memref<4x16x10xbf16, #tpu.memory_space<vmem>>, vector<1x16x8xbf16>
    %465 = vector.shape_cast %464 : vector<1x16x8xbf16> to vector<16x8xbf16>
    %466 = arith.extf %465 : vector<16x8xbf16> to vector<16x8xf32>
    %467 = vector.broadcast %457 : f32 to vector<16x8xf32>
    %468 = arith.mulf %467, %466 : vector<16x8xf32>
    %469 = arith.addf %456, %468 : vector<16x8xf32>
    %c32 = arith.constant 32 : index
    %470 = memref.load %arg3[%c32] : memref<96xf32, #tpu.memory_space<smem>>
    %c2_215 = arith.constant 2 : index
    %c0_216 = arith.constant 0 : index
    %c2_217 = arith.constant 2 : index
    %471 = vector.load %arg1[%c2_215, %c0_216, %c2_217] : memref<4x16x10xbf16, #tpu.memory_space<vmem>>, vector<1x16x8xbf16>
    %472 = vector.shape_cast %471 : vector<1x16x8xbf16> to vector<16x8xbf16>
    %473 = arith.extf %472 : vector<16x8xbf16> to vector<16x8xf32>
    %474 = vector.broadcast %470 : f32 to vector<16x8xf32>
    %475 = arith.mulf %474, %473 : vector<16x8xf32>
    %476 = arith.addf %463, %475 : vector<16x8xf32>
    %c2_218 = arith.constant 2 : index
    %c0_219 = arith.constant 0 : index
    %c2_220 = arith.constant 2 : index
    %477 = vector.load %arg2[%c2_218, %c0_219, %c2_220] : memref<4x16x10xbf16, #tpu.memory_space<vmem>>, vector<1x16x8xbf16>
    %478 = vector.shape_cast %477 : vector<1x16x8xbf16> to vector<16x8xbf16>
    %479 = arith.extf %478 : vector<16x8xbf16> to vector<16x8xf32>
    %480 = vector.broadcast %470 : f32 to vector<16x8xf32>
    %481 = arith.mulf %480, %479 : vector<16x8xf32>
    %482 = arith.addf %469, %481 : vector<16x8xf32>
    %c33 = arith.constant 33 : index
    %483 = memref.load %arg3[%c33] : memref<96xf32, #tpu.memory_space<smem>>
    %c3_221 = arith.constant 3 : index
    %c0_222 = arith.constant 0 : index
    %c0_223 = arith.constant 0 : index
    %484 = vector.load %arg1[%c3_221, %c0_222, %c0_223] : memref<4x16x10xbf16, #tpu.memory_space<vmem>>, vector<1x16x8xbf16>
    %485 = vector.shape_cast %484 : vector<1x16x8xbf16> to vector<16x8xbf16>
    %486 = arith.extf %485 : vector<16x8xbf16> to vector<16x8xf32>
    %487 = vector.broadcast %483 : f32 to vector<16x8xf32>
    %488 = arith.mulf %487, %486 : vector<16x8xf32>
    %489 = arith.addf %476, %488 : vector<16x8xf32>
    %c3_224 = arith.constant 3 : index
    %c0_225 = arith.constant 0 : index
    %c0_226 = arith.constant 0 : index
    %490 = vector.load %arg2[%c3_224, %c0_225, %c0_226] : memref<4x16x10xbf16, #tpu.memory_space<vmem>>, vector<1x16x8xbf16>
    %491 = vector.shape_cast %490 : vector<1x16x8xbf16> to vector<16x8xbf16>
    %492 = arith.extf %491 : vector<16x8xbf16> to vector<16x8xf32>
    %493 = vector.broadcast %483 : f32 to vector<16x8xf32>
    %494 = arith.mulf %493, %492 : vector<16x8xf32>
    %495 = arith.addf %482, %494 : vector<16x8xf32>
    %c34 = arith.constant 34 : index
    %496 = memref.load %arg3[%c34] : memref<96xf32, #tpu.memory_space<smem>>
    %c3_227 = arith.constant 3 : index
    %c0_228 = arith.constant 0 : index
    %c1_229 = arith.constant 1 : index
    %497 = vector.load %arg1[%c3_227, %c0_228, %c1_229] : memref<4x16x10xbf16, #tpu.memory_space<vmem>>, vector<1x16x8xbf16>
    %498 = vector.shape_cast %497 : vector<1x16x8xbf16> to vector<16x8xbf16>
    %499 = arith.extf %498 : vector<16x8xbf16> to vector<16x8xf32>
    %500 = vector.broadcast %496 : f32 to vector<16x8xf32>
    %501 = arith.mulf %500, %499 : vector<16x8xf32>
    %502 = arith.addf %489, %501 : vector<16x8xf32>
    %c3_230 = arith.constant 3 : index
    %c0_231 = arith.constant 0 : index
    %c1_232 = arith.constant 1 : index
    %503 = vector.load %arg2[%c3_230, %c0_231, %c1_232] : memref<4x16x10xbf16, #tpu.memory_space<vmem>>, vector<1x16x8xbf16>
    %504 = vector.shape_cast %503 : vector<1x16x8xbf16> to vector<16x8xbf16>
    %505 = arith.extf %504 : vector<16x8xbf16> to vector<16x8xf32>
    %506 = vector.broadcast %496 : f32 to vector<16x8xf32>
    %507 = arith.mulf %506, %505 : vector<16x8xf32>
    %508 = arith.addf %495, %507 : vector<16x8xf32>
    %c35 = arith.constant 35 : index
    %509 = memref.load %arg3[%c35] : memref<96xf32, #tpu.memory_space<smem>>
    %c3_233 = arith.constant 3 : index
    %c0_234 = arith.constant 0 : index
    %c2_235 = arith.constant 2 : index
    %510 = vector.load %arg1[%c3_233, %c0_234, %c2_235] : memref<4x16x10xbf16, #tpu.memory_space<vmem>>, vector<1x16x8xbf16>
    %511 = vector.shape_cast %510 : vector<1x16x8xbf16> to vector<16x8xbf16>
    %512 = arith.extf %511 : vector<16x8xbf16> to vector<16x8xf32>
    %513 = vector.broadcast %509 : f32 to vector<16x8xf32>
    %514 = arith.mulf %513, %512 : vector<16x8xf32>
    %515 = arith.addf %502, %514 : vector<16x8xf32>
    %c3_236 = arith.constant 3 : index
    %c0_237 = arith.constant 0 : index
    %c2_238 = arith.constant 2 : index
    %516 = vector.load %arg2[%c3_236, %c0_237, %c2_238] : memref<4x16x10xbf16, #tpu.memory_space<vmem>>, vector<1x16x8xbf16>
    %517 = vector.shape_cast %516 : vector<1x16x8xbf16> to vector<16x8xbf16>
    %518 = arith.extf %517 : vector<16x8xbf16> to vector<16x8xf32>
    %519 = vector.broadcast %509 : f32 to vector<16x8xf32>
    %520 = arith.mulf %519, %518 : vector<16x8xf32>
    %521 = arith.addf %508, %520 : vector<16x8xf32>
    %c2_239 = arith.constant 2 : index
    %522 = memref.load %arg4[%c2_239] : memref<8xf32, #tpu.memory_space<smem>>
    %523 = vector.broadcast %522 : f32 to vector<16x8xf32>
    %524 = arith.addf %515, %523 : vector<16x8xf32>
    %cst_240 = arith.constant 0.000000e+00 : f32
    %525 = vector.broadcast %cst_240 : f32 to vector<16x8xf32>
    %526 = arith.subf %525, %524 : vector<16x8xf32>
    %527 = math.exp %526 : vector<16x8xf32>
    %cst_241 = arith.constant 1.000000e+00 : f32
    %528 = vector.broadcast %cst_241 : f32 to vector<16x8xf32>
    %529 = arith.addf %528, %527 : vector<16x8xf32>
    %530 = tpu.reciprocal %529 {approx = true} : vector<16x8xf32> -> vector<16x8xf32>
    %531 = arith.mulf %524, %530 : vector<16x8xf32>
    %c2_242 = arith.constant 2 : index
    %532 = memref.load %arg4[%c2_242] : memref<8xf32, #tpu.memory_space<smem>>
    %533 = vector.broadcast %532 : f32 to vector<16x8xf32>
    %534 = arith.addf %521, %533 : vector<16x8xf32>
    %cst_243 = arith.constant 0.000000e+00 : f32
    %535 = vector.broadcast %cst_243 : f32 to vector<16x8xf32>
    %536 = arith.subf %535, %534 : vector<16x8xf32>
    %537 = math.exp %536 : vector<16x8xf32>
    %cst_244 = arith.constant 1.000000e+00 : f32
    %538 = vector.broadcast %cst_244 : f32 to vector<16x8xf32>
    %539 = arith.addf %538, %537 : vector<16x8xf32>
    %540 = tpu.reciprocal %539 {approx = true} : vector<16x8xf32> -> vector<16x8xf32>
    %541 = arith.mulf %534, %540 : vector<16x8xf32>
    %542 = arith.maximumf %531, %541 : vector<16x8xf32>
    %c2_245 = arith.constant 2 : index
    %c0_246 = arith.constant 0 : index
    %c0_247 = arith.constant 0 : index
    %543 = vector.load %arg5[%c2_245, %c0_246, %c0_247] : memref<8x16x8xf32, #tpu.memory_space<vmem>>, vector<1x16x8xf32>
    %544 = vector.shape_cast %543 : vector<1x16x8xf32> to vector<16x8xf32>
    %545 = vector.shape_cast %542 : vector<16x8xf32> to vector<1x16x8xf32>
    tpu.vector_store %arg5[%c2_245, %c0_246, %c0_247], %545 {strides = array<i32>} : memref<8x16x8xf32, #tpu.memory_space<vmem>>, vector<1x16x8xf32>,
    %cst_248 = arith.constant 0.000000e+00 : f32
    %546 = vector.broadcast %cst_248 : f32 to vector<16x8xf32>
    %cst_249 = arith.constant 0.000000e+00 : f32
    %547 = vector.broadcast %cst_249 : f32 to vector<16x8xf32>
    %c36 = arith.constant 36 : index
    %548 = memref.load %arg3[%c36] : memref<96xf32, #tpu.memory_space<smem>>
    %c0_250 = arith.constant 0 : index
    %c0_251 = arith.constant 0 : index
    %c0_252 = arith.constant 0 : index
    %549 = vector.load %arg1[%c0_250, %c0_251, %c0_252] : memref<4x16x10xbf16, #tpu.memory_space<vmem>>, vector<1x16x8xbf16>
    %550 = vector.shape_cast %549 : vector<1x16x8xbf16> to vector<16x8xbf16>
    %551 = arith.extf %550 : vector<16x8xbf16> to vector<16x8xf32>
    %552 = vector.broadcast %548 : f32 to vector<16x8xf32>
    %553 = arith.mulf %552, %551 : vector<16x8xf32>
    %554 = arith.addf %546, %553 : vector<16x8xf32>
    %c0_253 = arith.constant 0 : index
    %c0_254 = arith.constant 0 : index
    %c0_255 = arith.constant 0 : index
    %555 = vector.load %arg2[%c0_253, %c0_254, %c0_255] : memref<4x16x10xbf16, #tpu.memory_space<vmem>>, vector<1x16x8xbf16>
    %556 = vector.shape_cast %555 : vector<1x16x8xbf16> to vector<16x8xbf16>
    %557 = arith.extf %556 : vector<16x8xbf16> to vector<16x8xf32>
    %558 = vector.broadcast %548 : f32 to vector<16x8xf32>
    %559 = arith.mulf %558, %557 : vector<16x8xf32>
    %560 = arith.addf %547, %559 : vector<16x8xf32>
    %c37 = arith.constant 37 : index
    %561 = memref.load %arg3[%c37] : memref<96xf32, #tpu.memory_space<smem>>
    %c0_256 = arith.constant 0 : index
    %c0_257 = arith.constant 0 : index
    %c1_258 = arith.constant 1 : index
    %562 = vector.load %arg1[%c0_256, %c0_257, %c1_258] : memref<4x16x10xbf16, #tpu.memory_space<vmem>>, vector<1x16x8xbf16>
    %563 = vector.shape_cast %562 : vector<1x16x8xbf16> to vector<16x8xbf16>
    %564 = arith.extf %563 : vector<16x8xbf16> to vector<16x8xf32>
    %565 = vector.broadcast %561 : f32 to vector<16x8xf32>
    %566 = arith.mulf %565, %564 : vector<16x8xf32>
    %567 = arith.addf %554, %566 : vector<16x8xf32>
    %c0_259 = arith.constant 0 : index
    %c0_260 = arith.constant 0 : index
    %c1_261 = arith.constant 1 : index
    %568 = vector.load %arg2[%c0_259, %c0_260, %c1_261] : memref<4x16x10xbf16, #tpu.memory_space<vmem>>, vector<1x16x8xbf16>
    %569 = vector.shape_cast %568 : vector<1x16x8xbf16> to vector<16x8xbf16>
    %570 = arith.extf %569 : vector<16x8xbf16> to vector<16x8xf32>
    %571 = vector.broadcast %561 : f32 to vector<16x8xf32>
    %572 = arith.mulf %571, %570 : vector<16x8xf32>
    %573 = arith.addf %560, %572 : vector<16x8xf32>
    %c38 = arith.constant 38 : index
    %574 = memref.load %arg3[%c38] : memref<96xf32, #tpu.memory_space<smem>>
    %c0_262 = arith.constant 0 : index
    %c0_263 = arith.constant 0 : index
    %c2_264 = arith.constant 2 : index
    %575 = vector.load %arg1[%c0_262, %c0_263, %c2_264] : memref<4x16x10xbf16, #tpu.memory_space<vmem>>, vector<1x16x8xbf16>
    %576 = vector.shape_cast %575 : vector<1x16x8xbf16> to vector<16x8xbf16>
    %577 = arith.extf %576 : vector<16x8xbf16> to vector<16x8xf32>
    %578 = vector.broadcast %574 : f32 to vector<16x8xf32>
    %579 = arith.mulf %578, %577 : vector<16x8xf32>
    %580 = arith.addf %567, %579 : vector<16x8xf32>
    %c0_265 = arith.constant 0 : index
    %c0_266 = arith.constant 0 : index
    %c2_267 = arith.constant 2 : index
    %581 = vector.load %arg2[%c0_265, %c0_266, %c2_267] : memref<4x16x10xbf16, #tpu.memory_space<vmem>>, vector<1x16x8xbf16>
    %582 = vector.shape_cast %581 : vector<1x16x8xbf16> to vector<16x8xbf16>
    %583 = arith.extf %582 : vector<16x8xbf16> to vector<16x8xf32>
    %584 = vector.broadcast %574 : f32 to vector<16x8xf32>
    %585 = arith.mulf %584, %583 : vector<16x8xf32>
    %586 = arith.addf %573, %585 : vector<16x8xf32>
    %c39 = arith.constant 39 : index
    %587 = memref.load %arg3[%c39] : memref<96xf32, #tpu.memory_space<smem>>
    %c1_268 = arith.constant 1 : index
    %c0_269 = arith.constant 0 : index
    %c0_270 = arith.constant 0 : index
    %588 = vector.load %arg1[%c1_268, %c0_269, %c0_270] : memref<4x16x10xbf16, #tpu.memory_space<vmem>>, vector<1x16x8xbf16>
    %589 = vector.shape_cast %588 : vector<1x16x8xbf16> to vector<16x8xbf16>
    %590 = arith.extf %589 : vector<16x8xbf16> to vector<16x8xf32>
    %591 = vector.broadcast %587 : f32 to vector<16x8xf32>
    %592 = arith.mulf %591, %590 : vector<16x8xf32>
    %593 = arith.addf %580, %592 : vector<16x8xf32>
    %c1_271 = arith.constant 1 : index
    %c0_272 = arith.constant 0 : index
    %c0_273 = arith.constant 0 : index
    %594 = vector.load %arg2[%c1_271, %c0_272, %c0_273] : memref<4x16x10xbf16, #tpu.memory_space<vmem>>, vector<1x16x8xbf16>
    %595 = vector.shape_cast %594 : vector<1x16x8xbf16> to vector<16x8xbf16>
    %596 = arith.extf %595 : vector<16x8xbf16> to vector<16x8xf32>
    %597 = vector.broadcast %587 : f32 to vector<16x8xf32>
    %598 = arith.mulf %597, %596 : vector<16x8xf32>
    %599 = arith.addf %586, %598 : vector<16x8xf32>
    %c40 = arith.constant 40 : index
    %600 = memref.load %arg3[%c40] : memref<96xf32, #tpu.memory_space<smem>>
    %c1_274 = arith.constant 1 : index
    %c0_275 = arith.constant 0 : index
    %c1_276 = arith.constant 1 : index
    %601 = vector.load %arg1[%c1_274, %c0_275, %c1_276] : memref<4x16x10xbf16, #tpu.memory_space<vmem>>, vector<1x16x8xbf16>
    %602 = vector.shape_cast %601 : vector<1x16x8xbf16> to vector<16x8xbf16>
    %603 = arith.extf %602 : vector<16x8xbf16> to vector<16x8xf32>
    %604 = vector.broadcast %600 : f32 to vector<16x8xf32>
    %605 = arith.mulf %604, %603 : vector<16x8xf32>
    %606 = arith.addf %593, %605 : vector<16x8xf32>
    %c1_277 = arith.constant 1 : index
    %c0_278 = arith.constant 0 : index
    %c1_279 = arith.constant 1 : index
    %607 = vector.load %arg2[%c1_277, %c0_278, %c1_279] : memref<4x16x10xbf16, #tpu.memory_space<vmem>>, vector<1x16x8xbf16>
    %608 = vector.shape_cast %607 : vector<1x16x8xbf16> to vector<16x8xbf16>
    %609 = arith.extf %608 : vector<16x8xbf16> to vector<16x8xf32>
    %610 = vector.broadcast %600 : f32 to vector<16x8xf32>
    %611 = arith.mulf %610, %609 : vector<16x8xf32>
    %612 = arith.addf %599, %611 : vector<16x8xf32>
    %c41 = arith.constant 41 : index
    %613 = memref.load %arg3[%c41] : memref<96xf32, #tpu.memory_space<smem>>
    %c1_280 = arith.constant 1 : index
    %c0_281 = arith.constant 0 : index
    %c2_282 = arith.constant 2 : index
    %614 = vector.load %arg1[%c1_280, %c0_281, %c2_282] : memref<4x16x10xbf16, #tpu.memory_space<vmem>>, vector<1x16x8xbf16>
    %615 = vector.shape_cast %614 : vector<1x16x8xbf16> to vector<16x8xbf16>
    %616 = arith.extf %615 : vector<16x8xbf16> to vector<16x8xf32>
    %617 = vector.broadcast %613 : f32 to vector<16x8xf32>
    %618 = arith.mulf %617, %616 : vector<16x8xf32>
    %619 = arith.addf %606, %618 : vector<16x8xf32>
    %c1_283 = arith.constant 1 : index
    %c0_284 = arith.constant 0 : index
    %c2_285 = arith.constant 2 : index
    %620 = vector.load %arg2[%c1_283, %c0_284, %c2_285] : memref<4x16x10xbf16, #tpu.memory_space<vmem>>, vector<1x16x8xbf16>
    %621 = vector.shape_cast %620 : vector<1x16x8xbf16> to vector<16x8xbf16>
    %622 = arith.extf %621 : vector<16x8xbf16> to vector<16x8xf32>
    %623 = vector.broadcast %613 : f32 to vector<16x8xf32>
    %624 = arith.mulf %623, %622 : vector<16x8xf32>
    %625 = arith.addf %612, %624 : vector<16x8xf32>
    %c42 = arith.constant 42 : index
    %626 = memref.load %arg3[%c42] : memref<96xf32, #tpu.memory_space<smem>>
    %c2_286 = arith.constant 2 : index
    %c0_287 = arith.constant 0 : index
    %c0_288 = arith.constant 0 : index
    %627 = vector.load %arg1[%c2_286, %c0_287, %c0_288] : memref<4x16x10xbf16, #tpu.memory_space<vmem>>, vector<1x16x8xbf16>
    %628 = vector.shape_cast %627 : vector<1x16x8xbf16> to vector<16x8xbf16>
    %629 = arith.extf %628 : vector<16x8xbf16> to vector<16x8xf32>
    %630 = vector.broadcast %626 : f32 to vector<16x8xf32>
    %631 = arith.mulf %630, %629 : vector<16x8xf32>
    %632 = arith.addf %619, %631 : vector<16x8xf32>
    %c2_289 = arith.constant 2 : index
    %c0_290 = arith.constant 0 : index
    %c0_291 = arith.constant 0 : index
    %633 = vector.load %arg2[%c2_289, %c0_290, %c0_291] : memref<4x16x10xbf16, #tpu.memory_space<vmem>>, vector<1x16x8xbf16>
    %634 = vector.shape_cast %633 : vector<1x16x8xbf16> to vector<16x8xbf16>
    %635 = arith.extf %634 : vector<16x8xbf16> to vector<16x8xf32>
    %636 = vector.broadcast %626 : f32 to vector<16x8xf32>
    %637 = arith.mulf %636, %635 : vector<16x8xf32>
    %638 = arith.addf %625, %637 : vector<16x8xf32>
    %c43 = arith.constant 43 : index
    %639 = memref.load %arg3[%c43] : memref<96xf32, #tpu.memory_space<smem>>
    %c2_292 = arith.constant 2 : index
    %c0_293 = arith.constant 0 : index
    %c1_294 = arith.constant 1 : index
    %640 = vector.load %arg1[%c2_292, %c0_293, %c1_294] : memref<4x16x10xbf16, #tpu.memory_space<vmem>>, vector<1x16x8xbf16>
    %641 = vector.shape_cast %640 : vector<1x16x8xbf16> to vector<16x8xbf16>
    %642 = arith.extf %641 : vector<16x8xbf16> to vector<16x8xf32>
    %643 = vector.broadcast %639 : f32 to vector<16x8xf32>
    %644 = arith.mulf %643, %642 : vector<16x8xf32>
    %645 = arith.addf %632, %644 : vector<16x8xf32>
    %c2_295 = arith.constant 2 : index
    %c0_296 = arith.constant 0 : index
    %c1_297 = arith.constant 1 : index
    %646 = vector.load %arg2[%c2_295, %c0_296, %c1_297] : memref<4x16x10xbf16, #tpu.memory_space<vmem>>, vector<1x16x8xbf16>
    %647 = vector.shape_cast %646 : vector<1x16x8xbf16> to vector<16x8xbf16>
    %648 = arith.extf %647 : vector<16x8xbf16> to vector<16x8xf32>
    %649 = vector.broadcast %639 : f32 to vector<16x8xf32>
    %650 = arith.mulf %649, %648 : vector<16x8xf32>
    %651 = arith.addf %638, %650 : vector<16x8xf32>
    %c44 = arith.constant 44 : index
    %652 = memref.load %arg3[%c44] : memref<96xf32, #tpu.memory_space<smem>>
    %c2_298 = arith.constant 2 : index
    %c0_299 = arith.constant 0 : index
    %c2_300 = arith.constant 2 : index
    %653 = vector.load %arg1[%c2_298, %c0_299, %c2_300] : memref<4x16x10xbf16, #tpu.memory_space<vmem>>, vector<1x16x8xbf16>
    %654 = vector.shape_cast %653 : vector<1x16x8xbf16> to vector<16x8xbf16>
    %655 = arith.extf %654 : vector<16x8xbf16> to vector<16x8xf32>
    %656 = vector.broadcast %652 : f32 to vector<16x8xf32>
    %657 = arith.mulf %656, %655 : vector<16x8xf32>
    %658 = arith.addf %645, %657 : vector<16x8xf32>
    %c2_301 = arith.constant 2 : index
    %c0_302 = arith.constant 0 : index
    %c2_303 = arith.constant 2 : index
    %659 = vector.load %arg2[%c2_301, %c0_302, %c2_303] : memref<4x16x10xbf16, #tpu.memory_space<vmem>>, vector<1x16x8xbf16>
    %660 = vector.shape_cast %659 : vector<1x16x8xbf16> to vector<16x8xbf16>
    %661 = arith.extf %660 : vector<16x8xbf16> to vector<16x8xf32>
    %662 = vector.broadcast %652 : f32 to vector<16x8xf32>
    %663 = arith.mulf %662, %661 : vector<16x8xf32>
    %664 = arith.addf %651, %663 : vector<16x8xf32>
    %c45 = arith.constant 45 : index
    %665 = memref.load %arg3[%c45] : memref<96xf32, #tpu.memory_space<smem>>
    %c3_304 = arith.constant 3 : index
    %c0_305 = arith.constant 0 : index
    %c0_306 = arith.constant 0 : index
    %666 = vector.load %arg1[%c3_304, %c0_305, %c0_306] : memref<4x16x10xbf16, #tpu.memory_space<vmem>>, vector<1x16x8xbf16>
    %667 = vector.shape_cast %666 : vector<1x16x8xbf16> to vector<16x8xbf16>
    %668 = arith.extf %667 : vector<16x8xbf16> to vector<16x8xf32>
    %669 = vector.broadcast %665 : f32 to vector<16x8xf32>
    %670 = arith.mulf %669, %668 : vector<16x8xf32>
    %671 = arith.addf %658, %670 : vector<16x8xf32>
    %c3_307 = arith.constant 3 : index
    %c0_308 = arith.constant 0 : index
    %c0_309 = arith.constant 0 : index
    %672 = vector.load %arg2[%c3_307, %c0_308, %c0_309] : memref<4x16x10xbf16, #tpu.memory_space<vmem>>, vector<1x16x8xbf16>
    %673 = vector.shape_cast %672 : vector<1x16x8xbf16> to vector<16x8xbf16>
    %674 = arith.extf %673 : vector<16x8xbf16> to vector<16x8xf32>
    %675 = vector.broadcast %665 : f32 to vector<16x8xf32>
    %676 = arith.mulf %675, %674 : vector<16x8xf32>
    %677 = arith.addf %664, %676 : vector<16x8xf32>
    %c46 = arith.constant 46 : index
    %678 = memref.load %arg3[%c46] : memref<96xf32, #tpu.memory_space<smem>>
    %c3_310 = arith.constant 3 : index
    %c0_311 = arith.constant 0 : index
    %c1_312 = arith.constant 1 : index
    %679 = vector.load %arg1[%c3_310, %c0_311, %c1_312] : memref<4x16x10xbf16, #tpu.memory_space<vmem>>, vector<1x16x8xbf16>
    %680 = vector.shape_cast %679 : vector<1x16x8xbf16> to vector<16x8xbf16>
    %681 = arith.extf %680 : vector<16x8xbf16> to vector<16x8xf32>
    %682 = vector.broadcast %678 : f32 to vector<16x8xf32>
    %683 = arith.mulf %682, %681 : vector<16x8xf32>
    %684 = arith.addf %671, %683 : vector<16x8xf32>
    %c3_313 = arith.constant 3 : index
    %c0_314 = arith.constant 0 : index
    %c1_315 = arith.constant 1 : index
    %685 = vector.load %arg2[%c3_313, %c0_314, %c1_315] : memref<4x16x10xbf16, #tpu.memory_space<vmem>>, vector<1x16x8xbf16>
    %686 = vector.shape_cast %685 : vector<1x16x8xbf16> to vector<16x8xbf16>
    %687 = arith.extf %686 : vector<16x8xbf16> to vector<16x8xf32>
    %688 = vector.broadcast %678 : f32 to vector<16x8xf32>
    %689 = arith.mulf %688, %687 : vector<16x8xf32>
    %690 = arith.addf %677, %689 : vector<16x8xf32>
    %c47 = arith.constant 47 : index
    %691 = memref.load %arg3[%c47] : memref<96xf32, #tpu.memory_space<smem>>
    %c3_316 = arith.constant 3 : index
    %c0_317 = arith.constant 0 : index
    %c2_318 = arith.constant 2 : index
    %692 = vector.load %arg1[%c3_316, %c0_317, %c2_318] : memref<4x16x10xbf16, #tpu.memory_space<vmem>>, vector<1x16x8xbf16>
    %693 = vector.shape_cast %692 : vector<1x16x8xbf16> to vector<16x8xbf16>
    %694 = arith.extf %693 : vector<16x8xbf16> to vector<16x8xf32>
    %695 = vector.broadcast %691 : f32 to vector<16x8xf32>
    %696 = arith.mulf %695, %694 : vector<16x8xf32>
    %697 = arith.addf %684, %696 : vector<16x8xf32>
    %c3_319 = arith.constant 3 : index
    %c0_320 = arith.constant 0 : index
    %c2_321 = arith.constant 2 : index
    %698 = vector.load %arg2[%c3_319, %c0_320, %c2_321] : memref<4x16x10xbf16, #tpu.memory_space<vmem>>, vector<1x16x8xbf16>
    %699 = vector.shape_cast %698 : vector<1x16x8xbf16> to vector<16x8xbf16>
    %700 = arith.extf %699 : vector<16x8xbf16> to vector<16x8xf32>
    %701 = vector.broadcast %691 : f32 to vector<16x8xf32>
    %702 = arith.mulf %701, %700 : vector<16x8xf32>
    %703 = arith.addf %690, %702 : vector<16x8xf32>
    %c3_322 = arith.constant 3 : index
    %704 = memref.load %arg4[%c3_322] : memref<8xf32, #tpu.memory_space<smem>>
    %705 = vector.broadcast %704 : f32 to vector<16x8xf32>
    %706 = arith.addf %697, %705 : vector<16x8xf32>
    %cst_323 = arith.constant 0.000000e+00 : f32
    %707 = vector.broadcast %cst_323 : f32 to vector<16x8xf32>
    %708 = arith.subf %707, %706 : vector<16x8xf32>
    %709 = math.exp %708 : vector<16x8xf32>
    %cst_324 = arith.constant 1.000000e+00 : f32
    %710 = vector.broadcast %cst_324 : f32 to vector<16x8xf32>
    %711 = arith.addf %710, %709 : vector<16x8xf32>
    %712 = tpu.reciprocal %711 {approx = true} : vector<16x8xf32> -> vector<16x8xf32>
    %713 = arith.mulf %706, %712 : vector<16x8xf32>
    %c3_325 = arith.constant 3 : index
    %714 = memref.load %arg4[%c3_325] : memref<8xf32, #tpu.memory_space<smem>>
    %715 = vector.broadcast %714 : f32 to vector<16x8xf32>
    %716 = arith.addf %703, %715 : vector<16x8xf32>
    %cst_326 = arith.constant 0.000000e+00 : f32
    %717 = vector.broadcast %cst_326 : f32 to vector<16x8xf32>
    %718 = arith.subf %717, %716 : vector<16x8xf32>
    %719 = math.exp %718 : vector<16x8xf32>
    %cst_327 = arith.constant 1.000000e+00 : f32
    %720 = vector.broadcast %cst_327 : f32 to vector<16x8xf32>
    %721 = arith.addf %720, %719 : vector<16x8xf32>
    %722 = tpu.reciprocal %721 {approx = true} : vector<16x8xf32> -> vector<16x8xf32>
    %723 = arith.mulf %716, %722 : vector<16x8xf32>
    %724 = arith.maximumf %713, %723 : vector<16x8xf32>
    %c3_328 = arith.constant 3 : index
    %c0_329 = arith.constant 0 : index
    %c0_330 = arith.constant 0 : index
    %725 = vector.load %arg5[%c3_328, %c0_329, %c0_330] : memref<8x16x8xf32, #tpu.memory_space<vmem>>, vector<1x16x8xf32>
    %726 = vector.shape_cast %725 : vector<1x16x8xf32> to vector<16x8xf32>
    %727 = vector.shape_cast %724 : vector<16x8xf32> to vector<1x16x8xf32>
    tpu.vector_store %arg5[%c3_328, %c0_329, %c0_330], %727 {strides = array<i32>} : memref<8x16x8xf32, #tpu.memory_space<vmem>>, vector<1x16x8xf32>,
    %cst_331 = arith.constant 0.000000e+00 : f32
    %728 = vector.broadcast %cst_331 : f32 to vector<16x8xf32>
    %cst_332 = arith.constant 0.000000e+00 : f32
    %729 = vector.broadcast %cst_332 : f32 to vector<16x8xf32>
    %c48 = arith.constant 48 : index
    %730 = memref.load %arg3[%c48] : memref<96xf32, #tpu.memory_space<smem>>
    %c0_333 = arith.constant 0 : index
    %c0_334 = arith.constant 0 : index
    %c0_335 = arith.constant 0 : index
    %731 = vector.load %arg1[%c0_333, %c0_334, %c0_335] : memref<4x16x10xbf16, #tpu.memory_space<vmem>>, vector<1x16x8xbf16>
    %732 = vector.shape_cast %731 : vector<1x16x8xbf16> to vector<16x8xbf16>
    %733 = arith.extf %732 : vector<16x8xbf16> to vector<16x8xf32>
    %734 = vector.broadcast %730 : f32 to vector<16x8xf32>
    %735 = arith.mulf %734, %733 : vector<16x8xf32>
    %736 = arith.addf %728, %735 : vector<16x8xf32>
    %c0_336 = arith.constant 0 : index
    %c0_337 = arith.constant 0 : index
    %c0_338 = arith.constant 0 : index
    %737 = vector.load %arg2[%c0_336, %c0_337, %c0_338] : memref<4x16x10xbf16, #tpu.memory_space<vmem>>, vector<1x16x8xbf16>
    %738 = vector.shape_cast %737 : vector<1x16x8xbf16> to vector<16x8xbf16>
    %739 = arith.extf %738 : vector<16x8xbf16> to vector<16x8xf32>
    %740 = vector.broadcast %730 : f32 to vector<16x8xf32>
    %741 = arith.mulf %740, %739 : vector<16x8xf32>
    %742 = arith.addf %729, %741 : vector<16x8xf32>
    %c49 = arith.constant 49 : index
    %743 = memref.load %arg3[%c49] : memref<96xf32, #tpu.memory_space<smem>>
    %c0_339 = arith.constant 0 : index
    %c0_340 = arith.constant 0 : index
    %c1_341 = arith.constant 1 : index
    %744 = vector.load %arg1[%c0_339, %c0_340, %c1_341] : memref<4x16x10xbf16, #tpu.memory_space<vmem>>, vector<1x16x8xbf16>
    %745 = vector.shape_cast %744 : vector<1x16x8xbf16> to vector<16x8xbf16>
    %746 = arith.extf %745 : vector<16x8xbf16> to vector<16x8xf32>
    %747 = vector.broadcast %743 : f32 to vector<16x8xf32>
    %748 = arith.mulf %747, %746 : vector<16x8xf32>
    %749 = arith.addf %736, %748 : vector<16x8xf32>
    %c0_342 = arith.constant 0 : index
    %c0_343 = arith.constant 0 : index
    %c1_344 = arith.constant 1 : index
    %750 = vector.load %arg2[%c0_342, %c0_343, %c1_344] : memref<4x16x10xbf16, #tpu.memory_space<vmem>>, vector<1x16x8xbf16>
    %751 = vector.shape_cast %750 : vector<1x16x8xbf16> to vector<16x8xbf16>
    %752 = arith.extf %751 : vector<16x8xbf16> to vector<16x8xf32>
    %753 = vector.broadcast %743 : f32 to vector<16x8xf32>
    %754 = arith.mulf %753, %752 : vector<16x8xf32>
    %755 = arith.addf %742, %754 : vector<16x8xf32>
    %c50 = arith.constant 50 : index
    %756 = memref.load %arg3[%c50] : memref<96xf32, #tpu.memory_space<smem>>
    %c0_345 = arith.constant 0 : index
    %c0_346 = arith.constant 0 : index
    %c2_347 = arith.constant 2 : index
    %757 = vector.load %arg1[%c0_345, %c0_346, %c2_347] : memref<4x16x10xbf16, #tpu.memory_space<vmem>>, vector<1x16x8xbf16>
    %758 = vector.shape_cast %757 : vector<1x16x8xbf16> to vector<16x8xbf16>
    %759 = arith.extf %758 : vector<16x8xbf16> to vector<16x8xf32>
    %760 = vector.broadcast %756 : f32 to vector<16x8xf32>
    %761 = arith.mulf %760, %759 : vector<16x8xf32>
    %762 = arith.addf %749, %761 : vector<16x8xf32>
    %c0_348 = arith.constant 0 : index
    %c0_349 = arith.constant 0 : index
    %c2_350 = arith.constant 2 : index
    %763 = vector.load %arg2[%c0_348, %c0_349, %c2_350] : memref<4x16x10xbf16, #tpu.memory_space<vmem>>, vector<1x16x8xbf16>
    %764 = vector.shape_cast %763 : vector<1x16x8xbf16> to vector<16x8xbf16>
    %765 = arith.extf %764 : vector<16x8xbf16> to vector<16x8xf32>
    %766 = vector.broadcast %756 : f32 to vector<16x8xf32>
    %767 = arith.mulf %766, %765 : vector<16x8xf32>
    %768 = arith.addf %755, %767 : vector<16x8xf32>
    %c51 = arith.constant 51 : index
    %769 = memref.load %arg3[%c51] : memref<96xf32, #tpu.memory_space<smem>>
    %c1_351 = arith.constant 1 : index
    %c0_352 = arith.constant 0 : index
    %c0_353 = arith.constant 0 : index
    %770 = vector.load %arg1[%c1_351, %c0_352, %c0_353] : memref<4x16x10xbf16, #tpu.memory_space<vmem>>, vector<1x16x8xbf16>
    %771 = vector.shape_cast %770 : vector<1x16x8xbf16> to vector<16x8xbf16>
    %772 = arith.extf %771 : vector<16x8xbf16> to vector<16x8xf32>
    %773 = vector.broadcast %769 : f32 to vector<16x8xf32>
    %774 = arith.mulf %773, %772 : vector<16x8xf32>
    %775 = arith.addf %762, %774 : vector<16x8xf32>
    %c1_354 = arith.constant 1 : index
    %c0_355 = arith.constant 0 : index
    %c0_356 = arith.constant 0 : index
    %776 = vector.load %arg2[%c1_354, %c0_355, %c0_356] : memref<4x16x10xbf16, #tpu.memory_space<vmem>>, vector<1x16x8xbf16>
    %777 = vector.shape_cast %776 : vector<1x16x8xbf16> to vector<16x8xbf16>
    %778 = arith.extf %777 : vector<16x8xbf16> to vector<16x8xf32>
    %779 = vector.broadcast %769 : f32 to vector<16x8xf32>
    %780 = arith.mulf %779, %778 : vector<16x8xf32>
    %781 = arith.addf %768, %780 : vector<16x8xf32>
    %c52 = arith.constant 52 : index
    %782 = memref.load %arg3[%c52] : memref<96xf32, #tpu.memory_space<smem>>
    %c1_357 = arith.constant 1 : index
    %c0_358 = arith.constant 0 : index
    %c1_359 = arith.constant 1 : index
    %783 = vector.load %arg1[%c1_357, %c0_358, %c1_359] : memref<4x16x10xbf16, #tpu.memory_space<vmem>>, vector<1x16x8xbf16>
    %784 = vector.shape_cast %783 : vector<1x16x8xbf16> to vector<16x8xbf16>
    %785 = arith.extf %784 : vector<16x8xbf16> to vector<16x8xf32>
    %786 = vector.broadcast %782 : f32 to vector<16x8xf32>
    %787 = arith.mulf %786, %785 : vector<16x8xf32>
    %788 = arith.addf %775, %787 : vector<16x8xf32>
    %c1_360 = arith.constant 1 : index
    %c0_361 = arith.constant 0 : index
    %c1_362 = arith.constant 1 : index
    %789 = vector.load %arg2[%c1_360, %c0_361, %c1_362] : memref<4x16x10xbf16, #tpu.memory_space<vmem>>, vector<1x16x8xbf16>
    %790 = vector.shape_cast %789 : vector<1x16x8xbf16> to vector<16x8xbf16>
    %791 = arith.extf %790 : vector<16x8xbf16> to vector<16x8xf32>
    %792 = vector.broadcast %782 : f32 to vector<16x8xf32>
    %793 = arith.mulf %792, %791 : vector<16x8xf32>
    %794 = arith.addf %781, %793 : vector<16x8xf32>
    %c53 = arith.constant 53 : index
    %795 = memref.load %arg3[%c53] : memref<96xf32, #tpu.memory_space<smem>>
    %c1_363 = arith.constant 1 : index
    %c0_364 = arith.constant 0 : index
    %c2_365 = arith.constant 2 : index
    %796 = vector.load %arg1[%c1_363, %c0_364, %c2_365] : memref<4x16x10xbf16, #tpu.memory_space<vmem>>, vector<1x16x8xbf16>
    %797 = vector.shape_cast %796 : vector<1x16x8xbf16> to vector<16x8xbf16>
    %798 = arith.extf %797 : vector<16x8xbf16> to vector<16x8xf32>
    %799 = vector.broadcast %795 : f32 to vector<16x8xf32>
    %800 = arith.mulf %799, %798 : vector<16x8xf32>
    %801 = arith.addf %788, %800 : vector<16x8xf32>
    %c1_366 = arith.constant 1 : index
    %c0_367 = arith.constant 0 : index
    %c2_368 = arith.constant 2 : index
    %802 = vector.load %arg2[%c1_366, %c0_367, %c2_368] : memref<4x16x10xbf16, #tpu.memory_space<vmem>>, vector<1x16x8xbf16>
    %803 = vector.shape_cast %802 : vector<1x16x8xbf16> to vector<16x8xbf16>
    %804 = arith.extf %803 : vector<16x8xbf16> to vector<16x8xf32>
    %805 = vector.broadcast %795 : f32 to vector<16x8xf32>
    %806 = arith.mulf %805, %804 : vector<16x8xf32>
    %807 = arith.addf %794, %806 : vector<16x8xf32>
    %c54 = arith.constant 54 : index
    %808 = memref.load %arg3[%c54] : memref<96xf32, #tpu.memory_space<smem>>
    %c2_369 = arith.constant 2 : index
    %c0_370 = arith.constant 0 : index
    %c0_371 = arith.constant 0 : index
    %809 = vector.load %arg1[%c2_369, %c0_370, %c0_371] : memref<4x16x10xbf16, #tpu.memory_space<vmem>>, vector<1x16x8xbf16>
    %810 = vector.shape_cast %809 : vector<1x16x8xbf16> to vector<16x8xbf16>
    %811 = arith.extf %810 : vector<16x8xbf16> to vector<16x8xf32>
    %812 = vector.broadcast %808 : f32 to vector<16x8xf32>
    %813 = arith.mulf %812, %811 : vector<16x8xf32>
    %814 = arith.addf %801, %813 : vector<16x8xf32>
    %c2_372 = arith.constant 2 : index
    %c0_373 = arith.constant 0 : index
    %c0_374 = arith.constant 0 : index
    %815 = vector.load %arg2[%c2_372, %c0_373, %c0_374] : memref<4x16x10xbf16, #tpu.memory_space<vmem>>, vector<1x16x8xbf16>
    %816 = vector.shape_cast %815 : vector<1x16x8xbf16> to vector<16x8xbf16>
    %817 = arith.extf %816 : vector<16x8xbf16> to vector<16x8xf32>
    %818 = vector.broadcast %808 : f32 to vector<16x8xf32>
    %819 = arith.mulf %818, %817 : vector<16x8xf32>
    %820 = arith.addf %807, %819 : vector<16x8xf32>
    %c55 = arith.constant 55 : index
    %821 = memref.load %arg3[%c55] : memref<96xf32, #tpu.memory_space<smem>>
    %c2_375 = arith.constant 2 : index
    %c0_376 = arith.constant 0 : index
    %c1_377 = arith.constant 1 : index
    %822 = vector.load %arg1[%c2_375, %c0_376, %c1_377] : memref<4x16x10xbf16, #tpu.memory_space<vmem>>, vector<1x16x8xbf16>
    %823 = vector.shape_cast %822 : vector<1x16x8xbf16> to vector<16x8xbf16>
    %824 = arith.extf %823 : vector<16x8xbf16> to vector<16x8xf32>
    %825 = vector.broadcast %821 : f32 to vector<16x8xf32>
    %826 = arith.mulf %825, %824 : vector<16x8xf32>
    %827 = arith.addf %814, %826 : vector<16x8xf32>
    %c2_378 = arith.constant 2 : index
    %c0_379 = arith.constant 0 : index
    %c1_380 = arith.constant 1 : index
    %828 = vector.load %arg2[%c2_378, %c0_379, %c1_380] : memref<4x16x10xbf16, #tpu.memory_space<vmem>>, vector<1x16x8xbf16>
    %829 = vector.shape_cast %828 : vector<1x16x8xbf16> to vector<16x8xbf16>
    %830 = arith.extf %829 : vector<16x8xbf16> to vector<16x8xf32>
    %831 = vector.broadcast %821 : f32 to vector<16x8xf32>
    %832 = arith.mulf %831, %830 : vector<16x8xf32>
    %833 = arith.addf %820, %832 : vector<16x8xf32>
    %c56 = arith.constant 56 : index
    %834 = memref.load %arg3[%c56] : memref<96xf32, #tpu.memory_space<smem>>
    %c2_381 = arith.constant 2 : index
    %c0_382 = arith.constant 0 : index
    %c2_383 = arith.constant 2 : index
    %835 = vector.load %arg1[%c2_381, %c0_382, %c2_383] : memref<4x16x10xbf16, #tpu.memory_space<vmem>>, vector<1x16x8xbf16>
    %836 = vector.shape_cast %835 : vector<1x16x8xbf16> to vector<16x8xbf16>
    %837 = arith.extf %836 : vector<16x8xbf16> to vector<16x8xf32>
    %838 = vector.broadcast %834 : f32 to vector<16x8xf32>
    %839 = arith.mulf %838, %837 : vector<16x8xf32>
    %840 = arith.addf %827, %839 : vector<16x8xf32>
    %c2_384 = arith.constant 2 : index
    %c0_385 = arith.constant 0 : index
    %c2_386 = arith.constant 2 : index
    %841 = vector.load %arg2[%c2_384, %c0_385, %c2_386] : memref<4x16x10xbf16, #tpu.memory_space<vmem>>, vector<1x16x8xbf16>
    %842 = vector.shape_cast %841 : vector<1x16x8xbf16> to vector<16x8xbf16>
    %843 = arith.extf %842 : vector<16x8xbf16> to vector<16x8xf32>
    %844 = vector.broadcast %834 : f32 to vector<16x8xf32>
    %845 = arith.mulf %844, %843 : vector<16x8xf32>
    %846 = arith.addf %833, %845 : vector<16x8xf32>
    %c57 = arith.constant 57 : index
    %847 = memref.load %arg3[%c57] : memref<96xf32, #tpu.memory_space<smem>>
    %c3_387 = arith.constant 3 : index
    %c0_388 = arith.constant 0 : index
    %c0_389 = arith.constant 0 : index
    %848 = vector.load %arg1[%c3_387, %c0_388, %c0_389] : memref<4x16x10xbf16, #tpu.memory_space<vmem>>, vector<1x16x8xbf16>
    %849 = vector.shape_cast %848 : vector<1x16x8xbf16> to vector<16x8xbf16>
    %850 = arith.extf %849 : vector<16x8xbf16> to vector<16x8xf32>
    %851 = vector.broadcast %847 : f32 to vector<16x8xf32>
    %852 = arith.mulf %851, %850 : vector<16x8xf32>
    %853 = arith.addf %840, %852 : vector<16x8xf32>
    %c3_390 = arith.constant 3 : index
    %c0_391 = arith.constant 0 : index
    %c0_392 = arith.constant 0 : index
    %854 = vector.load %arg2[%c3_390, %c0_391, %c0_392] : memref<4x16x10xbf16, #tpu.memory_space<vmem>>, vector<1x16x8xbf16>
    %855 = vector.shape_cast %854 : vector<1x16x8xbf16> to vector<16x8xbf16>
    %856 = arith.extf %855 : vector<16x8xbf16> to vector<16x8xf32>
    %857 = vector.broadcast %847 : f32 to vector<16x8xf32>
    %858 = arith.mulf %857, %856 : vector<16x8xf32>
    %859 = arith.addf %846, %858 : vector<16x8xf32>
    %c58 = arith.constant 58 : index
    %860 = memref.load %arg3[%c58] : memref<96xf32, #tpu.memory_space<smem>>
    %c3_393 = arith.constant 3 : index
    %c0_394 = arith.constant 0 : index
    %c1_395 = arith.constant 1 : index
    %861 = vector.load %arg1[%c3_393, %c0_394, %c1_395] : memref<4x16x10xbf16, #tpu.memory_space<vmem>>, vector<1x16x8xbf16>
    %862 = vector.shape_cast %861 : vector<1x16x8xbf16> to vector<16x8xbf16>
    %863 = arith.extf %862 : vector<16x8xbf16> to vector<16x8xf32>
    %864 = vector.broadcast %860 : f32 to vector<16x8xf32>
    %865 = arith.mulf %864, %863 : vector<16x8xf32>
    %866 = arith.addf %853, %865 : vector<16x8xf32>
    %c3_396 = arith.constant 3 : index
    %c0_397 = arith.constant 0 : index
    %c1_398 = arith.constant 1 : index
    %867 = vector.load %arg2[%c3_396, %c0_397, %c1_398] : memref<4x16x10xbf16, #tpu.memory_space<vmem>>, vector<1x16x8xbf16>
    %868 = vector.shape_cast %867 : vector<1x16x8xbf16> to vector<16x8xbf16>
    %869 = arith.extf %868 : vector<16x8xbf16> to vector<16x8xf32>
    %870 = vector.broadcast %860 : f32 to vector<16x8xf32>
    %871 = arith.mulf %870, %869 : vector<16x8xf32>
    %872 = arith.addf %859, %871 : vector<16x8xf32>
    %c59 = arith.constant 59 : index
    %873 = memref.load %arg3[%c59] : memref<96xf32, #tpu.memory_space<smem>>
    %c3_399 = arith.constant 3 : index
    %c0_400 = arith.constant 0 : index
    %c2_401 = arith.constant 2 : index
    %874 = vector.load %arg1[%c3_399, %c0_400, %c2_401] : memref<4x16x10xbf16, #tpu.memory_space<vmem>>, vector<1x16x8xbf16>
    %875 = vector.shape_cast %874 : vector<1x16x8xbf16> to vector<16x8xbf16>
    %876 = arith.extf %875 : vector<16x8xbf16> to vector<16x8xf32>
    %877 = vector.broadcast %873 : f32 to vector<16x8xf32>
    %878 = arith.mulf %877, %876 : vector<16x8xf32>
    %879 = arith.addf %866, %878 : vector<16x8xf32>
    %c3_402 = arith.constant 3 : index
    %c0_403 = arith.constant 0 : index
    %c2_404 = arith.constant 2 : index
    %880 = vector.load %arg2[%c3_402, %c0_403, %c2_404] : memref<4x16x10xbf16, #tpu.memory_space<vmem>>, vector<1x16x8xbf16>
    %881 = vector.shape_cast %880 : vector<1x16x8xbf16> to vector<16x8xbf16>
    %882 = arith.extf %881 : vector<16x8xbf16> to vector<16x8xf32>
    %883 = vector.broadcast %873 : f32 to vector<16x8xf32>
    %884 = arith.mulf %883, %882 : vector<16x8xf32>
    %885 = arith.addf %872, %884 : vector<16x8xf32>
    %c4_405 = arith.constant 4 : index
    %886 = memref.load %arg4[%c4_405] : memref<8xf32, #tpu.memory_space<smem>>
    %887 = vector.broadcast %886 : f32 to vector<16x8xf32>
    %888 = arith.addf %879, %887 : vector<16x8xf32>
    %cst_406 = arith.constant 0.000000e+00 : f32
    %889 = vector.broadcast %cst_406 : f32 to vector<16x8xf32>
    %890 = arith.subf %889, %888 : vector<16x8xf32>
    %891 = math.exp %890 : vector<16x8xf32>
    %cst_407 = arith.constant 1.000000e+00 : f32
    %892 = vector.broadcast %cst_407 : f32 to vector<16x8xf32>
    %893 = arith.addf %892, %891 : vector<16x8xf32>
    %894 = tpu.reciprocal %893 {approx = true} : vector<16x8xf32> -> vector<16x8xf32>
    %895 = arith.mulf %888, %894 : vector<16x8xf32>
    %c4_408 = arith.constant 4 : index
    %896 = memref.load %arg4[%c4_408] : memref<8xf32, #tpu.memory_space<smem>>
    %897 = vector.broadcast %896 : f32 to vector<16x8xf32>
    %898 = arith.addf %885, %897 : vector<16x8xf32>
    %cst_409 = arith.constant 0.000000e+00 : f32
    %899 = vector.broadcast %cst_409 : f32 to vector<16x8xf32>
    %900 = arith.subf %899, %898 : vector<16x8xf32>
    %901 = math.exp %900 : vector<16x8xf32>
    %cst_410 = arith.constant 1.000000e+00 : f32
    %902 = vector.broadcast %cst_410 : f32 to vector<16x8xf32>
    %903 = arith.addf %902, %901 : vector<16x8xf32>
    %904 = tpu.reciprocal %903 {approx = true} : vector<16x8xf32> -> vector<16x8xf32>
    %905 = arith.mulf %898, %904 : vector<16x8xf32>
    %906 = arith.maximumf %895, %905 : vector<16x8xf32>
    %c4_411 = arith.constant 4 : index
    %c0_412 = arith.constant 0 : index
    %c0_413 = arith.constant 0 : index
    %907 = vector.load %arg5[%c4_411, %c0_412, %c0_413] : memref<8x16x8xf32, #tpu.memory_space<vmem>>, vector<1x16x8xf32>
    %908 = vector.shape_cast %907 : vector<1x16x8xf32> to vector<16x8xf32>
    %909 = vector.shape_cast %906 : vector<16x8xf32> to vector<1x16x8xf32>
    tpu.vector_store %arg5[%c4_411, %c0_412, %c0_413], %909 {strides = array<i32>} : memref<8x16x8xf32, #tpu.memory_space<vmem>>, vector<1x16x8xf32>,
    %cst_414 = arith.constant 0.000000e+00 : f32
    %910 = vector.broadcast %cst_414 : f32 to vector<16x8xf32>
    %cst_415 = arith.constant 0.000000e+00 : f32
    %911 = vector.broadcast %cst_415 : f32 to vector<16x8xf32>
    %c60 = arith.constant 60 : index
    %912 = memref.load %arg3[%c60] : memref<96xf32, #tpu.memory_space<smem>>
    %c0_416 = arith.constant 0 : index
    %c0_417 = arith.constant 0 : index
    %c0_418 = arith.constant 0 : index
    %913 = vector.load %arg1[%c0_416, %c0_417, %c0_418] : memref<4x16x10xbf16, #tpu.memory_space<vmem>>, vector<1x16x8xbf16>
    %914 = vector.shape_cast %913 : vector<1x16x8xbf16> to vector<16x8xbf16>
    %915 = arith.extf %914 : vector<16x8xbf16> to vector<16x8xf32>
    %916 = vector.broadcast %912 : f32 to vector<16x8xf32>
    %917 = arith.mulf %916, %915 : vector<16x8xf32>
    %918 = arith.addf %910, %917 : vector<16x8xf32>
    %c0_419 = arith.constant 0 : index
    %c0_420 = arith.constant 0 : index
    %c0_421 = arith.constant 0 : index
    %919 = vector.load %arg2[%c0_419, %c0_420, %c0_421] : memref<4x16x10xbf16, #tpu.memory_space<vmem>>, vector<1x16x8xbf16>
    %920 = vector.shape_cast %919 : vector<1x16x8xbf16> to vector<16x8xbf16>
    %921 = arith.extf %920 : vector<16x8xbf16> to vector<16x8xf32>
    %922 = vector.broadcast %912 : f32 to vector<16x8xf32>
    %923 = arith.mulf %922, %921 : vector<16x8xf32>
    %924 = arith.addf %911, %923 : vector<16x8xf32>
    %c61 = arith.constant 61 : index
    %925 = memref.load %arg3[%c61] : memref<96xf32, #tpu.memory_space<smem>>
    %c0_422 = arith.constant 0 : index
    %c0_423 = arith.constant 0 : index
    %c1_424 = arith.constant 1 : index
    %926 = vector.load %arg1[%c0_422, %c0_423, %c1_424] : memref<4x16x10xbf16, #tpu.memory_space<vmem>>, vector<1x16x8xbf16>
    %927 = vector.shape_cast %926 : vector<1x16x8xbf16> to vector<16x8xbf16>
    %928 = arith.extf %927 : vector<16x8xbf16> to vector<16x8xf32>
    %929 = vector.broadcast %925 : f32 to vector<16x8xf32>
    %930 = arith.mulf %929, %928 : vector<16x8xf32>
    %931 = arith.addf %918, %930 : vector<16x8xf32>
    %c0_425 = arith.constant 0 : index
    %c0_426 = arith.constant 0 : index
    %c1_427 = arith.constant 1 : index
    %932 = vector.load %arg2[%c0_425, %c0_426, %c1_427] : memref<4x16x10xbf16, #tpu.memory_space<vmem>>, vector<1x16x8xbf16>
    %933 = vector.shape_cast %932 : vector<1x16x8xbf16> to vector<16x8xbf16>
    %934 = arith.extf %933 : vector<16x8xbf16> to vector<16x8xf32>
    %935 = vector.broadcast %925 : f32 to vector<16x8xf32>
    %936 = arith.mulf %935, %934 : vector<16x8xf32>
    %937 = arith.addf %924, %936 : vector<16x8xf32>
    %c62 = arith.constant 62 : index
    %938 = memref.load %arg3[%c62] : memref<96xf32, #tpu.memory_space<smem>>
    %c0_428 = arith.constant 0 : index
    %c0_429 = arith.constant 0 : index
    %c2_430 = arith.constant 2 : index
    %939 = vector.load %arg1[%c0_428, %c0_429, %c2_430] : memref<4x16x10xbf16, #tpu.memory_space<vmem>>, vector<1x16x8xbf16>
    %940 = vector.shape_cast %939 : vector<1x16x8xbf16> to vector<16x8xbf16>
    %941 = arith.extf %940 : vector<16x8xbf16> to vector<16x8xf32>
    %942 = vector.broadcast %938 : f32 to vector<16x8xf32>
    %943 = arith.mulf %942, %941 : vector<16x8xf32>
    %944 = arith.addf %931, %943 : vector<16x8xf32>
    %c0_431 = arith.constant 0 : index
    %c0_432 = arith.constant 0 : index
    %c2_433 = arith.constant 2 : index
    %945 = vector.load %arg2[%c0_431, %c0_432, %c2_433] : memref<4x16x10xbf16, #tpu.memory_space<vmem>>, vector<1x16x8xbf16>
    %946 = vector.shape_cast %945 : vector<1x16x8xbf16> to vector<16x8xbf16>
    %947 = arith.extf %946 : vector<16x8xbf16> to vector<16x8xf32>
    %948 = vector.broadcast %938 : f32 to vector<16x8xf32>
    %949 = arith.mulf %948, %947 : vector<16x8xf32>
    %950 = arith.addf %937, %949 : vector<16x8xf32>
    %c63 = arith.constant 63 : index
    %951 = memref.load %arg3[%c63] : memref<96xf32, #tpu.memory_space<smem>>
    %c1_434 = arith.constant 1 : index
    %c0_435 = arith.constant 0 : index
    %c0_436 = arith.constant 0 : index
    %952 = vector.load %arg1[%c1_434, %c0_435, %c0_436] : memref<4x16x10xbf16, #tpu.memory_space<vmem>>, vector<1x16x8xbf16>
    %953 = vector.shape_cast %952 : vector<1x16x8xbf16> to vector<16x8xbf16>
    %954 = arith.extf %953 : vector<16x8xbf16> to vector<16x8xf32>
    %955 = vector.broadcast %951 : f32 to vector<16x8xf32>
    %956 = arith.mulf %955, %954 : vector<16x8xf32>
    %957 = arith.addf %944, %956 : vector<16x8xf32>
    %c1_437 = arith.constant 1 : index
    %c0_438 = arith.constant 0 : index
    %c0_439 = arith.constant 0 : index
    %958 = vector.load %arg2[%c1_437, %c0_438, %c0_439] : memref<4x16x10xbf16, #tpu.memory_space<vmem>>, vector<1x16x8xbf16>
    %959 = vector.shape_cast %958 : vector<1x16x8xbf16> to vector<16x8xbf16>
    %960 = arith.extf %959 : vector<16x8xbf16> to vector<16x8xf32>
    %961 = vector.broadcast %951 : f32 to vector<16x8xf32>
    %962 = arith.mulf %961, %960 : vector<16x8xf32>
    %963 = arith.addf %950, %962 : vector<16x8xf32>
    %c64 = arith.constant 64 : index
    %964 = memref.load %arg3[%c64] : memref<96xf32, #tpu.memory_space<smem>>
    %c1_440 = arith.constant 1 : index
    %c0_441 = arith.constant 0 : index
    %c1_442 = arith.constant 1 : index
    %965 = vector.load %arg1[%c1_440, %c0_441, %c1_442] : memref<4x16x10xbf16, #tpu.memory_space<vmem>>, vector<1x16x8xbf16>
    %966 = vector.shape_cast %965 : vector<1x16x8xbf16> to vector<16x8xbf16>
    %967 = arith.extf %966 : vector<16x8xbf16> to vector<16x8xf32>
    %968 = vector.broadcast %964 : f32 to vector<16x8xf32>
    %969 = arith.mulf %968, %967 : vector<16x8xf32>
    %970 = arith.addf %957, %969 : vector<16x8xf32>
    %c1_443 = arith.constant 1 : index
    %c0_444 = arith.constant 0 : index
    %c1_445 = arith.constant 1 : index
    %971 = vector.load %arg2[%c1_443, %c0_444, %c1_445] : memref<4x16x10xbf16, #tpu.memory_space<vmem>>, vector<1x16x8xbf16>
    %972 = vector.shape_cast %971 : vector<1x16x8xbf16> to vector<16x8xbf16>
    %973 = arith.extf %972 : vector<16x8xbf16> to vector<16x8xf32>
    %974 = vector.broadcast %964 : f32 to vector<16x8xf32>
    %975 = arith.mulf %974, %973 : vector<16x8xf32>
    %976 = arith.addf %963, %975 : vector<16x8xf32>
    %c65 = arith.constant 65 : index
    %977 = memref.load %arg3[%c65] : memref<96xf32, #tpu.memory_space<smem>>
    %c1_446 = arith.constant 1 : index
    %c0_447 = arith.constant 0 : index
    %c2_448 = arith.constant 2 : index
    %978 = vector.load %arg1[%c1_446, %c0_447, %c2_448] : memref<4x16x10xbf16, #tpu.memory_space<vmem>>, vector<1x16x8xbf16>
    %979 = vector.shape_cast %978 : vector<1x16x8xbf16> to vector<16x8xbf16>
    %980 = arith.extf %979 : vector<16x8xbf16> to vector<16x8xf32>
    %981 = vector.broadcast %977 : f32 to vector<16x8xf32>
    %982 = arith.mulf %981, %980 : vector<16x8xf32>
    %983 = arith.addf %970, %982 : vector<16x8xf32>
    %c1_449 = arith.constant 1 : index
    %c0_450 = arith.constant 0 : index
    %c2_451 = arith.constant 2 : index
    %984 = vector.load %arg2[%c1_449, %c0_450, %c2_451] : memref<4x16x10xbf16, #tpu.memory_space<vmem>>, vector<1x16x8xbf16>
    %985 = vector.shape_cast %984 : vector<1x16x8xbf16> to vector<16x8xbf16>
    %986 = arith.extf %985 : vector<16x8xbf16> to vector<16x8xf32>
    %987 = vector.broadcast %977 : f32 to vector<16x8xf32>
    %988 = arith.mulf %987, %986 : vector<16x8xf32>
    %989 = arith.addf %976, %988 : vector<16x8xf32>
    %c66 = arith.constant 66 : index
    %990 = memref.load %arg3[%c66] : memref<96xf32, #tpu.memory_space<smem>>
    %c2_452 = arith.constant 2 : index
    %c0_453 = arith.constant 0 : index
    %c0_454 = arith.constant 0 : index
    %991 = vector.load %arg1[%c2_452, %c0_453, %c0_454] : memref<4x16x10xbf16, #tpu.memory_space<vmem>>, vector<1x16x8xbf16>
    %992 = vector.shape_cast %991 : vector<1x16x8xbf16> to vector<16x8xbf16>
    %993 = arith.extf %992 : vector<16x8xbf16> to vector<16x8xf32>
    %994 = vector.broadcast %990 : f32 to vector<16x8xf32>
    %995 = arith.mulf %994, %993 : vector<16x8xf32>
    %996 = arith.addf %983, %995 : vector<16x8xf32>
    %c2_455 = arith.constant 2 : index
    %c0_456 = arith.constant 0 : index
    %c0_457 = arith.constant 0 : index
    %997 = vector.load %arg2[%c2_455, %c0_456, %c0_457] : memref<4x16x10xbf16, #tpu.memory_space<vmem>>, vector<1x16x8xbf16>
    %998 = vector.shape_cast %997 : vector<1x16x8xbf16> to vector<16x8xbf16>
    %999 = arith.extf %998 : vector<16x8xbf16> to vector<16x8xf32>
    %1000 = vector.broadcast %990 : f32 to vector<16x8xf32>
    %1001 = arith.mulf %1000, %999 : vector<16x8xf32>
    %1002 = arith.addf %989, %1001 : vector<16x8xf32>
    %c67 = arith.constant 67 : index
    %1003 = memref.load %arg3[%c67] : memref<96xf32, #tpu.memory_space<smem>>
    %c2_458 = arith.constant 2 : index
    %c0_459 = arith.constant 0 : index
    %c1_460 = arith.constant 1 : index
    %1004 = vector.load %arg1[%c2_458, %c0_459, %c1_460] : memref<4x16x10xbf16, #tpu.memory_space<vmem>>, vector<1x16x8xbf16>
    %1005 = vector.shape_cast %1004 : vector<1x16x8xbf16> to vector<16x8xbf16>
    %1006 = arith.extf %1005 : vector<16x8xbf16> to vector<16x8xf32>
    %1007 = vector.broadcast %1003 : f32 to vector<16x8xf32>
    %1008 = arith.mulf %1007, %1006 : vector<16x8xf32>
    %1009 = arith.addf %996, %1008 : vector<16x8xf32>
    %c2_461 = arith.constant 2 : index
    %c0_462 = arith.constant 0 : index
    %c1_463 = arith.constant 1 : index
    %1010 = vector.load %arg2[%c2_461, %c0_462, %c1_463] : memref<4x16x10xbf16, #tpu.memory_space<vmem>>, vector<1x16x8xbf16>
    %1011 = vector.shape_cast %1010 : vector<1x16x8xbf16> to vector<16x8xbf16>
    %1012 = arith.extf %1011 : vector<16x8xbf16> to vector<16x8xf32>
    %1013 = vector.broadcast %1003 : f32 to vector<16x8xf32>
    %1014 = arith.mulf %1013, %1012 : vector<16x8xf32>
    %1015 = arith.addf %1002, %1014 : vector<16x8xf32>
    %c68 = arith.constant 68 : index
    %1016 = memref.load %arg3[%c68] : memref<96xf32, #tpu.memory_space<smem>>
    %c2_464 = arith.constant 2 : index
    %c0_465 = arith.constant 0 : index
    %c2_466 = arith.constant 2 : index
    %1017 = vector.load %arg1[%c2_464, %c0_465, %c2_466] : memref<4x16x10xbf16, #tpu.memory_space<vmem>>, vector<1x16x8xbf16>
    %1018 = vector.shape_cast %1017 : vector<1x16x8xbf16> to vector<16x8xbf16>
    %1019 = arith.extf %1018 : vector<16x8xbf16> to vector<16x8xf32>
    %1020 = vector.broadcast %1016 : f32 to vector<16x8xf32>
    %1021 = arith.mulf %1020, %1019 : vector<16x8xf32>
    %1022 = arith.addf %1009, %1021 : vector<16x8xf32>
    %c2_467 = arith.constant 2 : index
    %c0_468 = arith.constant 0 : index
    %c2_469 = arith.constant 2 : index
    %1023 = vector.load %arg2[%c2_467, %c0_468, %c2_469] : memref<4x16x10xbf16, #tpu.memory_space<vmem>>, vector<1x16x8xbf16>
    %1024 = vector.shape_cast %1023 : vector<1x16x8xbf16> to vector<16x8xbf16>
    %1025 = arith.extf %1024 : vector<16x8xbf16> to vector<16x8xf32>
    %1026 = vector.broadcast %1016 : f32 to vector<16x8xf32>
    %1027 = arith.mulf %1026, %1025 : vector<16x8xf32>
    %1028 = arith.addf %1015, %1027 : vector<16x8xf32>
    %c69 = arith.constant 69 : index
    %1029 = memref.load %arg3[%c69] : memref<96xf32, #tpu.memory_space<smem>>
    %c3_470 = arith.constant 3 : index
    %c0_471 = arith.constant 0 : index
    %c0_472 = arith.constant 0 : index
    %1030 = vector.load %arg1[%c3_470, %c0_471, %c0_472] : memref<4x16x10xbf16, #tpu.memory_space<vmem>>, vector<1x16x8xbf16>
    %1031 = vector.shape_cast %1030 : vector<1x16x8xbf16> to vector<16x8xbf16>
    %1032 = arith.extf %1031 : vector<16x8xbf16> to vector<16x8xf32>
    %1033 = vector.broadcast %1029 : f32 to vector<16x8xf32>
    %1034 = arith.mulf %1033, %1032 : vector<16x8xf32>
    %1035 = arith.addf %1022, %1034 : vector<16x8xf32>
    %c3_473 = arith.constant 3 : index
    %c0_474 = arith.constant 0 : index
    %c0_475 = arith.constant 0 : index
    %1036 = vector.load %arg2[%c3_473, %c0_474, %c0_475] : memref<4x16x10xbf16, #tpu.memory_space<vmem>>, vector<1x16x8xbf16>
    %1037 = vector.shape_cast %1036 : vector<1x16x8xbf16> to vector<16x8xbf16>
    %1038 = arith.extf %1037 : vector<16x8xbf16> to vector<16x8xf32>
    %1039 = vector.broadcast %1029 : f32 to vector<16x8xf32>
    %1040 = arith.mulf %1039, %1038 : vector<16x8xf32>
    %1041 = arith.addf %1028, %1040 : vector<16x8xf32>
    %c70 = arith.constant 70 : index
    %1042 = memref.load %arg3[%c70] : memref<96xf32, #tpu.memory_space<smem>>
    %c3_476 = arith.constant 3 : index
    %c0_477 = arith.constant 0 : index
    %c1_478 = arith.constant 1 : index
    %1043 = vector.load %arg1[%c3_476, %c0_477, %c1_478] : memref<4x16x10xbf16, #tpu.memory_space<vmem>>, vector<1x16x8xbf16>
    %1044 = vector.shape_cast %1043 : vector<1x16x8xbf16> to vector<16x8xbf16>
    %1045 = arith.extf %1044 : vector<16x8xbf16> to vector<16x8xf32>
    %1046 = vector.broadcast %1042 : f32 to vector<16x8xf32>
    %1047 = arith.mulf %1046, %1045 : vector<16x8xf32>
    %1048 = arith.addf %1035, %1047 : vector<16x8xf32>
    %c3_479 = arith.constant 3 : index
    %c0_480 = arith.constant 0 : index
    %c1_481 = arith.constant 1 : index
    %1049 = vector.load %arg2[%c3_479, %c0_480, %c1_481] : memref<4x16x10xbf16, #tpu.memory_space<vmem>>, vector<1x16x8xbf16>
    %1050 = vector.shape_cast %1049 : vector<1x16x8xbf16> to vector<16x8xbf16>
    %1051 = arith.extf %1050 : vector<16x8xbf16> to vector<16x8xf32>
    %1052 = vector.broadcast %1042 : f32 to vector<16x8xf32>
    %1053 = arith.mulf %1052, %1051 : vector<16x8xf32>
    %1054 = arith.addf %1041, %1053 : vector<16x8xf32>
    %c71 = arith.constant 71 : index
    %1055 = memref.load %arg3[%c71] : memref<96xf32, #tpu.memory_space<smem>>
    %c3_482 = arith.constant 3 : index
    %c0_483 = arith.constant 0 : index
    %c2_484 = arith.constant 2 : index
    %1056 = vector.load %arg1[%c3_482, %c0_483, %c2_484] : memref<4x16x10xbf16, #tpu.memory_space<vmem>>, vector<1x16x8xbf16>
    %1057 = vector.shape_cast %1056 : vector<1x16x8xbf16> to vector<16x8xbf16>
    %1058 = arith.extf %1057 : vector<16x8xbf16> to vector<16x8xf32>
    %1059 = vector.broadcast %1055 : f32 to vector<16x8xf32>
    %1060 = arith.mulf %1059, %1058 : vector<16x8xf32>
    %1061 = arith.addf %1048, %1060 : vector<16x8xf32>
    %c3_485 = arith.constant 3 : index
    %c0_486 = arith.constant 0 : index
    %c2_487 = arith.constant 2 : index
    %1062 = vector.load %arg2[%c3_485, %c0_486, %c2_487] : memref<4x16x10xbf16, #tpu.memory_space<vmem>>, vector<1x16x8xbf16>
    %1063 = vector.shape_cast %1062 : vector<1x16x8xbf16> to vector<16x8xbf16>
    %1064 = arith.extf %1063 : vector<16x8xbf16> to vector<16x8xf32>
    %1065 = vector.broadcast %1055 : f32 to vector<16x8xf32>
    %1066 = arith.mulf %1065, %1064 : vector<16x8xf32>
    %1067 = arith.addf %1054, %1066 : vector<16x8xf32>
    %c5_488 = arith.constant 5 : index
    %1068 = memref.load %arg4[%c5_488] : memref<8xf32, #tpu.memory_space<smem>>
    %1069 = vector.broadcast %1068 : f32 to vector<16x8xf32>
    %1070 = arith.addf %1061, %1069 : vector<16x8xf32>
    %cst_489 = arith.constant 0.000000e+00 : f32
    %1071 = vector.broadcast %cst_489 : f32 to vector<16x8xf32>
    %1072 = arith.subf %1071, %1070 : vector<16x8xf32>
    %1073 = math.exp %1072 : vector<16x8xf32>
    %cst_490 = arith.constant 1.000000e+00 : f32
    %1074 = vector.broadcast %cst_490 : f32 to vector<16x8xf32>
    %1075 = arith.addf %1074, %1073 : vector<16x8xf32>
    %1076 = tpu.reciprocal %1075 {approx = true} : vector<16x8xf32> -> vector<16x8xf32>
    %1077 = arith.mulf %1070, %1076 : vector<16x8xf32>
    %c5_491 = arith.constant 5 : index
    %1078 = memref.load %arg4[%c5_491] : memref<8xf32, #tpu.memory_space<smem>>
    %1079 = vector.broadcast %1078 : f32 to vector<16x8xf32>
    %1080 = arith.addf %1067, %1079 : vector<16x8xf32>
    %cst_492 = arith.constant 0.000000e+00 : f32
    %1081 = vector.broadcast %cst_492 : f32 to vector<16x8xf32>
    %1082 = arith.subf %1081, %1080 : vector<16x8xf32>
    %1083 = math.exp %1082 : vector<16x8xf32>
    %cst_493 = arith.constant 1.000000e+00 : f32
    %1084 = vector.broadcast %cst_493 : f32 to vector<16x8xf32>
    %1085 = arith.addf %1084, %1083 : vector<16x8xf32>
    %1086 = tpu.reciprocal %1085 {approx = true} : vector<16x8xf32> -> vector<16x8xf32>
    %1087 = arith.mulf %1080, %1086 : vector<16x8xf32>
    %1088 = arith.maximumf %1077, %1087 : vector<16x8xf32>
    %c5_494 = arith.constant 5 : index
    %c0_495 = arith.constant 0 : index
    %c0_496 = arith.constant 0 : index
    %1089 = vector.load %arg5[%c5_494, %c0_495, %c0_496] : memref<8x16x8xf32, #tpu.memory_space<vmem>>, vector<1x16x8xf32>
    %1090 = vector.shape_cast %1089 : vector<1x16x8xf32> to vector<16x8xf32>
    %1091 = vector.shape_cast %1088 : vector<16x8xf32> to vector<1x16x8xf32>
    tpu.vector_store %arg5[%c5_494, %c0_495, %c0_496], %1091 {strides = array<i32>} : memref<8x16x8xf32, #tpu.memory_space<vmem>>, vector<1x16x8xf32>,
    %cst_497 = arith.constant 0.000000e+00 : f32
    %1092 = vector.broadcast %cst_497 : f32 to vector<16x8xf32>
    %cst_498 = arith.constant 0.000000e+00 : f32
    %1093 = vector.broadcast %cst_498 : f32 to vector<16x8xf32>
    %c72 = arith.constant 72 : index
    %1094 = memref.load %arg3[%c72] : memref<96xf32, #tpu.memory_space<smem>>
    %c0_499 = arith.constant 0 : index
    %c0_500 = arith.constant 0 : index
    %c0_501 = arith.constant 0 : index
    %1095 = vector.load %arg1[%c0_499, %c0_500, %c0_501] : memref<4x16x10xbf16, #tpu.memory_space<vmem>>, vector<1x16x8xbf16>
    %1096 = vector.shape_cast %1095 : vector<1x16x8xbf16> to vector<16x8xbf16>
    %1097 = arith.extf %1096 : vector<16x8xbf16> to vector<16x8xf32>
    %1098 = vector.broadcast %1094 : f32 to vector<16x8xf32>
    %1099 = arith.mulf %1098, %1097 : vector<16x8xf32>
    %1100 = arith.addf %1092, %1099 : vector<16x8xf32>
    %c0_502 = arith.constant 0 : index
    %c0_503 = arith.constant 0 : index
    %c0_504 = arith.constant 0 : index
    %1101 = vector.load %arg2[%c0_502, %c0_503, %c0_504] : memref<4x16x10xbf16, #tpu.memory_space<vmem>>, vector<1x16x8xbf16>
    %1102 = vector.shape_cast %1101 : vector<1x16x8xbf16> to vector<16x8xbf16>
    %1103 = arith.extf %1102 : vector<16x8xbf16> to vector<16x8xf32>
    %1104 = vector.broadcast %1094 : f32 to vector<16x8xf32>
    %1105 = arith.mulf %1104, %1103 : vector<16x8xf32>
    %1106 = arith.addf %1093, %1105 : vector<16x8xf32>
    %c73 = arith.constant 73 : index
    %1107 = memref.load %arg3[%c73] : memref<96xf32, #tpu.memory_space<smem>>
    %c0_505 = arith.constant 0 : index
    %c0_506 = arith.constant 0 : index
    %c1_507 = arith.constant 1 : index
    %1108 = vector.load %arg1[%c0_505, %c0_506, %c1_507] : memref<4x16x10xbf16, #tpu.memory_space<vmem>>, vector<1x16x8xbf16>
    %1109 = vector.shape_cast %1108 : vector<1x16x8xbf16> to vector<16x8xbf16>
    %1110 = arith.extf %1109 : vector<16x8xbf16> to vector<16x8xf32>
    %1111 = vector.broadcast %1107 : f32 to vector<16x8xf32>
    %1112 = arith.mulf %1111, %1110 : vector<16x8xf32>
    %1113 = arith.addf %1100, %1112 : vector<16x8xf32>
    %c0_508 = arith.constant 0 : index
    %c0_509 = arith.constant 0 : index
    %c1_510 = arith.constant 1 : index
    %1114 = vector.load %arg2[%c0_508, %c0_509, %c1_510] : memref<4x16x10xbf16, #tpu.memory_space<vmem>>, vector<1x16x8xbf16>
    %1115 = vector.shape_cast %1114 : vector<1x16x8xbf16> to vector<16x8xbf16>
    %1116 = arith.extf %1115 : vector<16x8xbf16> to vector<16x8xf32>
    %1117 = vector.broadcast %1107 : f32 to vector<16x8xf32>
    %1118 = arith.mulf %1117, %1116 : vector<16x8xf32>
    %1119 = arith.addf %1106, %1118 : vector<16x8xf32>
    %c74 = arith.constant 74 : index
    %1120 = memref.load %arg3[%c74] : memref<96xf32, #tpu.memory_space<smem>>
    %c0_511 = arith.constant 0 : index
    %c0_512 = arith.constant 0 : index
    %c2_513 = arith.constant 2 : index
    %1121 = vector.load %arg1[%c0_511, %c0_512, %c2_513] : memref<4x16x10xbf16, #tpu.memory_space<vmem>>, vector<1x16x8xbf16>
    %1122 = vector.shape_cast %1121 : vector<1x16x8xbf16> to vector<16x8xbf16>
    %1123 = arith.extf %1122 : vector<16x8xbf16> to vector<16x8xf32>
    %1124 = vector.broadcast %1120 : f32 to vector<16x8xf32>
    %1125 = arith.mulf %1124, %1123 : vector<16x8xf32>
    %1126 = arith.addf %1113, %1125 : vector<16x8xf32>
    %c0_514 = arith.constant 0 : index
    %c0_515 = arith.constant 0 : index
    %c2_516 = arith.constant 2 : index
    %1127 = vector.load %arg2[%c0_514, %c0_515, %c2_516] : memref<4x16x10xbf16, #tpu.memory_space<vmem>>, vector<1x16x8xbf16>
    %1128 = vector.shape_cast %1127 : vector<1x16x8xbf16> to vector<16x8xbf16>
    %1129 = arith.extf %1128 : vector<16x8xbf16> to vector<16x8xf32>
    %1130 = vector.broadcast %1120 : f32 to vector<16x8xf32>
    %1131 = arith.mulf %1130, %1129 : vector<16x8xf32>
    %1132 = arith.addf %1119, %1131 : vector<16x8xf32>
    %c75 = arith.constant 75 : index
    %1133 = memref.load %arg3[%c75] : memref<96xf32, #tpu.memory_space<smem>>
    %c1_517 = arith.constant 1 : index
    %c0_518 = arith.constant 0 : index
    %c0_519 = arith.constant 0 : index
    %1134 = vector.load %arg1[%c1_517, %c0_518, %c0_519] : memref<4x16x10xbf16, #tpu.memory_space<vmem>>, vector<1x16x8xbf16>
    %1135 = vector.shape_cast %1134 : vector<1x16x8xbf16> to vector<16x8xbf16>
    %1136 = arith.extf %1135 : vector<16x8xbf16> to vector<16x8xf32>
    %1137 = vector.broadcast %1133 : f32 to vector<16x8xf32>
    %1138 = arith.mulf %1137, %1136 : vector<16x8xf32>
    %1139 = arith.addf %1126, %1138 : vector<16x8xf32>
    %c1_520 = arith.constant 1 : index
    %c0_521 = arith.constant 0 : index
    %c0_522 = arith.constant 0 : index
    %1140 = vector.load %arg2[%c1_520, %c0_521, %c0_522] : memref<4x16x10xbf16, #tpu.memory_space<vmem>>, vector<1x16x8xbf16>
    %1141 = vector.shape_cast %1140 : vector<1x16x8xbf16> to vector<16x8xbf16>
    %1142 = arith.extf %1141 : vector<16x8xbf16> to vector<16x8xf32>
    %1143 = vector.broadcast %1133 : f32 to vector<16x8xf32>
    %1144 = arith.mulf %1143, %1142 : vector<16x8xf32>
    %1145 = arith.addf %1132, %1144 : vector<16x8xf32>
    %c76 = arith.constant 76 : index
    %1146 = memref.load %arg3[%c76] : memref<96xf32, #tpu.memory_space<smem>>
    %c1_523 = arith.constant 1 : index
    %c0_524 = arith.constant 0 : index
    %c1_525 = arith.constant 1 : index
    %1147 = vector.load %arg1[%c1_523, %c0_524, %c1_525] : memref<4x16x10xbf16, #tpu.memory_space<vmem>>, vector<1x16x8xbf16>
    %1148 = vector.shape_cast %1147 : vector<1x16x8xbf16> to vector<16x8xbf16>
    %1149 = arith.extf %1148 : vector<16x8xbf16> to vector<16x8xf32>
    %1150 = vector.broadcast %1146 : f32 to vector<16x8xf32>
    %1151 = arith.mulf %1150, %1149 : vector<16x8xf32>
    %1152 = arith.addf %1139, %1151 : vector<16x8xf32>
    %c1_526 = arith.constant 1 : index
    %c0_527 = arith.constant 0 : index
    %c1_528 = arith.constant 1 : index
    %1153 = vector.load %arg2[%c1_526, %c0_527, %c1_528] : memref<4x16x10xbf16, #tpu.memory_space<vmem>>, vector<1x16x8xbf16>
    %1154 = vector.shape_cast %1153 : vector<1x16x8xbf16> to vector<16x8xbf16>
    %1155 = arith.extf %1154 : vector<16x8xbf16> to vector<16x8xf32>
    %1156 = vector.broadcast %1146 : f32 to vector<16x8xf32>
    %1157 = arith.mulf %1156, %1155 : vector<16x8xf32>
    %1158 = arith.addf %1145, %1157 : vector<16x8xf32>
    %c77 = arith.constant 77 : index
    %1159 = memref.load %arg3[%c77] : memref<96xf32, #tpu.memory_space<smem>>
    %c1_529 = arith.constant 1 : index
    %c0_530 = arith.constant 0 : index
    %c2_531 = arith.constant 2 : index
    %1160 = vector.load %arg1[%c1_529, %c0_530, %c2_531] : memref<4x16x10xbf16, #tpu.memory_space<vmem>>, vector<1x16x8xbf16>
    %1161 = vector.shape_cast %1160 : vector<1x16x8xbf16> to vector<16x8xbf16>
    %1162 = arith.extf %1161 : vector<16x8xbf16> to vector<16x8xf32>
    %1163 = vector.broadcast %1159 : f32 to vector<16x8xf32>
    %1164 = arith.mulf %1163, %1162 : vector<16x8xf32>
    %1165 = arith.addf %1152, %1164 : vector<16x8xf32>
    %c1_532 = arith.constant 1 : index
    %c0_533 = arith.constant 0 : index
    %c2_534 = arith.constant 2 : index
    %1166 = vector.load %arg2[%c1_532, %c0_533, %c2_534] : memref<4x16x10xbf16, #tpu.memory_space<vmem>>, vector<1x16x8xbf16>
    %1167 = vector.shape_cast %1166 : vector<1x16x8xbf16> to vector<16x8xbf16>
    %1168 = arith.extf %1167 : vector<16x8xbf16> to vector<16x8xf32>
    %1169 = vector.broadcast %1159 : f32 to vector<16x8xf32>
    %1170 = arith.mulf %1169, %1168 : vector<16x8xf32>
    %1171 = arith.addf %1158, %1170 : vector<16x8xf32>
    %c78 = arith.constant 78 : index
    %1172 = memref.load %arg3[%c78] : memref<96xf32, #tpu.memory_space<smem>>
    %c2_535 = arith.constant 2 : index
    %c0_536 = arith.constant 0 : index
    %c0_537 = arith.constant 0 : index
    %1173 = vector.load %arg1[%c2_535, %c0_536, %c0_537] : memref<4x16x10xbf16, #tpu.memory_space<vmem>>, vector<1x16x8xbf16>
    %1174 = vector.shape_cast %1173 : vector<1x16x8xbf16> to vector<16x8xbf16>
    %1175 = arith.extf %1174 : vector<16x8xbf16> to vector<16x8xf32>
    %1176 = vector.broadcast %1172 : f32 to vector<16x8xf32>
    %1177 = arith.mulf %1176, %1175 : vector<16x8xf32>
    %1178 = arith.addf %1165, %1177 : vector<16x8xf32>
    %c2_538 = arith.constant 2 : index
    %c0_539 = arith.constant 0 : index
    %c0_540 = arith.constant 0 : index
    %1179 = vector.load %arg2[%c2_538, %c0_539, %c0_540] : memref<4x16x10xbf16, #tpu.memory_space<vmem>>, vector<1x16x8xbf16>
    %1180 = vector.shape_cast %1179 : vector<1x16x8xbf16> to vector<16x8xbf16>
    %1181 = arith.extf %1180 : vector<16x8xbf16> to vector<16x8xf32>
    %1182 = vector.broadcast %1172 : f32 to vector<16x8xf32>
    %1183 = arith.mulf %1182, %1181 : vector<16x8xf32>
    %1184 = arith.addf %1171, %1183 : vector<16x8xf32>
    %c79 = arith.constant 79 : index
    %1185 = memref.load %arg3[%c79] : memref<96xf32, #tpu.memory_space<smem>>
    %c2_541 = arith.constant 2 : index
    %c0_542 = arith.constant 0 : index
    %c1_543 = arith.constant 1 : index
    %1186 = vector.load %arg1[%c2_541, %c0_542, %c1_543] : memref<4x16x10xbf16, #tpu.memory_space<vmem>>, vector<1x16x8xbf16>
    %1187 = vector.shape_cast %1186 : vector<1x16x8xbf16> to vector<16x8xbf16>
    %1188 = arith.extf %1187 : vector<16x8xbf16> to vector<16x8xf32>
    %1189 = vector.broadcast %1185 : f32 to vector<16x8xf32>
    %1190 = arith.mulf %1189, %1188 : vector<16x8xf32>
    %1191 = arith.addf %1178, %1190 : vector<16x8xf32>
    %c2_544 = arith.constant 2 : index
    %c0_545 = arith.constant 0 : index
    %c1_546 = arith.constant 1 : index
    %1192 = vector.load %arg2[%c2_544, %c0_545, %c1_546] : memref<4x16x10xbf16, #tpu.memory_space<vmem>>, vector<1x16x8xbf16>
    %1193 = vector.shape_cast %1192 : vector<1x16x8xbf16> to vector<16x8xbf16>
    %1194 = arith.extf %1193 : vector<16x8xbf16> to vector<16x8xf32>
    %1195 = vector.broadcast %1185 : f32 to vector<16x8xf32>
    %1196 = arith.mulf %1195, %1194 : vector<16x8xf32>
    %1197 = arith.addf %1184, %1196 : vector<16x8xf32>
    %c80 = arith.constant 80 : index
    %1198 = memref.load %arg3[%c80] : memref<96xf32, #tpu.memory_space<smem>>
    %c2_547 = arith.constant 2 : index
    %c0_548 = arith.constant 0 : index
    %c2_549 = arith.constant 2 : index
    %1199 = vector.load %arg1[%c2_547, %c0_548, %c2_549] : memref<4x16x10xbf16, #tpu.memory_space<vmem>>, vector<1x16x8xbf16>
    %1200 = vector.shape_cast %1199 : vector<1x16x8xbf16> to vector<16x8xbf16>
    %1201 = arith.extf %1200 : vector<16x8xbf16> to vector<16x8xf32>
    %1202 = vector.broadcast %1198 : f32 to vector<16x8xf32>
    %1203 = arith.mulf %1202, %1201 : vector<16x8xf32>
    %1204 = arith.addf %1191, %1203 : vector<16x8xf32>
    %c2_550 = arith.constant 2 : index
    %c0_551 = arith.constant 0 : index
    %c2_552 = arith.constant 2 : index
    %1205 = vector.load %arg2[%c2_550, %c0_551, %c2_552] : memref<4x16x10xbf16, #tpu.memory_space<vmem>>, vector<1x16x8xbf16>
    %1206 = vector.shape_cast %1205 : vector<1x16x8xbf16> to vector<16x8xbf16>
    %1207 = arith.extf %1206 : vector<16x8xbf16> to vector<16x8xf32>
    %1208 = vector.broadcast %1198 : f32 to vector<16x8xf32>
    %1209 = arith.mulf %1208, %1207 : vector<16x8xf32>
    %1210 = arith.addf %1197, %1209 : vector<16x8xf32>
    %c81 = arith.constant 81 : index
    %1211 = memref.load %arg3[%c81] : memref<96xf32, #tpu.memory_space<smem>>
    %c3_553 = arith.constant 3 : index
    %c0_554 = arith.constant 0 : index
    %c0_555 = arith.constant 0 : index
    %1212 = vector.load %arg1[%c3_553, %c0_554, %c0_555] : memref<4x16x10xbf16, #tpu.memory_space<vmem>>, vector<1x16x8xbf16>
    %1213 = vector.shape_cast %1212 : vector<1x16x8xbf16> to vector<16x8xbf16>
    %1214 = arith.extf %1213 : vector<16x8xbf16> to vector<16x8xf32>
    %1215 = vector.broadcast %1211 : f32 to vector<16x8xf32>
    %1216 = arith.mulf %1215, %1214 : vector<16x8xf32>
    %1217 = arith.addf %1204, %1216 : vector<16x8xf32>
    %c3_556 = arith.constant 3 : index
    %c0_557 = arith.constant 0 : index
    %c0_558 = arith.constant 0 : index
    %1218 = vector.load %arg2[%c3_556, %c0_557, %c0_558] : memref<4x16x10xbf16, #tpu.memory_space<vmem>>, vector<1x16x8xbf16>
    %1219 = vector.shape_cast %1218 : vector<1x16x8xbf16> to vector<16x8xbf16>
    %1220 = arith.extf %1219 : vector<16x8xbf16> to vector<16x8xf32>
    %1221 = vector.broadcast %1211 : f32 to vector<16x8xf32>
    %1222 = arith.mulf %1221, %1220 : vector<16x8xf32>
    %1223 = arith.addf %1210, %1222 : vector<16x8xf32>
    %c82 = arith.constant 82 : index
    %1224 = memref.load %arg3[%c82] : memref<96xf32, #tpu.memory_space<smem>>
    %c3_559 = arith.constant 3 : index
    %c0_560 = arith.constant 0 : index
    %c1_561 = arith.constant 1 : index
    %1225 = vector.load %arg1[%c3_559, %c0_560, %c1_561] : memref<4x16x10xbf16, #tpu.memory_space<vmem>>, vector<1x16x8xbf16>
    %1226 = vector.shape_cast %1225 : vector<1x16x8xbf16> to vector<16x8xbf16>
    %1227 = arith.extf %1226 : vector<16x8xbf16> to vector<16x8xf32>
    %1228 = vector.broadcast %1224 : f32 to vector<16x8xf32>
    %1229 = arith.mulf %1228, %1227 : vector<16x8xf32>
    %1230 = arith.addf %1217, %1229 : vector<16x8xf32>
    %c3_562 = arith.constant 3 : index
    %c0_563 = arith.constant 0 : index
    %c1_564 = arith.constant 1 : index
    %1231 = vector.load %arg2[%c3_562, %c0_563, %c1_564] : memref<4x16x10xbf16, #tpu.memory_space<vmem>>, vector<1x16x8xbf16>
    %1232 = vector.shape_cast %1231 : vector<1x16x8xbf16> to vector<16x8xbf16>
    %1233 = arith.extf %1232 : vector<16x8xbf16> to vector<16x8xf32>
    %1234 = vector.broadcast %1224 : f32 to vector<16x8xf32>
    %1235 = arith.mulf %1234, %1233 : vector<16x8xf32>
    %1236 = arith.addf %1223, %1235 : vector<16x8xf32>
    %c83 = arith.constant 83 : index
    %1237 = memref.load %arg3[%c83] : memref<96xf32, #tpu.memory_space<smem>>
    %c3_565 = arith.constant 3 : index
    %c0_566 = arith.constant 0 : index
    %c2_567 = arith.constant 2 : index
    %1238 = vector.load %arg1[%c3_565, %c0_566, %c2_567] : memref<4x16x10xbf16, #tpu.memory_space<vmem>>, vector<1x16x8xbf16>
    %1239 = vector.shape_cast %1238 : vector<1x16x8xbf16> to vector<16x8xbf16>
    %1240 = arith.extf %1239 : vector<16x8xbf16> to vector<16x8xf32>
    %1241 = vector.broadcast %1237 : f32 to vector<16x8xf32>
    %1242 = arith.mulf %1241, %1240 : vector<16x8xf32>
    %1243 = arith.addf %1230, %1242 : vector<16x8xf32>
    %c3_568 = arith.constant 3 : index
    %c0_569 = arith.constant 0 : index
    %c2_570 = arith.constant 2 : index
    %1244 = vector.load %arg2[%c3_568, %c0_569, %c2_570] : memref<4x16x10xbf16, #tpu.memory_space<vmem>>, vector<1x16x8xbf16>
    %1245 = vector.shape_cast %1244 : vector<1x16x8xbf16> to vector<16x8xbf16>
    %1246 = arith.extf %1245 : vector<16x8xbf16> to vector<16x8xf32>
    %1247 = vector.broadcast %1237 : f32 to vector<16x8xf32>
    %1248 = arith.mulf %1247, %1246 : vector<16x8xf32>
    %1249 = arith.addf %1236, %1248 : vector<16x8xf32>
    %c6_571 = arith.constant 6 : index
    %1250 = memref.load %arg4[%c6_571] : memref<8xf32, #tpu.memory_space<smem>>
    %1251 = vector.broadcast %1250 : f32 to vector<16x8xf32>
    %1252 = arith.addf %1243, %1251 : vector<16x8xf32>
    %cst_572 = arith.constant 0.000000e+00 : f32
    %1253 = vector.broadcast %cst_572 : f32 to vector<16x8xf32>
    %1254 = arith.subf %1253, %1252 : vector<16x8xf32>
    %1255 = math.exp %1254 : vector<16x8xf32>
    %cst_573 = arith.constant 1.000000e+00 : f32
    %1256 = vector.broadcast %cst_573 : f32 to vector<16x8xf32>
    %1257 = arith.addf %1256, %1255 : vector<16x8xf32>
    %1258 = tpu.reciprocal %1257 {approx = true} : vector<16x8xf32> -> vector<16x8xf32>
    %1259 = arith.mulf %1252, %1258 : vector<16x8xf32>
    %c6_574 = arith.constant 6 : index
    %1260 = memref.load %arg4[%c6_574] : memref<8xf32, #tpu.memory_space<smem>>
    %1261 = vector.broadcast %1260 : f32 to vector<16x8xf32>
    %1262 = arith.addf %1249, %1261 : vector<16x8xf32>
    %cst_575 = arith.constant 0.000000e+00 : f32
    %1263 = vector.broadcast %cst_575 : f32 to vector<16x8xf32>
    %1264 = arith.subf %1263, %1262 : vector<16x8xf32>
    %1265 = math.exp %1264 : vector<16x8xf32>
    %cst_576 = arith.constant 1.000000e+00 : f32
    %1266 = vector.broadcast %cst_576 : f32 to vector<16x8xf32>
    %1267 = arith.addf %1266, %1265 : vector<16x8xf32>
    %1268 = tpu.reciprocal %1267 {approx = true} : vector<16x8xf32> -> vector<16x8xf32>
    %1269 = arith.mulf %1262, %1268 : vector<16x8xf32>
    %1270 = arith.maximumf %1259, %1269 : vector<16x8xf32>
    %c6_577 = arith.constant 6 : index
    %c0_578 = arith.constant 0 : index
    %c0_579 = arith.constant 0 : index
    %1271 = vector.load %arg5[%c6_577, %c0_578, %c0_579] : memref<8x16x8xf32, #tpu.memory_space<vmem>>, vector<1x16x8xf32>
    %1272 = vector.shape_cast %1271 : vector<1x16x8xf32> to vector<16x8xf32>
    %1273 = vector.shape_cast %1270 : vector<16x8xf32> to vector<1x16x8xf32>
    tpu.vector_store %arg5[%c6_577, %c0_578, %c0_579], %1273 {strides = array<i32>} : memref<8x16x8xf32, #tpu.memory_space<vmem>>, vector<1x16x8xf32>,
    %cst_580 = arith.constant 0.000000e+00 : f32
    %1274 = vector.broadcast %cst_580 : f32 to vector<16x8xf32>
    %cst_581 = arith.constant 0.000000e+00 : f32
    %1275 = vector.broadcast %cst_581 : f32 to vector<16x8xf32>
    %c84 = arith.constant 84 : index
    %1276 = memref.load %arg3[%c84] : memref<96xf32, #tpu.memory_space<smem>>
    %c0_582 = arith.constant 0 : index
    %c0_583 = arith.constant 0 : index
    %c0_584 = arith.constant 0 : index
    %1277 = vector.load %arg1[%c0_582, %c0_583, %c0_584] : memref<4x16x10xbf16, #tpu.memory_space<vmem>>, vector<1x16x8xbf16>
    %1278 = vector.shape_cast %1277 : vector<1x16x8xbf16> to vector<16x8xbf16>
    %1279 = arith.extf %1278 : vector<16x8xbf16> to vector<16x8xf32>
    %1280 = vector.broadcast %1276 : f32 to vector<16x8xf32>
    %1281 = arith.mulf %1280, %1279 : vector<16x8xf32>
    %1282 = arith.addf %1274, %1281 : vector<16x8xf32>
    %c0_585 = arith.constant 0 : index
    %c0_586 = arith.constant 0 : index
    %c0_587 = arith.constant 0 : index
    %1283 = vector.load %arg2[%c0_585, %c0_586, %c0_587] : memref<4x16x10xbf16, #tpu.memory_space<vmem>>, vector<1x16x8xbf16>
    %1284 = vector.shape_cast %1283 : vector<1x16x8xbf16> to vector<16x8xbf16>
    %1285 = arith.extf %1284 : vector<16x8xbf16> to vector<16x8xf32>
    %1286 = vector.broadcast %1276 : f32 to vector<16x8xf32>
    %1287 = arith.mulf %1286, %1285 : vector<16x8xf32>
    %1288 = arith.addf %1275, %1287 : vector<16x8xf32>
    %c85 = arith.constant 85 : index
    %1289 = memref.load %arg3[%c85] : memref<96xf32, #tpu.memory_space<smem>>
    %c0_588 = arith.constant 0 : index
    %c0_589 = arith.constant 0 : index
    %c1_590 = arith.constant 1 : index
    %1290 = vector.load %arg1[%c0_588, %c0_589, %c1_590] : memref<4x16x10xbf16, #tpu.memory_space<vmem>>, vector<1x16x8xbf16>
    %1291 = vector.shape_cast %1290 : vector<1x16x8xbf16> to vector<16x8xbf16>
    %1292 = arith.extf %1291 : vector<16x8xbf16> to vector<16x8xf32>
    %1293 = vector.broadcast %1289 : f32 to vector<16x8xf32>
    %1294 = arith.mulf %1293, %1292 : vector<16x8xf32>
    %1295 = arith.addf %1282, %1294 : vector<16x8xf32>
    %c0_591 = arith.constant 0 : index
    %c0_592 = arith.constant 0 : index
    %c1_593 = arith.constant 1 : index
    %1296 = vector.load %arg2[%c0_591, %c0_592, %c1_593] : memref<4x16x10xbf16, #tpu.memory_space<vmem>>, vector<1x16x8xbf16>
    %1297 = vector.shape_cast %1296 : vector<1x16x8xbf16> to vector<16x8xbf16>
    %1298 = arith.extf %1297 : vector<16x8xbf16> to vector<16x8xf32>
    %1299 = vector.broadcast %1289 : f32 to vector<16x8xf32>
    %1300 = arith.mulf %1299, %1298 : vector<16x8xf32>
    %1301 = arith.addf %1288, %1300 : vector<16x8xf32>
    %c86 = arith.constant 86 : index
    %1302 = memref.load %arg3[%c86] : memref<96xf32, #tpu.memory_space<smem>>
    %c0_594 = arith.constant 0 : index
    %c0_595 = arith.constant 0 : index
    %c2_596 = arith.constant 2 : index
    %1303 = vector.load %arg1[%c0_594, %c0_595, %c2_596] : memref<4x16x10xbf16, #tpu.memory_space<vmem>>, vector<1x16x8xbf16>
    %1304 = vector.shape_cast %1303 : vector<1x16x8xbf16> to vector<16x8xbf16>
    %1305 = arith.extf %1304 : vector<16x8xbf16> to vector<16x8xf32>
    %1306 = vector.broadcast %1302 : f32 to vector<16x8xf32>
    %1307 = arith.mulf %1306, %1305 : vector<16x8xf32>
    %1308 = arith.addf %1295, %1307 : vector<16x8xf32>
    %c0_597 = arith.constant 0 : index
    %c0_598 = arith.constant 0 : index
    %c2_599 = arith.constant 2 : index
    %1309 = vector.load %arg2[%c0_597, %c0_598, %c2_599] : memref<4x16x10xbf16, #tpu.memory_space<vmem>>, vector<1x16x8xbf16>
    %1310 = vector.shape_cast %1309 : vector<1x16x8xbf16> to vector<16x8xbf16>
    %1311 = arith.extf %1310 : vector<16x8xbf16> to vector<16x8xf32>
    %1312 = vector.broadcast %1302 : f32 to vector<16x8xf32>
    %1313 = arith.mulf %1312, %1311 : vector<16x8xf32>
    %1314 = arith.addf %1301, %1313 : vector<16x8xf32>
    %c87 = arith.constant 87 : index
    %1315 = memref.load %arg3[%c87] : memref<96xf32, #tpu.memory_space<smem>>
    %c1_600 = arith.constant 1 : index
    %c0_601 = arith.constant 0 : index
    %c0_602 = arith.constant 0 : index
    %1316 = vector.load %arg1[%c1_600, %c0_601, %c0_602] : memref<4x16x10xbf16, #tpu.memory_space<vmem>>, vector<1x16x8xbf16>
    %1317 = vector.shape_cast %1316 : vector<1x16x8xbf16> to vector<16x8xbf16>
    %1318 = arith.extf %1317 : vector<16x8xbf16> to vector<16x8xf32>
    %1319 = vector.broadcast %1315 : f32 to vector<16x8xf32>
    %1320 = arith.mulf %1319, %1318 : vector<16x8xf32>
    %1321 = arith.addf %1308, %1320 : vector<16x8xf32>
    %c1_603 = arith.constant 1 : index
    %c0_604 = arith.constant 0 : index
    %c0_605 = arith.constant 0 : index
    %1322 = vector.load %arg2[%c1_603, %c0_604, %c0_605] : memref<4x16x10xbf16, #tpu.memory_space<vmem>>, vector<1x16x8xbf16>
    %1323 = vector.shape_cast %1322 : vector<1x16x8xbf16> to vector<16x8xbf16>
    %1324 = arith.extf %1323 : vector<16x8xbf16> to vector<16x8xf32>
    %1325 = vector.broadcast %1315 : f32 to vector<16x8xf32>
    %1326 = arith.mulf %1325, %1324 : vector<16x8xf32>
    %1327 = arith.addf %1314, %1326 : vector<16x8xf32>
    %c88 = arith.constant 88 : index
    %1328 = memref.load %arg3[%c88] : memref<96xf32, #tpu.memory_space<smem>>
    %c1_606 = arith.constant 1 : index
    %c0_607 = arith.constant 0 : index
    %c1_608 = arith.constant 1 : index
    %1329 = vector.load %arg1[%c1_606, %c0_607, %c1_608] : memref<4x16x10xbf16, #tpu.memory_space<vmem>>, vector<1x16x8xbf16>
    %1330 = vector.shape_cast %1329 : vector<1x16x8xbf16> to vector<16x8xbf16>
    %1331 = arith.extf %1330 : vector<16x8xbf16> to vector<16x8xf32>
    %1332 = vector.broadcast %1328 : f32 to vector<16x8xf32>
    %1333 = arith.mulf %1332, %1331 : vector<16x8xf32>
    %1334 = arith.addf %1321, %1333 : vector<16x8xf32>
    %c1_609 = arith.constant 1 : index
    %c0_610 = arith.constant 0 : index
    %c1_611 = arith.constant 1 : index
    %1335 = vector.load %arg2[%c1_609, %c0_610, %c1_611] : memref<4x16x10xbf16, #tpu.memory_space<vmem>>, vector<1x16x8xbf16>
    %1336 = vector.shape_cast %1335 : vector<1x16x8xbf16> to vector<16x8xbf16>
    %1337 = arith.extf %1336 : vector<16x8xbf16> to vector<16x8xf32>
    %1338 = vector.broadcast %1328 : f32 to vector<16x8xf32>
    %1339 = arith.mulf %1338, %1337 : vector<16x8xf32>
    %1340 = arith.addf %1327, %1339 : vector<16x8xf32>
    %c89 = arith.constant 89 : index
    %1341 = memref.load %arg3[%c89] : memref<96xf32, #tpu.memory_space<smem>>
    %c1_612 = arith.constant 1 : index
    %c0_613 = arith.constant 0 : index
    %c2_614 = arith.constant 2 : index
    %1342 = vector.load %arg1[%c1_612, %c0_613, %c2_614] : memref<4x16x10xbf16, #tpu.memory_space<vmem>>, vector<1x16x8xbf16>
    %1343 = vector.shape_cast %1342 : vector<1x16x8xbf16> to vector<16x8xbf16>
    %1344 = arith.extf %1343 : vector<16x8xbf16> to vector<16x8xf32>
    %1345 = vector.broadcast %1341 : f32 to vector<16x8xf32>
    %1346 = arith.mulf %1345, %1344 : vector<16x8xf32>
    %1347 = arith.addf %1334, %1346 : vector<16x8xf32>
    %c1_615 = arith.constant 1 : index
    %c0_616 = arith.constant 0 : index
    %c2_617 = arith.constant 2 : index
    %1348 = vector.load %arg2[%c1_615, %c0_616, %c2_617] : memref<4x16x10xbf16, #tpu.memory_space<vmem>>, vector<1x16x8xbf16>
    %1349 = vector.shape_cast %1348 : vector<1x16x8xbf16> to vector<16x8xbf16>
    %1350 = arith.extf %1349 : vector<16x8xbf16> to vector<16x8xf32>
    %1351 = vector.broadcast %1341 : f32 to vector<16x8xf32>
    %1352 = arith.mulf %1351, %1350 : vector<16x8xf32>
    %1353 = arith.addf %1340, %1352 : vector<16x8xf32>
    %c90 = arith.constant 90 : index
    %1354 = memref.load %arg3[%c90] : memref<96xf32, #tpu.memory_space<smem>>
    %c2_618 = arith.constant 2 : index
    %c0_619 = arith.constant 0 : index
    %c0_620 = arith.constant 0 : index
    %1355 = vector.load %arg1[%c2_618, %c0_619, %c0_620] : memref<4x16x10xbf16, #tpu.memory_space<vmem>>, vector<1x16x8xbf16>
    %1356 = vector.shape_cast %1355 : vector<1x16x8xbf16> to vector<16x8xbf16>
    %1357 = arith.extf %1356 : vector<16x8xbf16> to vector<16x8xf32>
    %1358 = vector.broadcast %1354 : f32 to vector<16x8xf32>
    %1359 = arith.mulf %1358, %1357 : vector<16x8xf32>
    %1360 = arith.addf %1347, %1359 : vector<16x8xf32>
    %c2_621 = arith.constant 2 : index
    %c0_622 = arith.constant 0 : index
    %c0_623 = arith.constant 0 : index
    %1361 = vector.load %arg2[%c2_621, %c0_622, %c0_623] : memref<4x16x10xbf16, #tpu.memory_space<vmem>>, vector<1x16x8xbf16>
    %1362 = vector.shape_cast %1361 : vector<1x16x8xbf16> to vector<16x8xbf16>
    %1363 = arith.extf %1362 : vector<16x8xbf16> to vector<16x8xf32>
    %1364 = vector.broadcast %1354 : f32 to vector<16x8xf32>
    %1365 = arith.mulf %1364, %1363 : vector<16x8xf32>
    %1366 = arith.addf %1353, %1365 : vector<16x8xf32>
    %c91 = arith.constant 91 : index
    %1367 = memref.load %arg3[%c91] : memref<96xf32, #tpu.memory_space<smem>>
    %c2_624 = arith.constant 2 : index
    %c0_625 = arith.constant 0 : index
    %c1_626 = arith.constant 1 : index
    %1368 = vector.load %arg1[%c2_624, %c0_625, %c1_626] : memref<4x16x10xbf16, #tpu.memory_space<vmem>>, vector<1x16x8xbf16>
    %1369 = vector.shape_cast %1368 : vector<1x16x8xbf16> to vector<16x8xbf16>
    %1370 = arith.extf %1369 : vector<16x8xbf16> to vector<16x8xf32>
    %1371 = vector.broadcast %1367 : f32 to vector<16x8xf32>
    %1372 = arith.mulf %1371, %1370 : vector<16x8xf32>
    %1373 = arith.addf %1360, %1372 : vector<16x8xf32>
    %c2_627 = arith.constant 2 : index
    %c0_628 = arith.constant 0 : index
    %c1_629 = arith.constant 1 : index
    %1374 = vector.load %arg2[%c2_627, %c0_628, %c1_629] : memref<4x16x10xbf16, #tpu.memory_space<vmem>>, vector<1x16x8xbf16>
    %1375 = vector.shape_cast %1374 : vector<1x16x8xbf16> to vector<16x8xbf16>
    %1376 = arith.extf %1375 : vector<16x8xbf16> to vector<16x8xf32>
    %1377 = vector.broadcast %1367 : f32 to vector<16x8xf32>
    %1378 = arith.mulf %1377, %1376 : vector<16x8xf32>
    %1379 = arith.addf %1366, %1378 : vector<16x8xf32>
    %c92 = arith.constant 92 : index
    %1380 = memref.load %arg3[%c92] : memref<96xf32, #tpu.memory_space<smem>>
    %c2_630 = arith.constant 2 : index
    %c0_631 = arith.constant 0 : index
    %c2_632 = arith.constant 2 : index
    %1381 = vector.load %arg1[%c2_630, %c0_631, %c2_632] : memref<4x16x10xbf16, #tpu.memory_space<vmem>>, vector<1x16x8xbf16>
    %1382 = vector.shape_cast %1381 : vector<1x16x8xbf16> to vector<16x8xbf16>
    %1383 = arith.extf %1382 : vector<16x8xbf16> to vector<16x8xf32>
    %1384 = vector.broadcast %1380 : f32 to vector<16x8xf32>
    %1385 = arith.mulf %1384, %1383 : vector<16x8xf32>
    %1386 = arith.addf %1373, %1385 : vector<16x8xf32>
    %c2_633 = arith.constant 2 : index
    %c0_634 = arith.constant 0 : index
    %c2_635 = arith.constant 2 : index
    %1387 = vector.load %arg2[%c2_633, %c0_634, %c2_635] : memref<4x16x10xbf16, #tpu.memory_space<vmem>>, vector<1x16x8xbf16>
    %1388 = vector.shape_cast %1387 : vector<1x16x8xbf16> to vector<16x8xbf16>
    %1389 = arith.extf %1388 : vector<16x8xbf16> to vector<16x8xf32>
    %1390 = vector.broadcast %1380 : f32 to vector<16x8xf32>
    %1391 = arith.mulf %1390, %1389 : vector<16x8xf32>
    %1392 = arith.addf %1379, %1391 : vector<16x8xf32>
    %c93 = arith.constant 93 : index
    %1393 = memref.load %arg3[%c93] : memref<96xf32, #tpu.memory_space<smem>>
    %c3_636 = arith.constant 3 : index
    %c0_637 = arith.constant 0 : index
    %c0_638 = arith.constant 0 : index
    %1394 = vector.load %arg1[%c3_636, %c0_637, %c0_638] : memref<4x16x10xbf16, #tpu.memory_space<vmem>>, vector<1x16x8xbf16>
    %1395 = vector.shape_cast %1394 : vector<1x16x8xbf16> to vector<16x8xbf16>
    %1396 = arith.extf %1395 : vector<16x8xbf16> to vector<16x8xf32>
    %1397 = vector.broadcast %1393 : f32 to vector<16x8xf32>
    %1398 = arith.mulf %1397, %1396 : vector<16x8xf32>
    %1399 = arith.addf %1386, %1398 : vector<16x8xf32>
    %c3_639 = arith.constant 3 : index
    %c0_640 = arith.constant 0 : index
    %c0_641 = arith.constant 0 : index
    %1400 = vector.load %arg2[%c3_639, %c0_640, %c0_641] : memref<4x16x10xbf16, #tpu.memory_space<vmem>>, vector<1x16x8xbf16>
    %1401 = vector.shape_cast %1400 : vector<1x16x8xbf16> to vector<16x8xbf16>
    %1402 = arith.extf %1401 : vector<16x8xbf16> to vector<16x8xf32>
    %1403 = vector.broadcast %1393 : f32 to vector<16x8xf32>
    %1404 = arith.mulf %1403, %1402 : vector<16x8xf32>
    %1405 = arith.addf %1392, %1404 : vector<16x8xf32>
    %c94 = arith.constant 94 : index
    %1406 = memref.load %arg3[%c94] : memref<96xf32, #tpu.memory_space<smem>>
    %c3_642 = arith.constant 3 : index
    %c0_643 = arith.constant 0 : index
    %c1_644 = arith.constant 1 : index
    %1407 = vector.load %arg1[%c3_642, %c0_643, %c1_644] : memref<4x16x10xbf16, #tpu.memory_space<vmem>>, vector<1x16x8xbf16>
    %1408 = vector.shape_cast %1407 : vector<1x16x8xbf16> to vector<16x8xbf16>
    %1409 = arith.extf %1408 : vector<16x8xbf16> to vector<16x8xf32>
    %1410 = vector.broadcast %1406 : f32 to vector<16x8xf32>
    %1411 = arith.mulf %1410, %1409 : vector<16x8xf32>
    %1412 = arith.addf %1399, %1411 : vector<16x8xf32>
    %c3_645 = arith.constant 3 : index
    %c0_646 = arith.constant 0 : index
    %c1_647 = arith.constant 1 : index
    %1413 = vector.load %arg2[%c3_645, %c0_646, %c1_647] : memref<4x16x10xbf16, #tpu.memory_space<vmem>>, vector<1x16x8xbf16>
    %1414 = vector.shape_cast %1413 : vector<1x16x8xbf16> to vector<16x8xbf16>
    %1415 = arith.extf %1414 : vector<16x8xbf16> to vector<16x8xf32>
    %1416 = vector.broadcast %1406 : f32 to vector<16x8xf32>
    %1417 = arith.mulf %1416, %1415 : vector<16x8xf32>
    %1418 = arith.addf %1405, %1417 : vector<16x8xf32>
    %c95 = arith.constant 95 : index
    %1419 = memref.load %arg3[%c95] : memref<96xf32, #tpu.memory_space<smem>>
    %c3_648 = arith.constant 3 : index
    %c0_649 = arith.constant 0 : index
    %c2_650 = arith.constant 2 : index
    %1420 = vector.load %arg1[%c3_648, %c0_649, %c2_650] : memref<4x16x10xbf16, #tpu.memory_space<vmem>>, vector<1x16x8xbf16>
    %1421 = vector.shape_cast %1420 : vector<1x16x8xbf16> to vector<16x8xbf16>
    %1422 = arith.extf %1421 : vector<16x8xbf16> to vector<16x8xf32>
    %1423 = vector.broadcast %1419 : f32 to vector<16x8xf32>
    %1424 = arith.mulf %1423, %1422 : vector<16x8xf32>
    %1425 = arith.addf %1412, %1424 : vector<16x8xf32>
    %c3_651 = arith.constant 3 : index
    %c0_652 = arith.constant 0 : index
    %c2_653 = arith.constant 2 : index
    %1426 = vector.load %arg2[%c3_651, %c0_652, %c2_653] : memref<4x16x10xbf16, #tpu.memory_space<vmem>>, vector<1x16x8xbf16>
    %1427 = vector.shape_cast %1426 : vector<1x16x8xbf16> to vector<16x8xbf16>
    %1428 = arith.extf %1427 : vector<16x8xbf16> to vector<16x8xf32>
    %1429 = vector.broadcast %1419 : f32 to vector<16x8xf32>
    %1430 = arith.mulf %1429, %1428 : vector<16x8xf32>
    %1431 = arith.addf %1418, %1430 : vector<16x8xf32>
    %c7_654 = arith.constant 7 : index
    %1432 = memref.load %arg4[%c7_654] : memref<8xf32, #tpu.memory_space<smem>>
    %1433 = vector.broadcast %1432 : f32 to vector<16x8xf32>
    %1434 = arith.addf %1425, %1433 : vector<16x8xf32>
    %cst_655 = arith.constant 0.000000e+00 : f32
    %1435 = vector.broadcast %cst_655 : f32 to vector<16x8xf32>
    %1436 = arith.subf %1435, %1434 : vector<16x8xf32>
    %1437 = math.exp %1436 : vector<16x8xf32>
    %cst_656 = arith.constant 1.000000e+00 : f32
    %1438 = vector.broadcast %cst_656 : f32 to vector<16x8xf32>
    %1439 = arith.addf %1438, %1437 : vector<16x8xf32>
    %1440 = tpu.reciprocal %1439 {approx = true} : vector<16x8xf32> -> vector<16x8xf32>
    %1441 = arith.mulf %1434, %1440 : vector<16x8xf32>
    %c7_657 = arith.constant 7 : index
    %1442 = memref.load %arg4[%c7_657] : memref<8xf32, #tpu.memory_space<smem>>
    %1443 = vector.broadcast %1442 : f32 to vector<16x8xf32>
    %1444 = arith.addf %1431, %1443 : vector<16x8xf32>
    %cst_658 = arith.constant 0.000000e+00 : f32
    %1445 = vector.broadcast %cst_658 : f32 to vector<16x8xf32>
    %1446 = arith.subf %1445, %1444 : vector<16x8xf32>
    %1447 = math.exp %1446 : vector<16x8xf32>
    %cst_659 = arith.constant 1.000000e+00 : f32
    %1448 = vector.broadcast %cst_659 : f32 to vector<16x8xf32>
    %1449 = arith.addf %1448, %1447 : vector<16x8xf32>
    %1450 = tpu.reciprocal %1449 {approx = true} : vector<16x8xf32> -> vector<16x8xf32>
    %1451 = arith.mulf %1444, %1450 : vector<16x8xf32>
    %1452 = arith.maximumf %1441, %1451 : vector<16x8xf32>
    %c7_660 = arith.constant 7 : index
    %c0_661 = arith.constant 0 : index
    %c0_662 = arith.constant 0 : index
    %1453 = vector.load %arg5[%c7_660, %c0_661, %c0_662] : memref<8x16x8xf32, #tpu.memory_space<vmem>>, vector<1x16x8xf32>
    %1454 = vector.shape_cast %1453 : vector<1x16x8xf32> to vector<16x8xf32>
    %1455 = vector.shape_cast %1452 : vector<16x8xf32> to vector<1x16x8xf32>
    tpu.vector_store %arg5[%c7_660, %c0_661, %c0_662], %1455 {strides = array<i32>} : memref<8x16x8xf32, #tpu.memory_space<vmem>>, vector<1x16x8xf32>,
    return
  }
  func.func @transform_0(%arg0: i32) -> (i32, i32, i32) {
    %c0_i32 = arith.constant 0 : i32
    %c0_i32_0 = arith.constant 0 : i32
    %c0_i32_1 = arith.constant 0 : i32
    return %c0_i32, %arg0, %c0_i32_0 : i32, i32, i32
  }
  func.func @transform_1(%arg0: i32) -> (i32, i32, i32) {
    %c0_i32 = arith.constant 0 : i32
    %c0_i32_0 = arith.constant 0 : i32
    %c0_i32_1 = arith.constant 0 : i32
    return %c0_i32, %arg0, %c0_i32_0 : i32, i32, i32
  }
  func.func @transform_2(%arg0: i32) -> i32 {
    %c0_i32 = arith.constant 0 : i32
    %c0_i32_0 = arith.constant 0 : i32
    return %c0_i32 : i32
  }
  func.func @transform_3(%arg0: i32) -> i32 {
    %c0_i32 = arith.constant 0 : i32
    %c0_i32_0 = arith.constant 0 : i32
    return %c0_i32 : i32
  }
  func.func @transform_4(%arg0: i32) -> (i32, i32, i32) {
    %c0_i32 = arith.constant 0 : i32
    %c0_i32_0 = arith.constant 0 : i32
    %c0_i32_1 = arith.constant 0 : i32
    return %c0_i32, %arg0, %c0_i32_0 : i32, i32, i32
  }
}

</mosaic_0001>

<bundles_post_ra>
// kernel: tpu_custom_call.1
= control target key start
LH: loop header
LB: loop body
LE: loop exit
PB: predicated region body
PF: predicated region fallthrough
CT: control target
= control target key end

     0   :  { %9 = vsyncpa [#allocation3], 0  ;;  %s4616_s0 = inlined_call_operand.vmem [shape: bf16[4,16,10], index: 0, kind: input, shape index: {}]   ;;  %s4617_s1 = inlined_call_operand.vmem [shape: bf16[4,16,10], index: 1, kind: input, shape index: {}]   ;;  %s4618_s2 = inlined_call_operand.vmem [shape: f32[96], index: 2, kind: input, shape index: {}]   ;;  %s4619_s3 = inlined_call_operand.vmem [shape: f32[8], index: 3, kind: input, shape index: {}]   ;;  %s4620_s4 = inlined_call_operand.vmem [shape: f32[8,16,8], index: 4, kind: output, shape index: {}]  }
   0x1   :  { %s20_s17 = sshll.u32 %s4618_s2, 4  ;;  %s21_s17 = int_to_ptr.vmem [resolvable:$true] %s20_s17 }
   0x2   :  { %10 = vsyncpa [#allocation5], 0  ;;  %s29_s20 = sshll.u32 %s4619_s3, 4  ;;  %s3250_s21 = smov [#allocation2]   ;;  %s30_s20 = int_to_ptr.vmem [resolvable:$true] %s29_s20 }
   0x3   :  { %23 = dma.vmem_to_smem %s21_s17, 16, %s3250_s21, [#allocation3]  }
   0x4   :  { %s3251_s22 = smov [#allocation4]  }
   0x5   :  { %32 = dma.vmem_to_smem %s30_s20, 16, %s3251_s22, [#allocation5]  }
   0x6   :  { %3246 = dma.done.wait [#allocation3], 16  }
   0x7   :  { %3247 = vsyncadd [#allocation3], 4294967280 }
   0x8   :  { %3248 = dma.done.wait [#allocation5], 16  }
   0x9   :  { %3249 = vsyncadd [#allocation5], 4294967280 }
   0xa   :  { %41 = sfence }
   0xb   :  { %v2791_v0 = vld [vmem:[%s4617_s1] sm:$0xff]   ;;  %s2574_s2 = sld [smem:[#allocation2 + $0x1]]  ;;  %s3252_s27 = smov 127   ;;  %v3042_v14 = vld [vmem:[%s4616_s0 + $0x8] sm:$0xff]   ;;  %v3044_v30 = vld [vmem:[%s4616_s0 + $0x10] sm:$0xff]   ;;  %vm360_vm0 = vcmask 64512  }
   0xc   :  { %v2787_v1 = vld [vmem:[%s4616_s0] sm:$0xff]   ;;  %s2575_s3 = sld [smem:[#allocation2 + $0x2]]  ;;  %v3291_v2 = vunpack.c.l.bf16 %v2791_v0  ;;  %v3297_v8 = vunpack.c.h.bf16 %v2791_v0  ;;  %s3253_s28 = smov 126   ;;  %v3314_v15 = vunpack.c.l.bf16 %v3042_v14  ;;  %v3043_v18 = vld [vmem:[%s4617_s1 + $0x8] sm:$0xff]   ;;  %v3326_v22 = vunpack.c.h.bf16 %v3042_v14  ;;  %v3045_v37 = vld [vmem:[%s4617_s1 + $0x10] sm:$0xff]  }
   0xd   :  { %v3293_v3 = vunpack.c.l.bf16 %v2787_v1  ;;  %v3300_v9 = vunpack.c.h.bf16 %v2787_v1  ;;  %s2581_s29 = sld [smem:[#allocation2 + $0x4]]  ;;  %v3324_v21 = vunpack.c.l.bf16 %v3043_v18  ;;  %v3331_v25 = vunpack.c.h.bf16 %v3043_v18  ;;  %v3046_v47 = vld [vmem:[%s4616_s0 + $0x18] sm:$0xff]  }
   0xe   :  { %s2582_s8 = sld [smem:[#allocation2 + $0x5]]  ;;  %v3345_v32 = vunpack.c.l.bf16 %v3044_v30  ;;  %v3350_v36 = vunpack.c.h.bf16 %v3044_v30  ;;  %v3358_v39 = vunpack.c.h.bf16 %v3045_v37  ;;  %v3360_v40 = vunpack.c.l.bf16 %v3045_v37  ;;  %v3047_v52 = vld [vmem:[%s4617_s1 + $0x18] sm:$0xff]  }
   0xf   :  { %s2588_s9 = sld [smem:[#allocation2 + $0x7]]  ;;  %v3377_v49 = vunpack.c.h.bf16 %v3046_v47  ;;  %v3379_v50 = vunpack.c.l.bf16 %v3046_v47  ;;  %v3387_v55 = vunpack.c.l.bf16 %v3047_v52  ;;  %v3392_v57 = vunpack.c.h.bf16 %v3047_v52 }
  0x10   :  { %s2589_s14 = sld [smem:[#allocation2 + $0x8]] }
  0x11   :  { %v61_v4 = vstv %s2574_s2  ;;  %s2595_s15 = sld [smem:[#allocation2 + $0xa]] }
  0x12   :  { %v74_v5 = vmul.f32 %v3291_v2, %v61_v4  ;;  %v62_v6 = vmul.f32 %v3293_v3, %v61_v4  ;;  %v87_v7 = vstv %s2575_s3  ;;  %v75_v11 = vmul.f32 %v3297_v8, %v61_v4  ;;  %s2596_s18 = sld [smem:[#allocation2 + $0xb]] }
  0x13   :  { %v88_v10 = vmul.f32 %v3293_v3, %v87_v7  ;;  %v63_v12 = vmul.f32 %v3300_v9, %v61_v4  ;;  %v89_v13 = vmul.f32 %v3300_v9, %v87_v7  ;;  %v101_v16 = vmul.f32 %v3297_v8, %v87_v7  ;;  %s2598_s21 = sld [smem:[#allocation2 + $0xd]] }
  0x14   :  { %78 = vrot.lane.b32.xlu1 %v74_v5, %s3252_s27  ;;  %66 = vrot.lane.b32.xlu0 %v62_v6, %s3252_s27  ;;  %v100_v17 = vmul.f32 %v3291_v2, %v87_v7  ;;  %v133_v19 = vstv %s2581_s29  ;;  %v159_v27 = vstv %s2582_s8  ;;  %s2599_s22 = sld [smem:[#allocation2 + $0xe]] }
  0x15   :  { %92 = vrot.lane.b32.xlu2 %v88_v10, %s3253_s28  ;;  %v134_v20 = vmul.f32 %v3314_v15, %v133_v19  ;;  %v146_v23 = vmul.f32 %v3324_v21, %v133_v19  ;;  %v135_v24 = vmul.f32 %v3326_v22, %v133_v19  ;;  %v147_v26 = vmul.f32 %v3331_v25, %v133_v19  ;;  %s2605_s23 = sld [smem:[#allocation2 + $0x10]] }
  0x16   :  { %v161_v28 = vmul.f32 %v3326_v22, %v159_v27  ;;  %v160_v29 = vmul.f32 %v3314_v15, %v159_v27  ;;  %v172_v31 = vmul.f32 %v3324_v21, %v159_v27  ;;  %v205_v33 = vstv %s2588_s9  ;;  %s2606_s24 = sld [smem:[#allocation2 + $0x11]] }
  0x17   :  { %v206_v34 = vmul.f32 %v3345_v32, %v205_v33  ;;  %v173_v35 = vmul.f32 %v3331_v25, %v159_v27  ;;  %v207_v38 = vmul.f32 %v3350_v36, %v205_v33  ;;  %v219_v41 = vmul.f32 %v3358_v39, %v205_v33  ;;  %s2612_s2 = sld [smem:[#allocation2 + $0x13]] }
  0x18   :  { %v218_v42 = vmul.f32 %v3360_v40, %v205_v33  ;;  %v231_v43 = vstv %s2589_s14  ;;  %v277_v51 = vstv %s2595_s15  ;;  %v303_v58 = vstv %s2596_s18  ;;  %s2613_s25 = sld [smem:[#allocation2 + $0x14]] }
  0x19   :  { %v232_v44 = vmul.f32 %v3345_v32, %v231_v43  ;;  %v244_v45 = vmul.f32 %v3360_v40, %v231_v43  ;;  %v233_v46 = vmul.f32 %v3350_v36, %v231_v43  ;;  %v245_v48 = vmul.f32 %v3358_v39, %v231_v43  ;;  %s2619_s26 = sld [smem:[#allocation2 + $0x16]] }
  0x1a   :  { %v279_v53 = vmul.f32 %v3377_v49, %v277_v51  ;;  %v278_v54 = vmul.f32 %v3379_v50, %v277_v51  ;;  %v290_v56 = vmul.f32 %v3387_v55, %v277_v51  ;;  %v304_v59 = vmul.f32 %v3379_v50, %v303_v58  ;;  %s42_s3 = sld [smem:[#allocation2]] }
  0x1b   :  { %v291_v60 = vmul.f32 %v3392_v57, %v277_v51  ;;  %v305_v61 = vmul.f32 %v3377_v49, %v303_v58  ;;  %v317_v62 = vmul.f32 %v3392_v57, %v303_v58  ;;  %v316_v63 = vmul.f32 %v3387_v55, %v303_v58  ;;  %s2620_s29 = sld [smem:[#allocation2 + $0x17]] }
  0x1c   :  { %80 = vrot.lane.b32.xlu1 %v75_v11, %s3252_s27  ;;  %68 = vrot.lane.b32.xlu0 %v63_v12, %s3252_s27  ;;  %v382_v0 = vstv %s2598_s21  ;;  %v408_v7 = vstv %s2599_s22  ;;  %s2576_s30 = sld [smem:[#allocation2 + $0x3]] }
  0x1d   :  { %94 = vrot.lane.b32.xlu2 %v89_v13, %s3253_s28  ;;  %v383_v1 = vmul.f32 %v3293_v3, %v382_v0  ;;  %v395_v4 = vmul.f32 %v3291_v2, %v382_v0  ;;  %v384_v5 = vmul.f32 %v3300_v9, %v382_v0  ;;  %v396_v6 = vmul.f32 %v3297_v8, %v382_v0  ;;  %s2625_s5 = sld [smem:[#allocation2 + $0x19]] }
  0x1e   :  { %v410_v10 = vmul.f32 %v3300_v9, %v408_v7  ;;  %v409_v11 = vmul.f32 %v3293_v3, %v408_v7  ;;  %v421_v13 = vmul.f32 %v3291_v2, %v408_v7  ;;  %v452_v14 = vstv %s2605_s23  ;;  %s2583_s6 = sld [smem:[#allocation2 + $0x6]] }
  0x1f   :  { %v454_v19 = vmul.f32 %v3326_v22, %v452_v14  ;;  %s2590_s7 = sld [smem:[#allocation2 + $0x9]] }
  0x20   :  { %s2626_s8 = sld [smem:[#allocation2 + $0x1a]] }
  0x21   :  { %s328_s9 = sld [smem:[#allocation4]] }
  0x22   :  { %s2632_s10 = sld [smem:[#allocation2 + $0x1c]] }
  0x23   :  { %s2633_s11 = sld [smem:[#allocation2 + $0x1d]] }
  0x24   :  { %106 = vrot.lane.b32.xlu1 %v101_v16, %s3253_s28  ;;  %104 = vrot.lane.b32.xlu0 %v100_v17, %s3253_s28  ;;  %v453_v16 = vmul.f32 %v3314_v15, %v452_v14  ;;  %v422_v17 = vmul.f32 %v3297_v8, %v408_v7  ;;  %s2639_s12 = sld [smem:[#allocation2 + $0x1f]] }
  0x25   :  { %138 = vrot.lane.b32.xlu2 %v134_v20, %s3252_s27  ;;  %v466_v20 = vmul.f32 %v3331_v25, %v452_v14  ;;  %s2640_s13 = sld [smem:[#allocation2 + $0x20]] }
  0x26   :  { %s2646_s14 = sld [smem:[#allocation2 + $0x22]] }
  0x27   :  { %s2597_s19 = sld [smem:[#allocation2 + $0xc]] }
  0x28   :  { %s2647_s20 = sld [smem:[#allocation2 + $0x23]] }
  0x29   :  { %s2600_s21 = sld [smem:[#allocation2 + $0xf]] }
  0x2a   :  { %s2652_s22 = sld [smem:[#allocation2 + $0x25]] }
  0x2b   :  { %s2607_s23 = sld [smem:[#allocation2 + $0x12]] }
  0x2c   :  { %150 = vrot.lane.b32.xlu1 %v146_v23, %s3252_s27  ;;  %140 = vrot.lane.b32.xlu0 %v135_v24, %s3252_s27  ;;  %v465_v23 = vmul.f32 %v3324_v21, %v452_v14  ;;  %v618_v14 = vstv %s2620_s29  ;;  %s2614_s29 = sld [smem:[#allocation2 + $0x15]] }
  0x2d   :  { %152 = vrot.lane.b32.xlu2 %v147_v26, %s3252_s27  ;;  %v478_v26 = vstv %s2606_s24  ;;  %s2667_s16 = sld [smem:[#allocation2 + $0x2c]] }
  0x2e   :  { %v479_v27 = vmul.f32 %v3314_v15, %v478_v26  ;;  %v491_v30 = vmul.f32 %v3324_v21, %v478_v26  ;;  %s2651_s17 = sld [smem:[#allocation2 + $0x24]] }
  0x2f   :  { %s2701_s18 = sld [smem:[#allocation2 + $0x3b]] }
  0x30   :  { %s2675_s24 = sld [smem:[#allocation4 + $0x3]] }
  0x31   :  { %s2734_s15 = sld [smem:[#allocation2 + $0x4a]] }
  0x34   :  { %166 = vrot.lane.b32.xlu1 %v161_v28, %s3253_s28  ;;  %164 = vrot.lane.b32.xlu0 %v160_v29, %s3253_s28 }
  0x35   :  { %176 = vrot.lane.b32.xlu2 %v172_v31, %s3253_s28  ;;  %v480_v31 = vmul.f32 %v3326_v22, %v478_v26 }
  0x3c   :  { %210 = vrot.lane.b32.xlu1 %v206_v34, %s3252_s27  ;;  %178 = vrot.lane.b32.xlu0 %v173_v35, %s3253_s28  ;;  %v492_v34 = vmul.f32 %v3331_v25, %v478_v26  ;;  %v522_v35 = vstv %s2612_s2  ;;  %s2627_s2 = sld [smem:[#allocation2 + $0x1b]] }
  0x3d   :  { %212 = vrot.lane.b32.xlu2 %v207_v38, %s3252_s27  ;;  %v536_v51 = vmul.f32 %v3358_v39, %v522_v35 }
  0x44   :  { %224 = vrot.lane.b32.xlu1 %v219_v41, %s3252_s27  ;;  %222 = vrot.lane.b32.xlu0 %v218_v42, %s3252_s27  ;;  %v524_v41 = vmul.f32 %v3350_v36, %v522_v35  ;;  %v523_v42 = vmul.f32 %v3345_v32, %v522_v35 }
  0x45   :  { %236 = vrot.lane.b32.xlu2 %v232_v44, %s3253_s28  ;;  %v535_v44 = vmul.f32 %v3360_v40, %v522_v35 }
  0x4c   :  { %248 = vrot.lane.b32.xlu1 %v244_v45, %s3253_s28  ;;  %238 = vrot.lane.b32.xlu0 %v233_v46, %s3253_s28  ;;  %v548_v45 = vstv %s2613_s25  ;;  %s2653_s25 = sld [smem:[#allocation2 + $0x26]] }
  0x4d   :  { %250 = vrot.lane.b32.xlu2 %v245_v48, %s3253_s28  ;;  %v549_v48 = vmul.f32 %v3345_v32, %v548_v45  ;;  %v562_v58 = vmul.f32 %v3358_v39, %v548_v45 }
  0x54   :  { %284 = vrot.lane.b32.xlu1 %v279_v53, %s3252_s27  ;;  %282 = vrot.lane.b32.xlu0 %v278_v54, %s3252_s27  ;;  %v550_v53 = vmul.f32 %v3350_v36, %v548_v45 }
  0x55   :  { %294 = vrot.lane.b32.xlu2 %v290_v56, %s3252_s27 }
  0x5c   :  { %308 = vrot.lane.b32.xlu1 %v304_v59, %s3253_s28  ;;  %296 = vrot.lane.b32.xlu0 %v291_v60, %s3252_s27  ;;  %v561_v59 = vmul.f32 %v3360_v40, %v548_v45  ;;  %v190_v45 = vstv %s2583_s6  ;;  %s2680_s6 = sld [smem:[#allocation2 + $0x32]] }
  0x5d   :  { %310 = vrot.lane.b32.xlu2 %v305_v61, %s3253_s28  ;;  %v592_v61 = vstv %s2619_s26  ;;  %s2720_s26 = sld [smem:[#allocation2 + $0x43]] }
  0x64   :  { %322 = vrot.lane.b32.xlu1 %v317_v62, %s3253_s28  ;;  %320 = vrot.lane.b32.xlu0 %v316_v63, %s3253_s28  ;;  %v593_v62 = vmul.f32 %v3379_v50, %v592_v61  ;;  %v47_v63 = vstv %s42_s3  ;;  %s2721_s3 = sld [smem:[#allocation2 + $0x44]] }
  0x65   :  { %387 = vrot.lane.b32.xlu2 %v383_v1, %s3252_s27 }
  0x6c   :  { %399 = vrot.lane.b32.xlu1 %v395_v4, %s3252_s27  ;;  %389 = vrot.lane.b32.xlu0 %v384_v5, %s3252_s27  ;;  %v49_v4 = vmul.f32 %v3300_v9, %v47_v63  ;;  %v605_v5 = vmul.f32 %v3387_v55, %v592_v61 }
  0x6d   :  { %401 = vrot.lane.b32.xlu2 %v396_v6, %s3252_s27  ;;  %v594_v6 = vmul.f32 %v3377_v49, %v592_v61 }
  0x6f   :  { %v3415_v12 = vpop.permute.xlu2 %92 }
  0x74   :  { %415 = vrot.lane.b32.xlu1 %v410_v10, %s3253_s28  ;;  %413 = vrot.lane.b32.xlu0 %v409_v11, %s3253_s28  ;;  %v606_v10 = vmul.f32 %v3392_v57, %v592_v61  ;;  %v48_v11 = vmul.f32 %v3293_v3, %v47_v63 }
  0x75   :  { %425 = vrot.lane.b32.xlu2 %v421_v13, %s3253_s28 }
  0x77   :  { %v3423_v18 = vpop.permute.xlu2 %94 }
  0x7c   :  { %457 = vrot.lane.b32.xlu1 %v453_v16, %s3252_s27  ;;  %427 = vrot.lane.b32.xlu0 %v422_v17, %s3253_s28  ;;  %v118_v16 = vstv %s2576_s30  ;;  %s2621_s30 = sld [smem:[#allocation4 + $0x1]] }
  0x7d   :  { %459 = vrot.lane.b32.xlu2 %v454_v19, %s3252_s27  ;;  %v120_v26 = vmul.f32 %v3326_v22, %v118_v16 }
  0x7f   :  { %v3431_v24 = vpop.permute.xlu2 %138 }
  0x84   :  { %471 = vrot.lane.b32.xlu1 %v466_v20, %s3252_s27  ;;  %469 = vrot.lane.b32.xlu0 %v465_v23, %s3252_s27 }
  0x85   :  { %483 = vrot.lane.b32.xlu2 %v479_v27, %s3253_s28  ;;  %v620_v27 = vmul.f32 %v3377_v49, %v618_v14 }
  0x86   :  { %v3436_v28 = vpop.permute.xlu1 %78  ;;  %v3438_v29 = vpop.permute.xlu0 %66 }
  0x87   :  { %v3443_v33 = vpop.permute.xlu2 %152  ;;  %v72_v20 = vadd.f32 %v3438_v29, %v48_v11  ;;  %v56_v29 = vmul.f32 %v3291_v2, %v47_v63 }
  0x89   :  { %v98_v35 = vadd.f32 %v3415_v12, %v72_v20  ;;  %v84_v61 = vadd.f32 %v3436_v28, %v56_v29 }
  0x8c   :  { %495 = vrot.lane.b32.xlu1 %v491_v30, %s3253_s28  ;;  %485 = vrot.lane.b32.xlu0 %v480_v31, %s3253_s28  ;;  %v619_v30 = vmul.f32 %v3379_v50, %v618_v14 }
  0x8d   :  { %497 = vrot.lane.b32.xlu2 %v492_v34, %s3253_s28  ;;  %v631_v34 = vmul.f32 %v3387_v55, %v618_v14 }
  0x8e   :  { %v3448_v37 = vpop.permute.xlu1 %80  ;;  %v69_v38 = vpop.permute.xlu0 %68 }
  0x8f   :  { %v3453_v43 = vpop.permute.xlu2 %176  ;;  %v73_v13 = vadd.f32 %v69_v38, %v49_v4  ;;  %v119_v38 = vmul.f32 %v3314_v15, %v118_v16 }
  0x91   :  { %v99_v23 = vadd.f32 %v3423_v18, %v73_v13  ;;  %v121_v12 = vadd.f32 %v119_v38, %v98_v35  ;;  %v191_v13 = vmul.f32 %v3345_v32, %v190_v45  ;;  %v723_v38 = vstv %s2626_s8  ;;  %s2686_s8 = sld [smem:[#allocation2 + $0x34]] }
  0x94   :  { %529 = vrot.lane.b32.xlu1 %v524_v41, %s3252_s27  ;;  %527 = vrot.lane.b32.xlu0 %v523_v42, %s3252_s27  ;;  %v57_v41 = vmul.f32 %v3297_v8, %v47_v63  ;;  %v122_v42 = vadd.f32 %v120_v26, %v99_v23  ;;  %v262_v26 = vstv %s2590_s7  ;;  %s2648_s7 = sld [smem:[#allocation4 + $0x2]] }
  0x95   :  { %539 = vrot.lane.b32.xlu2 %v535_v44, %s3252_s27  ;;  %v697_v44 = vstv %s2625_s5  ;;  %v264_v35 = vmul.f32 %v3377_v49, %v262_v26  ;;  %s2659_s5 = sld [smem:[#allocation2 + $0x28]] }
  0x96   :  { %v3458_v46 = vpop.permute.xlu1 %106  ;;  %v3460_v47 = vpop.permute.xlu0 %104 }
  0x97   :  { %v3465_v52 = vpop.permute.xlu2 %212  ;;  %v110_v4 = vadd.f32 %v3460_v47, %v84_v61  ;;  %v736_v61 = vmul.f32 %v3291_v2, %v723_v38 }
  0x9c   :  { %553 = vrot.lane.b32.xlu1 %v549_v48, %s3253_s28  ;;  %541 = vrot.lane.b32.xlu0 %v536_v51, %s3252_s27 }
  0x9d   :  { %555 = vrot.lane.b32.xlu2 %v550_v53, %s3253_s28  ;;  %v85_v53 = vadd.f32 %v3448_v37, %v57_v41  ;;  %v144_v37 = vadd.f32 %v3431_v24, %v121_v12  ;;  %v724_v41 = vmul.f32 %v3293_v3, %v723_v38 }
  0x9e   :  { %v3470_v54 = vpop.permute.xlu1 %150  ;;  %v141_v56 = vpop.permute.xlu0 %140 }
  0x9f   :  { %v3475_v60 = vpop.permute.xlu2 %236  ;;  %v145_v18 = vadd.f32 %v141_v56, %v122_v42  ;;  %v632_v56 = vmul.f32 %v3392_v57, %v618_v14 }
  0xa4   :  { %567 = vrot.lane.b32.xlu1 %v562_v58, %s3253_s28  ;;  %565 = vrot.lane.b32.xlu0 %v561_v59, %s3253_s28  ;;  %v192_v59 = vmul.f32 %v3350_v36, %v190_v45 }
  0xa5   :  { %597 = vrot.lane.b32.xlu2 %v593_v62, %s3252_s27  ;;  %v698_v62 = vmul.f32 %v3293_v3, %v697_v44 }
  0xa6   :  { %v167_v0 = vpop.permute.xlu1 %166  ;;  %v165_v1 = vpop.permute.xlu0 %164 }
  0xa7   :  { %v3484_v7 = vpop.permute.xlu2 %250  ;;  %v171_v58 = vadd.f32 %v167_v0, %v145_v18  ;;  %v111_v0 = vadd.f32 %v3458_v46, %v85_v53  ;;  %v170_v11 = vadd.f32 %v165_v1, %v144_v37 }
  0xa9   :  { %v194_v28 = vadd.f32 %v192_v59, %v171_v58  ;;  %v193_v1 = vadd.f32 %v191_v13, %v170_v11  ;;  %v263_v59 = vmul.f32 %v3379_v50, %v262_v26  ;;  %v767_v13 = vstv %s2632_s10  ;;  %s2660_s10 = sld [smem:[#allocation2 + $0x29]] }
  0xab   :  { %v217_v24 = vadd.f32 %v3465_v52, %v194_v28 }
  0xac   :  { %609 = vrot.lane.b32.xlu1 %v605_v5, %s3252_s27  ;;  %599 = vrot.lane.b32.xlu0 %v594_v6, %s3252_s27  ;;  %v128_v5 = vmul.f32 %v3324_v21, %v118_v16  ;;  %v699_v6 = vmul.f32 %v3300_v9, %v697_v44 }
  0xad   :  { %611 = vrot.lane.b32.xlu2 %v606_v10, %s3252_s27  ;;  %v129_v10 = vmul.f32 %v3331_v25, %v118_v16  ;;  %v711_v16 = vmul.f32 %v3297_v8, %v697_v44 }
  0xae   :  { %v211_v17 = vpop.permute.xlu1 %210  ;;  %v3490_v19 = vpop.permute.xlu0 %178  ;;  %v130_v14 = vadd.f32 %v128_v5, %v110_v4  ;;  %v329_v4 = vstv %s328_s9  ;;  %v737_v5 = vmul.f32 %v3297_v8, %v723_v38  ;;  %s2687_s9 = sld [smem:[#allocation2 + $0x35]] }
  0xaf   :  { %v3498_v31 = vpop.permute.xlu2 %294  ;;  %v131_v23 = vadd.f32 %v129_v10, %v111_v0  ;;  %v216_v52 = vadd.f32 %v211_v17, %v193_v1  ;;  %v272_v0 = vmul.f32 %v3387_v55, %v262_v26  ;;  %v780_v1 = vmul.f32 %v3324_v21, %v767_v13 }
  0xb0   :  { %v156_v46 = vadd.f32 %v3470_v54, %v130_v14  ;;  %v200_v54 = vmul.f32 %v3360_v40, %v190_v45 }
  0xb1   :  { %v157_v42 = vadd.f32 %v3443_v33, %v131_v23  ;;  %v242_v33 = vadd.f32 %v3475_v60, %v216_v52  ;;  %v769_v23 = vmul.f32 %v3326_v22, %v767_v13 }
  0xb2   :  { %v182_v29 = vadd.f32 %v3453_v43, %v156_v46 }
  0xb3   :  { %v183_v18 = vadd.f32 %v3490_v19, %v157_v42  ;;  %v265_v60 = vadd.f32 %v263_v59, %v242_v33 }
  0xb4   :  { %625 = vrot.lane.b32.xlu1 %v620_v27, %s3253_s28  ;;  %623 = vrot.lane.b32.xlu0 %v619_v30, %s3253_s28  ;;  %v710_v27 = vmul.f32 %v3291_v2, %v697_v44  ;;  %v201_v44 = vmul.f32 %v3358_v39, %v190_v45 }
  0xb5   :  { %635 = vrot.lane.b32.xlu2 %v631_v34, %s3253_s28 }
  0xb6   :  { %v3507_v48 = vpop.permute.xlu1 %224  ;;  %v3509_v51 = vpop.permute.xlu0 %222  ;;  %v203_v19 = vadd.f32 %v201_v44, %v183_v18 }
  0xb7   :  { %v311_v63 = vpop.permute.xlu2 %310 }
  0xbc   :  { %702 = vrot.lane.b32.xlu1 %v698_v62, %s3252_s27  ;;  %637 = vrot.lane.b32.xlu0 %v632_v56, %s3253_s28  ;;  %v725_v62 = vmul.f32 %v3300_v9, %v723_v38  ;;  %v202_v56 = vadd.f32 %v200_v54, %v182_v29 }
  0xbd   :  { %704 = vrot.lane.b32.xlu2 %v699_v6, %s3252_s27  ;;  %v229_v6 = vadd.f32 %v3507_v48, %v203_v19 }
  0xbe   :  { %v249_v47 = vpop.permute.xlu1 %248  ;;  %v239_v20 = vpop.permute.xlu0 %238  ;;  %v228_v37 = vadd.f32 %v3509_v51, %v202_v56 }
  0xbf   :  { %v3531_v30 = vpop.permute.xlu2 %387  ;;  %v243_v34 = vadd.f32 %v239_v20, %v217_v24  ;;  %v255_v48 = vadd.f32 %v3484_v7, %v229_v6  ;;  %v273_v20 = vmul.f32 %v3392_v57, %v262_v26  ;;  %v768_v24 = vmul.f32 %v3314_v15, %v767_v13 }
  0xc0   :  { %v254_v10 = vadd.f32 %v249_v47, %v228_v37 }
  0xc1   :  { %v266_v12 = vadd.f32 %v264_v35, %v243_v34  ;;  %v275_v35 = vadd.f32 %v273_v20, %v255_v48 }
  0xc2   :  { %v274_v47 = vadd.f32 %v272_v0, %v254_v10 }
  0xc4   :  { %716 = vrot.lane.b32.xlu1 %v711_v16, %s3252_s27  ;;  %714 = vrot.lane.b32.xlu0 %v710_v27, %s3252_s27  ;;  %v300_v7 = vadd.f32 %v3498_v31, %v274_v47 }
  0xc5   :  { %728 = vrot.lane.b32.xlu2 %v724_v41, %s3253_s28  ;;  %v793_v41 = vstv %s2633_s11  ;;  %s2666_s11 = sld [smem:[#allocation2 + $0x2b]] }
  0xc6   :  { %v285_v53 = vpop.permute.xlu1 %284  ;;  %v283_v58 = vpop.permute.xlu0 %282  ;;  %v794_v44 = vmul.f32 %v3314_v15, %v793_v41  ;;  %v795_v31 = vmul.f32 %v3326_v22, %v793_v41  ;;  %v806_v6 = vmul.f32 %v3324_v21, %v793_v41 }
  0xc7   :  { %v289_v17 = vadd.f32 %v285_v53, %v266_v12  ;;  %v3547_v43 = vpop.permute.xlu2 %401  ;;  %v288_v28 = vadd.f32 %v283_v58, %v265_v60  ;;  %v781_v12 = vmul.f32 %v3331_v25, %v767_v13  ;;  %v837_v60 = vstv %s2639_s12  ;;  %s2700_s12 = sld [smem:[#allocation2 + $0x3a]] }
  0xc8   :  { %v838_v10 = vmul.f32 %v3345_v32, %v837_v60 }
  0xc9   :  { %v315_v45 = vadd.f32 %v311_v63, %v289_v17 }
  0xcb   :  { %v3555_v11 = vadd.f32 %v329_v4, %v315_v45 }
  0xcc   :  { %740 = vrot.lane.b32.xlu1 %v736_v61, %s3253_s28  ;;  %730 = vrot.lane.b32.xlu0 %v725_v62, %s3253_s28 }
  0xcd   :  { %742 = vrot.lane.b32.xlu2 %v737_v5, %s3253_s28  ;;  %v333_v16 = vsub.f32 0.0, %v3555_v11  ;;  %v807_v5 = vmul.f32 %v3331_v25, %v793_v41 }
  0xce   :  { %v309_v63 = vpop.permute.xlu1 %308  ;;  %v297_v14 = vpop.permute.xlu0 %296 }
  0xcf   :  { %v314_v51 = vadd.f32 %v309_v63, %v288_v28  ;;  %v3562_v46 = vpop.permute.xlu2 %425  ;;  %v336_v26 = vmul.f32 1.442695, %v333_v16  ;;  %v301_v38 = vadd.f32 %v297_v14, %v275_v35  ;;  %v851_v16 = vmul.f32 %v3358_v39, %v837_v60 }
  0xd0   :  { %v863_v35 = vstv %s2640_s13  ;;  %s2762_s13 = sld [smem:[#allocation2 + $0x57]] }
  0xd1   :  { %v3565_v27 = vadd.f32 %v329_v4, %v314_v51  ;;  %3094 = vpow2.f32 %v336_v26 }
  0xd3   :  { %v332_v34 = vsub.f32 0.0, %v3565_v27 }
  0xd4   :  { %774 = vrot.lane.b32.xlu1 %v769_v23, %s3252_s27  ;;  %772 = vrot.lane.b32.xlu0 %v768_v24, %s3252_s27  ;;  %v850_v23 = vmul.f32 %v3360_v40, %v837_v60  ;;  %v839_v24 = vmul.f32 %v3350_v36, %v837_v60 }
  0xd5   :  { %v334_v42 = vmul.f32 1.442695, %v332_v34  ;;  %784 = vrot.lane.b32.xlu2 %v780_v1, %s3252_s27 }
  0xd6   :  { %v323_v52 = vpop.permute.xlu1 %322  ;;  %v321_v54 = vpop.permute.xlu0 %320 }
  0xd7   :  { %v327_v29 = vadd.f32 %v323_v52, %v301_v38  ;;  %v326_v18 = vadd.f32 %v321_v54, %v300_v7  ;;  %v3575_v53 = vpop.permute.xlu2 %459  ;;  %3096 = vpow2.f32 %v334_v42  ;;  %v3095_v45 = vpop.eup %3094  ;;  %v865_v54 = vmul.f32 %v3350_v36, %v863_v35 }
  0xd8   :  { %v339_v0 = vadd.f32 1.0, %v3095_v45 }
  0xd9   :  { %v345_v58 = vadd.f32 %v329_v4, %v327_v29  ;;  %v344_v33 = vadd.f32 %v329_v4, %v326_v18  ;;  %v864_v29 = vmul.f32 %v3345_v32, %v863_v35 }
  0xdb   :  { %v347_v17 = vsub.f32 0.0, %v345_v58  ;;  %v346_v59 = vsub.f32 0.0, %v344_v33 }
  0xdc   :  { %798 = vrot.lane.b32.xlu1 %v794_v44, %s3253_s28  ;;  %786 = vrot.lane.b32.xlu0 %v781_v12, %s3252_s27 }
  0xdd   :  { %v350_v61 = vmul.f32 1.442695, %v347_v17  ;;  %v348_v62 = vmul.f32 1.442695, %v346_v59  ;;  %800 = vrot.lane.b32.xlu2 %v795_v31, %s3253_s28  ;;  %v3097_v4 = vpop.eup %3096  ;;  %v876_v17 = vmul.f32 %v3360_v40, %v863_v35 }
  0xde   :  { %v3580_v19 = vpop.permute.xlu1 %399  ;;  %v3582_v56 = vpop.permute.xlu0 %389  ;;  %v338_v28 = vadd.f32 1.0, %v3097_v4  ;;  %v368_v4 = vstv %s2597_s19  ;;  %s2624_s19 = sld [smem:[#allocation2 + $0x18]] }
  0xdf   :  { %3098 = vpow2.f32 %v350_v61  ;;  %v3587_v37 = vpop.permute.xlu2 %483  ;;  %v877_v61 = vmul.f32 %v3358_v39, %v863_v35  ;;  %v377_v60 = vmul.f32 %v3291_v2, %v368_v4 }
  0xe0   :  { %3100 = vpow2.f32 %v348_v62 }
  0xe1   :  { %3102 = vrcp.f32 %v339_v0 }
  0xe2   :  { %3104 = vrcp.f32 %v338_v28 }
  0xe4   :  { %812 = vrot.lane.b32.xlu1 %v807_v5, %s3253_s28  ;;  %810 = vrot.lane.b32.xlu0 %v806_v6, %s3253_s28 }
  0xe5   :  { %v3099_v13 = vpop.eup %3098  ;;  %842 = vrot.lane.b32.xlu2 %v838_v10, %s3252_s27 }
  0xe6   :  { %v353_v63 = vadd.f32 1.0, %v3099_v13  ;;  %v3592_v14 = vpop.permute.xlu1 %415  ;;  %v3594_v48 = vpop.permute.xlu0 %413  ;;  %v933_v13 = vstv %s2647_s20  ;;  %s2673_s20 = sld [smem:[#allocation2 + $0x2e]] }
  0xe7   :  { %v3101_v51 = vpop.eup %3100  ;;  %v3599_v47 = vpop.permute.xlu2 %497 }
  0xe8   :  { %3106 = vrcp.f32 %v353_v63  ;;  %v352_v20 = vadd.f32 1.0, %v3101_v51  ;;  %v3103_v1 = vpop.eup %3102  ;;  %v934_v63 = vmul.f32 %v3379_v50, %v933_v13  ;;  %v405_v51 = vadd.f32 %v3580_v19, %v377_v60 }
  0xe9   :  { %v3105_v34 = vpop.eup %3104  ;;  %v343_v41 = vmul.f32 %v3103_v1, %v3555_v11 }
  0xea   :  { %3108 = vrcp.f32 %v352_v20  ;;  %v342_v44 = vmul.f32 %v3105_v34, %v3565_v27  ;;  %v907_v27 = vstv %s2646_s14  ;;  %v369_v20 = vmul.f32 %v3293_v3, %v368_v4  ;;  %s2708_s14 = sld [smem:[#allocation2 + $0x3f]] }
  0xeb   :  { %v908_v59 = vmul.f32 %v3379_v50, %v907_v27  ;;  %v909_v45 = vmul.f32 %v3377_v49, %v907_v27  ;;  %v921_v0 = vmul.f32 %v3392_v57, %v907_v27  ;;  %v920_v10 = vmul.f32 %v3387_v55, %v907_v27 }
  0xec   :  { %854 = vrot.lane.b32.xlu1 %v850_v23, %s3252_s27  ;;  %844 = vrot.lane.b32.xlu0 %v839_v24, %s3252_s27  ;;  %v370_v23 = vmul.f32 %v3300_v9, %v368_v4  ;;  %v438_v24 = vstv %s2600_s21  ;;  %v431_v34 = vadd.f32 %v3562_v46, %v405_v51  ;;  %v393_v35 = vadd.f32 %v3531_v30, %v369_v20  ;;  %s2661_s21 = sld [smem:[#allocation2 + $0x2a]] }
  0xed   :  { %856 = vrot.lane.b32.xlu2 %v851_v16, %s3252_s27  ;;  %v447_v19 = vmul.f32 %v3324_v21, %v438_v24  ;;  %v439_v46 = vmul.f32 %v3314_v15, %v438_v24  ;;  %v1012_v27 = vstv %s2652_s22  ;;  %s2668_s22 = sld [smem:[#allocation2 + $0x2d]] }
  0xee   :  { %v3107_v7 = vpop.eup %3106  ;;  %v3604_v26 = vpop.permute.xlu1 %457 }
  0xef   :  { %v3606_v38 = vpop.permute.xlu0 %427  ;;  %v357_v42 = vmul.f32 %v3107_v7, %v345_v58  ;;  %v3612_v18 = vpop.permute.xlu2 %539  ;;  %v946_v7 = vmul.f32 %v3387_v55, %v933_v13 }
  0xf0   :  { %v3109_v52 = vpop.eup %3108 }
  0xf1   :  { %v359_v12 = vmax.f32 %v343_v41, %v357_v42  ;;  %v356_v31 = vmul.f32 %v3109_v52, %v344_v33  ;;  %v935_v41 = vmul.f32 %v3377_v49, %v933_v13  ;;  %v394_v52 = vadd.f32 %v3582_v56, %v370_v23 }
  0xf3   :  { %362 = vst.msk [vmem:[%s4620_s4 + $0x8] sm:$0xff] %vm360_vm0, %v359_v12  ;;  %v358_v11 = vmax.f32 %v342_v44, %v356_v31  ;;  %v947_v44 = vmul.f32 %v3392_v57, %v933_v13  ;;  %v420_v30 = vadd.f32 %v3592_v14, %v394_v52  ;;  %v440_v12 = vmul.f32 %v3326_v22, %v438_v24  ;;  %v2887_v13 = vld [vmem:[%s4617_s1] sm:$0xff]  }
  0xf4   :  { %870 = vrot.lane.b32.xlu1 %v865_v54, %s3253_s28  ;;  %868 = vrot.lane.b32.xlu0 %v864_v29, %s3253_s28  ;;  %v2883_v54 = vld [vmem:[%s4616_s0] sm:$0xff]   ;;  %v419_v29 = vadd.f32 %v3594_v48, %v393_v35  ;;  %v449_v31 = vadd.f32 %v447_v19, %v431_v34  ;;  %v3688_v20 = vunpack.c.l.bf16 %v2887_v13  ;;  %v448_v35 = vmul.f32 %v3331_v25, %v438_v24 }
  0xf5   :  { %361 = vst.msk [vmem:[%s4620_s4] sm:$0xff] %vm360_vm0, %v358_v11  ;;  %880 = vrot.lane.b32.xlu2 %v876_v17, %s3253_s28  ;;  %v3673_v56 = vunpack.c.h.bf16 %v2883_v54  ;;  %v3675_v17 = vunpack.c.l.bf16 %v2883_v54  ;;  %v378_v11 = vmul.f32 %v3297_v8, %v368_v4  ;;  %v442_v60 = vadd.f32 %v440_v12, %v420_v30 }
  0xf6   :  { %v3626_v58 = vpop.permute.xlu1 %471  ;;  %v3699_v52 = vunpack.c.h.bf16 %v2887_v13 }
  0xf7   :  { %v470_v33 = vpop.permute.xlu0 %469  ;;  %v3631_v62 = vpop.permute.xlu2 %555  ;;  %v406_v23 = vadd.f32 %v3547_v43, %v378_v11  ;;  %v464_v34 = vadd.f32 %v3575_v53, %v442_v60  ;;  %v1038_v53 = vstv %s2653_s25  ;;  %s2674_s25 = sld [smem:[#allocation2 + $0x2f]] }
  0xf8   :  { %v475_v48 = vadd.f32 %v470_v33, %v449_v31  ;;  %v1014_v33 = vmul.f32 %v3673_v56, %v1012_v27  ;;  %v1039_v30 = vmul.f32 %v3675_v17, %v1038_v53  ;;  %v1026_v12 = vmul.f32 %v3699_v52, %v1012_v27 }
  0xf9   :  { %v432_v19 = vadd.f32 %v3606_v38, %v406_v23  ;;  %v1040_v60 = vmul.f32 %v3673_v56, %v1038_v53 }
  0xfb   :  { %v450_v24 = vadd.f32 %v448_v35, %v432_v19 }
  0xfc   :  { %912 = vrot.lane.b32.xlu1 %v908_v59, %s3252_s27  ;;  %882 = vrot.lane.b32.xlu0 %v877_v61, %s3253_s28  ;;  %v441_v59 = vadd.f32 %v439_v46, %v419_v29  ;;  %v508_v61 = vstv %s2607_s23  ;;  %s2707_s23 = sld [smem:[#allocation2 + $0x3e]] }
  0xfd   :  { %914 = vrot.lane.b32.xlu2 %v909_v45, %s3252_s27  ;;  %v510_v54 = vmul.f32 %v3350_v36, %v508_v61 }
  0xfe   :  { %v496_v5 = vpop.permute.xlu1 %495  ;;  %v463_v4 = vadd.f32 %v3604_v26, %v441_v59 }
  0xff   :  { %v3636_v6 = vpop.permute.xlu0 %485  ;;  %v3642_v28 = vpop.permute.xlu2 %597 }
 0x100   :  { %v489_v26 = vadd.f32 %v3587_v37, %v463_v4  ;;  %v490_v43 = vadd.f32 %v3636_v6, %v464_v34  ;;  %v476_v6 = vadd.f32 %v3626_v58, %v450_v24 }
 0x102   :  { %v512_v11 = vadd.f32 %v510_v54, %v490_v43 }
 0x104   :  { %926 = vrot.lane.b32.xlu1 %v921_v0, %s3252_s27  ;;  %924 = vrot.lane.b32.xlu0 %v920_v10, %s3252_s27  ;;  %v501_v0 = vadd.f32 %v496_v5, %v475_v48  ;;  %v517_v10 = vmul.f32 %v3360_v40, %v508_v61  ;;  %v1025_v5 = vmul.f32 %v3688_v20, %v1012_v27 }
 0x105   :  { %938 = vrot.lane.b32.xlu2 %v934_v63, %s3253_s28  ;;  %v1013_v63 = vmul.f32 %v3675_v17, %v1012_v27  ;;  %v502_v27 = vadd.f32 %v3599_v47, %v476_v6  ;;  %v1052_v47 = vmul.f32 %v3699_v52, %v1038_v53 }
 0x106   :  { %v3650_v16 = vpop.permute.xlu1 %529 }
 0x107   :  { %v3652_v1 = vpop.permute.xlu0 %527  ;;  %v3660_v42 = vpop.permute.xlu2 %611 }
 0x10c   :  { %950 = vrot.lane.b32.xlu1 %v946_v7, %s3253_s28  ;;  %940 = vrot.lane.b32.xlu0 %v935_v41, %s3253_s28  ;;  %v519_v7 = vadd.f32 %v517_v10, %v501_v0  ;;  %v509_v41 = vmul.f32 %v3345_v32, %v508_v61  ;;  %v518_v10 = vmul.f32 %v3358_v39, %v508_v61  ;;  %v3060_v61 = vld [vmem:[%s4616_s0 + $0x8] sm:$0xff]  }
 0x10d   :  { %952 = vrot.lane.b32.xlu2 %v947_v44, %s3253_s28  ;;  %v578_v44 = vstv %s2614_s29  ;;  %v3729_v19 = vunpack.c.l.bf16 %v3060_v61  ;;  %s2634_s29 = sld [smem:[#allocation2 + $0x1e]] }
 0x10e   :  { %v554_v45 = vpop.permute.xlu1 %553  ;;  %v545_v37 = vadd.f32 %v3612_v18, %v519_v7  ;;  %v511_v46 = vadd.f32 %v509_v41, %v489_v26  ;;  %v587_v59 = vmul.f32 %v3387_v55, %v578_v44  ;;  %v534_v18 = vadd.f32 %v3650_v16, %v512_v11 }
 0x10f   :  { %v3678_v14 = vpop.permute.xlu0 %541  ;;  %v636_v51 = vpop.permute.xlu2 %635  ;;  %v579_v13 = vmul.f32 %v3379_v50, %v578_v44  ;;  %v520_v35 = vadd.f32 %v518_v10, %v502_v27  ;;  %v1082_v41 = vstv %s2659_s5  ;;  %s2641_s5 = sld [smem:[#allocation2 + $0x21]] }
 0x110   :  { %v533_v0 = vadd.f32 %v3652_v1, %v511_v46  ;;  %v560_v16 = vadd.f32 %v3631_v62, %v534_v18  ;;  %v580_v1 = vmul.f32 %v3377_v49, %v578_v44  ;;  %v3061_v62 = vld [vmem:[%s4617_s1 + $0x8] sm:$0xff]   ;;  %v1083_v43 = vmul.f32 %v3729_v19, %v1082_v41 }
 0x111   :  { %v546_v54 = vadd.f32 %v3678_v14, %v520_v35  ;;  %v3752_v10 = vunpack.c.h.bf16 %v3061_v62 }
 0x112   :  { %v559_v58 = vadd.f32 %v554_v45, %v533_v0  ;;  %v1051_v45 = vmul.f32 %v3688_v20, %v1038_v53  ;;  %v588_v53 = vmul.f32 %v3392_v57, %v578_v44 }
 0x114   :  { %1019 = vrot.lane.b32.xlu1 %v1014_v33, %s3252_s27  ;;  %1017 = vrot.lane.b32.xlu0 %v1013_v63, %s3252_s27  ;;  %v581_v7 = vadd.f32 %v579_v13, %v559_v58  ;;  %v1096_v58 = vmul.f32 %v3752_v10, %v1082_v41 }
 0x115   :  { %1029 = vrot.lane.b32.xlu2 %v1025_v5, %s3252_s27  ;;  %v644_v5 = vstv %s2621_s30  ;;  %s2679_s30 = sld [smem:[#allocation2 + $0x31]] }
 0x116   :  { %v568_v29 = vpop.permute.xlu1 %567  ;;  %v603_v46 = vadd.f32 %v3642_v28, %v581_v7 }
 0x117   :  { %v566_v38 = vpop.permute.xlu0 %565  ;;  %v3707_v31 = vpop.permute.xlu2 %704 }
 0x118   :  { %v571_v48 = vadd.f32 %v566_v38, %v545_v37  ;;  %v582_v38 = vadd.f32 %v580_v1, %v560_v16  ;;  %v3741_v37 = vunpack.c.l.bf16 %v3061_v62  ;;  %v3062_v62 = vld [vmem:[%s4616_s0 + $0x10] sm:$0xff]  }
 0x11a   :  { %v589_v4 = vadd.f32 %v587_v59, %v571_v48 }
 0x11c   :  { %1043 = vrot.lane.b32.xlu1 %v1039_v30, %s3253_s28  ;;  %1031 = vrot.lane.b32.xlu0 %v1026_v12, %s3252_s27  ;;  %v572_v30 = vadd.f32 %v568_v29, %v546_v54 }
 0x11d   :  { %1045 = vrot.lane.b32.xlu2 %v1040_v60, %s3253_s28  ;;  %v1095_v60 = vmul.f32 %v3741_v37, %v1082_v41 }
 0x11e   :  { %v610_v33 = vpop.permute.xlu1 %609  ;;  %v590_v28 = vadd.f32 %v588_v53, %v572_v30 }
 0x11f   :  { %v600_v63 = vpop.permute.xlu0 %599  ;;  %v615_v23 = vadd.f32 %v610_v33, %v589_v4  ;;  %v3727_v34 = vpop.permute.xlu2 %728 }
 0x120   :  { %v604_v12 = vadd.f32 %v600_v63, %v582_v38  ;;  %v616_v33 = vadd.f32 %v3660_v42, %v590_v28  ;;  %v3774_v38 = vunpack.c.l.bf16 %v3062_v62 }
 0x121   :  { %v641_v26 = vadd.f32 %v636_v51, %v615_v23  ;;  %v3743_v51 = vunpack.c.h.bf16 %v3060_v61  ;;  %v1108_v23 = vstv %s2660_s10  ;;  %s2693_s10 = sld [smem:[#allocation2 + $0x37]] }
 0x122   :  { %v1109_v7 = vmul.f32 %v3729_v19, %v1108_v23 }
 0x123   :  { %v3736_v24 = vadd.f32 %v644_v5, %v641_v26  ;;  %v1084_v18 = vmul.f32 %v3743_v51, %v1082_v41  ;;  %v1110_v35 = vmul.f32 %v3743_v51, %v1108_v23 }
 0x124   :  { %1057 = vrot.lane.b32.xlu1 %v1052_v47, %s3253_s28  ;;  %1055 = vrot.lane.b32.xlu0 %v1051_v45, %s3253_s28 }
 0x125   :  { %v661_v6 = vsub.f32 0.0, %v3736_v24  ;;  %1087 = vrot.lane.b32.xlu2 %v1083_v43, %s3252_s27  ;;  %v1121_v43 = vmul.f32 %v3741_v37, %v1108_v23 }
 0x126   :  { %v626_v14 = vpop.permute.xlu1 %625 }
 0x127   :  { %v624_v11 = vpop.permute.xlu0 %623  ;;  %v663_v44 = vmul.f32 1.442695, %v661_v6  ;;  %v630_v48 = vadd.f32 %v626_v14, %v604_v12  ;;  %v3750_v0 = vpop.permute.xlu2 %742 }
 0x128   :  { %v629_v59 = vadd.f32 %v624_v11, %v603_v46  ;;  %v1152_v46 = vstv %s2666_s11  ;;  %s2694_s11 = sld [smem:[#allocation2 + $0x38]] }
 0x129   :  { %3110 = vpow2.f32 %v663_v44  ;;  %v3754_v29 = vadd.f32 %v644_v5, %v630_v48  ;;  %v1153_v11 = vmul.f32 %v3774_v38, %v1152_v46  ;;  %v1122_v44 = vmul.f32 %v3752_v10, %v1108_v23  ;;  %v3063_v48 = vld [vmem:[%s4617_s1 + $0x10] sm:$0xff]  }
 0x12a   :  { %v645_v27 = vadd.f32 %v644_v5, %v629_v59 }
 0x12b   :  { %v648_v13 = vsub.f32 0.0, %v3754_v29 }
 0x12c   :  { %v647_v4 = vsub.f32 0.0, %v645_v27  ;;  %1099 = vrot.lane.b32.xlu1 %v1095_v60, %s3252_s27  ;;  %1089 = vrot.lane.b32.xlu0 %v1084_v18, %s3252_s27  ;;  %v3788_v60 = vunpack.c.h.bf16 %v3062_v62 }
 0x12d   :  { %v651_v63 = vmul.f32 1.442695, %v648_v13  ;;  %1101 = vrot.lane.b32.xlu2 %v1096_v58, %s3252_s27  ;;  %v3791_v58 = vunpack.c.h.bf16 %v3063_v48 }
 0x12e   :  { %v649_v16 = vmul.f32 1.442695, %v647_v4  ;;  %v3761_v1 = vpop.permute.xlu1 %702  ;;  %v1154_v28 = vmul.f32 %v3788_v60, %v1152_v46  ;;  %v3795_v4 = vunpack.c.l.bf16 %v3063_v48 }
 0x12f   :  { %v638_v61 = vpop.permute.xlu0 %637  ;;  %v3111_v47 = vpop.eup %3110 }
 0x130   :  { %v642_v45 = vadd.f32 %v638_v61, %v616_v33  ;;  %3112 = vpow2.f32 %v649_v16  ;;  %v3766_v26 = vpop.permute.xlu2 %784  ;;  %v667_v41 = vadd.f32 1.0, %v3111_v47  ;;  %v1166_v47 = vmul.f32 %v3791_v58, %v1152_v46 }
 0x131   :  { %3114 = vpow2.f32 %v651_v63 }
 0x132   :  { %v660_v42 = vadd.f32 %v644_v5, %v642_v45  ;;  %3116 = vrcp.f32 %v667_v41  ;;  %v1178_v41 = vstv %s2667_s16 }
 0x134   :  { %v662_v54 = vsub.f32 0.0, %v660_v42  ;;  %1115 = vrot.lane.b32.xlu1 %v1110_v35, %s3253_s28  ;;  %1113 = vrot.lane.b32.xlu0 %v1109_v7, %s3253_s28  ;;  %v1165_v7 = vmul.f32 %v3795_v4, %v1152_v46 }
 0x135   :  { %1125 = vrot.lane.b32.xlu2 %v1121_v43, %s3253_s28 }
 0x136   :  { %v665_v53 = vmul.f32 1.442695, %v662_v54  ;;  %v3113_v30 = vpop.eup %3112  ;;  %v3776_v12 = vpop.permute.xlu1 %716  ;;  %v1179_v54 = vmul.f32 %v3774_v38, %v1178_v41 }
 0x137   :  { %v3778_v5 = vpop.permute.xlu0 %714  ;;  %v3115_v6 = vpop.eup %3114  ;;  %v653_v14 = vadd.f32 1.0, %v3113_v30 }
 0x138   :  { %3118 = vpow2.f32 %v665_v53  ;;  %v3786_v59 = vpop.permute.xlu2 %800  ;;  %v654_v18 = vadd.f32 1.0, %v3115_v6  ;;  %v3117_v13 = vpop.eup %3116 }
 0x139   :  { %3120 = vrcp.f32 %v653_v14  ;;  %v671_v45 = vmul.f32 %v3117_v13, %v3736_v24  ;;  %v1191_v14 = vmul.f32 %v3795_v4, %v1178_v41 }
 0x13a   :  { %3122 = vrcp.f32 %v654_v18  ;;  %v3064_v18 = vld [vmem:[%s4616_s0 + $0x18] sm:$0xff]  }
 0x13b   :  { %v3834_v13 = vunpack.c.l.bf16 %v3064_v18 }
 0x13c   :  { %1157 = vrot.lane.b32.xlu1 %v1153_v11, %s3252_s27  ;;  %1127 = vrot.lane.b32.xlu0 %v1122_v44, %s3253_s28  ;;  %v1180_v11 = vmul.f32 %v3788_v60, %v1178_v41 }
 0x13d   :  { %1159 = vrot.lane.b32.xlu2 %v1154_v28, %s3252_s27  ;;  %v1192_v28 = vmul.f32 %v3791_v58, %v1178_v41 }
 0x13e   :  { %v3119_v33 = vpop.eup %3118  ;;  %v3797_v16 = vpop.permute.xlu1 %740 }
 0x13f   :  { %v668_v63 = vadd.f32 1.0, %v3119_v33  ;;  %v3799_v23 = vpop.permute.xlu0 %730  ;;  %v3121_v61 = vpop.eup %3120  ;;  %v1222_v33 = vstv %s2673_s20  ;;  %s2706_s20 = sld [smem:[#allocation2 + $0x3d]] }
 0x140   :  { %v657_v35 = vmul.f32 %v3121_v61, %v645_v27  ;;  %v3805_v62 = vpop.permute.xlu2 %842  ;;  %v3123_v53 = vpop.eup %3122 }
 0x141   :  { %3124 = vrcp.f32 %v668_v63  ;;  %v658_v30 = vmul.f32 %v3123_v53, %v3754_v29  ;;  %v683_v29 = vstv %s2624_s19  ;;  %s2654_s19 = sld [smem:[#allocation2 + $0x27]] }
 0x142   :  { %v673_v43 = vmax.f32 %v657_v35, %v671_v45  ;;  %v3065_v45 = vld [vmem:[%s4617_s1 + $0x18] sm:$0xff]  }
 0x144   :  { %2622 = vst.msk [vmem:[%s4620_s4 + $0x10] sm:$0xff] %vm360_vm0, %v673_v43  ;;  %1171 = vrot.lane.b32.xlu1 %v1166_v47, %s3252_s27  ;;  %1169 = vrot.lane.b32.xlu0 %v1165_v7, %s3252_s27  ;;  %v684_v47 = vmul.f32 %v3293_v3, %v683_v29  ;;  %v1223_v7 = vmul.f32 %v3834_v13, %v1222_v33  ;;  %v3845_v43 = vunpack.c.l.bf16 %v3065_v45  ;;  %v3851_v3 = vunpack.c.h.bf16 %v3065_v45 }
 0x145   :  { %1183 = vrot.lane.b32.xlu2 %v1179_v54, %s3253_s28 }
 0x146   :  { %v3814_v27 = vpop.permute.xlu1 %774  ;;  %v1235_v54 = vmul.f32 %v3845_v43, %v1222_v33  ;;  %v708_v53 = vadd.f32 %v3761_v1, %v684_v47 }
 0x147   :  { %v3125_v24 = vpop.eup %3124  ;;  %v773_v46 = vpop.permute.xlu0 %772 }
 0x148   :  { %v672_v6 = vmul.f32 %v3125_v24, %v660_v42  ;;  %v3820_v44 = vpop.permute.xlu2 %856  ;;  %v3832_v42 = vunpack.c.h.bf16 %v3064_v18  ;;  %v753_v24 = vstv %s2627_s2  ;;  %s2713_s2 = sld [smem:[#allocation2 + $0x40]] }
 0x149   :  { %v754_v1 = vmul.f32 %v3314_v15, %v753_v24 }
 0x14a   :  { %v674_v48 = vmax.f32 %v658_v30, %v672_v6  ;;  %4625 = vst [vmem:[#allocation8_spill] sm:$0xff] %v3832_v42  ;;  %v1224_v35 = vmul.f32 %v3832_v42, %v1222_v33  ;;  %v1248_v30 = vstv %s2674_s25  ;;  %s2714_s25 = sld [smem:[#allocation2 + $0x41]] }
 0x14b   :  { %v1249_v18 = vmul.f32 %v3834_v13, %v1248_v30  ;;  %v1250_v45 = vmul.f32 %v3832_v42, %v1248_v30 }
 0x14c   :  { %2623 = vst.msk [vmem:[%s4620_s4 + $0x18] sm:$0xff] %vm360_vm0, %v674_v48  ;;  %1195 = vrot.lane.b32.xlu1 %v1191_v14, %s3253_s28  ;;  %1185 = vrot.lane.b32.xlu0 %v1180_v11, %s3253_s28  ;;  %v734_v11 = vadd.f32 %v3727_v34, %v708_v53  ;;  %v693_v48 = vmul.f32 %v3297_v8, %v683_v29  ;;  %v823_v34 = vstv %s2634_s29  ;;  %s2727_s29 = sld [smem:[#allocation2 + $0x46]] }
 0x14d   :  { %1197 = vrot.lane.b32.xlu2 %v1192_v28, %s3253_s28  ;;  %v1236_v28 = vmul.f32 %v3851_v3, %v1222_v33  ;;  %v692_v8 = vmul.f32 %v3291_v2, %v683_v29  ;;  %v1261_v2 = vmul.f32 %v3845_v43, %v1248_v30 }
 0x14e   :  { %v799_v63 = vpop.permute.xlu1 %798 }
 0x14f   :  { %v787_v61 = vpop.permute.xlu0 %786 }
 0x150   :  { %v3843_v41 = vpop.permute.xlu2 %880 }
 0x154   :  { %1229 = vrot.lane.b32.xlu1 %v1224_v35, %s3252_s27  ;;  %1227 = vrot.lane.b32.xlu0 %v1223_v7, %s3252_s27  ;;  %v721_v35 = vadd.f32 %v3776_v12, %v693_v48  ;;  %v756_v7 = vadd.f32 %v754_v1, %v734_v11  ;;  %v763_v11 = vmul.f32 %v3331_v25, %v753_v24 }
 0x155   :  { %1239 = vrot.lane.b32.xlu2 %v1235_v54, %s3252_s27  ;;  %v685_v54 = vmul.f32 %v3300_v9, %v683_v29  ;;  %v824_v9 = vmul.f32 %v3345_v32, %v823_v34  ;;  %v1262_v1 = vmul.f32 %v3851_v3, %v1248_v30  ;;  %v720_v29 = vadd.f32 %v3778_v5, %v692_v8 }
 0x156   :  { %v813_v6 = vpop.permute.xlu1 %812  ;;  %v778_v15 = vadd.f32 %v773_v46, %v756_v7  ;;  %v747_v42 = vadd.f32 %v3750_v0, %v721_v35  ;;  %v755_v0 = vmul.f32 %v3326_v22, %v753_v24  ;;  %v762_v32 = vmul.f32 %v3324_v21, %v753_v24 }
 0x157   :  { %v3853_v14 = vpop.permute.xlu0 %810  ;;  %v709_v48 = vadd.f32 %v3707_v31, %v685_v54  ;;  %v746_v25 = vadd.f32 %v3797_v16, %v720_v29  ;;  %v833_v16 = vmul.f32 %v3358_v39, %v823_v34  ;;  %v825_v39 = vmul.f32 %v3350_v36, %v823_v34 }
 0x158   :  { %v3861_v47 = vpop.permute.xlu2 %914  ;;  %v804_v12 = vadd.f32 %v799_v63, %v778_v15  ;;  %v765_v31 = vadd.f32 %v763_v11, %v747_v42  ;;  %v893_v42 = vstv %s2641_s5  ;;  %s2748_s5 = sld [smem:[#allocation2 + $0x50]] }
 0x159   :  { %v764_v22 = vadd.f32 %v762_v32, %v746_v25  ;;  %v959_v25 = vstv %s2648_s7  ;;  %s2742_s7 = sld [smem:[#allocation2 + $0x4e]] }
 0x15a   :  { %v791_v30 = vadd.f32 %v787_v61, %v765_v31 }
 0x15c   :  { %1253 = vrot.lane.b32.xlu1 %v1249_v18, %s3253_s28  ;;  %1241 = vrot.lane.b32.xlu0 %v1236_v28, %s3252_s27  ;;  %v1327_v18 = vstv %s2679_s30  ;;  %v735_v28 = vadd.f32 %v3799_v23, %v709_v48  ;;  %v817_v54 = vadd.f32 %v813_v6, %v791_v30  ;;  %v832_v48 = vmul.f32 %v3360_v40, %v823_v34  ;;  %s2732_s30 = sld [smem:[#allocation2 + $0x48]] }
 0x15d   :  { %1255 = vrot.lane.b32.xlu2 %v1250_v45, %s3253_s28  ;;  %v1328_v63 = vmul.f32 %v3675_v17, %v1327_v18  ;;  %v826_v45 = vadd.f32 %v824_v9, %v804_v12  ;;  %v1340_v24 = vmul.f32 %v3688_v20, %v1327_v18  ;;  %v1329_v8 = vmul.f32 %v3673_v56, %v1327_v18 }
 0x15e   :  { %v3869_v53 = vpop.permute.xlu1 %854  ;;  %v757_v5 = vadd.f32 %v755_v0, %v735_v28  ;;  %v894_v12 = vmul.f32 %v3379_v50, %v893_v42  ;;  %v1341_v11 = vmul.f32 %v3699_v52, %v1327_v18  ;;  %v790_v9 = vadd.f32 %v3766_v26, %v764_v22 }
 0x15f   :  { %v3871_v33 = vpop.permute.xlu0 %844  ;;  %v848_v23 = vadd.f32 %v3805_v62, %v826_v45  ;;  %v835_v62 = vadd.f32 %v833_v16, %v817_v54  ;;  %v1353_v50 = vstv %s2680_s6  ;;  %v903_v34 = vmul.f32 %v3392_v57, %v893_v42  ;;  %s2735_s6 = sld [smem:[#allocation2 + $0x4b]] }
 0x160   :  { %v939_v46 = vpop.permute.xlu2 %938  ;;  %v779_v21 = vadd.f32 %v3814_v27, %v757_v5  ;;  %v816_v27 = vadd.f32 %v3853_v14, %v790_v9  ;;  %v1355_v36 = vmul.f32 %v3673_v56, %v1353_v50  ;;  %v1354_v28 = vmul.f32 %v3675_v17, %v1353_v50 }
 0x161   :  { %v861_v26 = vadd.f32 %v3820_v44, %v835_v62  ;;  %v1366_v32 = vmul.f32 %v3688_v20, %v1353_v50  ;;  %v895_v45 = vmul.f32 %v3377_v49, %v893_v42  ;;  %v1367_v54 = vmul.f32 %v3699_v52, %v1353_v50 }
 0x162   :  { %v805_v6 = vadd.f32 %v3786_v59, %v779_v21  ;;  %v834_v14 = vadd.f32 %v832_v48, %v816_v27 }
 0x164   :  { %1267 = vrot.lane.b32.xlu1 %v1262_v1, %s3253_s28  ;;  %1265 = vrot.lane.b32.xlu0 %v1261_v2, %s3253_s28  ;;  %v827_v18 = vadd.f32 %v825_v39, %v805_v6  ;;  %v860_v31 = vadd.f32 %v3869_v53, %v834_v14 }
 0x165   :  { %1332 = vrot.lane.b32.xlu2 %v1328_v63, %s3252_s27 }
 0x166   :  { %v871_v35 = vpop.permute.xlu1 %870  ;;  %v849_v44 = vadd.f32 %v3871_v33, %v827_v18  ;;  %v902_v33 = vmul.f32 %v3387_v55, %v893_v42 }
 0x167   :  { %v869_v7 = vpop.permute.xlu0 %868 }
 0x168   :  { %v953_v61 = vpop.permute.xlu2 %952  ;;  %v874_v15 = vadd.f32 %v869_v7, %v848_v23  ;;  %v875_v30 = vadd.f32 %v871_v35, %v849_v44  ;;  %v886_v23 = vadd.f32 %v3843_v41, %v860_v31 }
 0x16a   :  { %v896_v1 = vadd.f32 %v894_v12, %v874_v15  ;;  %v897_v35 = vadd.f32 %v895_v45, %v875_v30  ;;  %v904_v15 = vadd.f32 %v902_v33, %v886_v23 }
 0x16c   :  { %1344 = vrot.lane.b32.xlu1 %v1340_v24, %s3252_s27  ;;  %1334 = vrot.lane.b32.xlu0 %v1329_v8, %s3252_s27  ;;  %v919_v55 = vadd.f32 %v3861_v47, %v897_v35 }
 0x16d   :  { %1346 = vrot.lane.b32.xlu2 %v1341_v11, %s3252_s27 }
 0x16e   :  { %v913_v2 = vpop.permute.xlu1 %912 }
 0x16f   :  { %v883_v29 = vpop.permute.xlu0 %882  ;;  %v918_v59 = vadd.f32 %v913_v2, %v896_v1  ;;  %v1423_v2 = vstv %s2687_s9  ;;  %s2728_s9 = sld [smem:[#allocation2 + $0x47]] }
 0x170   :  { %v3907_v0 = vpop.permute.xlu2 %1029  ;;  %v887_v63 = vadd.f32 %v883_v29, %v861_v26  ;;  %v1424_v29 = vmul.f32 %v3729_v19, %v1423_v2  ;;  %v1437_v44 = vmul.f32 %v3752_v10, %v1423_v2 }
 0x171   :  { %v944_v40 = vadd.f32 %v939_v46, %v918_v59  ;;  %v1397_v46 = vstv %s2686_s8  ;;  %s2678_s8 = sld [smem:[#allocation2 + $0x30]] }
 0x172   :  { %v905_v7 = vadd.f32 %v903_v34, %v887_v63  ;;  %v1398_v49 = vmul.f32 %v3729_v19, %v1397_v46  ;;  %v1399_v8 = vmul.f32 %v3743_v51, %v1397_v46  ;;  %v1411_v27 = vmul.f32 %v3752_v10, %v1397_v46 }
 0x173   :  { %v3916_v5 = vadd.f32 %v959_v25, %v944_v40  ;;  %v1410_v48 = vmul.f32 %v3741_v37, %v1397_v46  ;;  %v1436_v34 = vmul.f32 %v3741_v37, %v1423_v2 }
 0x174   :  { %1360 = vrot.lane.b32.xlu1 %v1355_v36, %s3253_s28  ;;  %1358 = vrot.lane.b32.xlu0 %v1354_v28, %s3253_s28 }
 0x175   :  { %1370 = vrot.lane.b32.xlu2 %v1366_v32, %s3253_s28  ;;  %v962_v21 = vsub.f32 0.0, %v3916_v5 }
 0x176   :  { %v927_v22 = vpop.permute.xlu1 %926 }
 0x177   :  { %v925_v57 = vpop.permute.xlu0 %924  ;;  %v931_v53 = vadd.f32 %v927_v22, %v905_v7  ;;  %v964_v41 = vmul.f32 1.442695, %v962_v21  ;;  %v1467_v7 = vstv %s2693_s10  ;;  %s2681_s10 = sld [smem:[#allocation2 + $0x33]] }
 0x178   :  { %v3923_v16 = vpop.permute.xlu2 %1045  ;;  %v930_v42 = vadd.f32 %v925_v57, %v904_v15  ;;  %v1469_v33 = vmul.f32 %v3788_v60, %v1467_v7  ;;  %v1480_v35 = vmul.f32 %v3795_v4, %v1467_v7 }
 0x179   :  { %v957_v24 = vadd.f32 %v953_v61, %v931_v53  ;;  %3126 = vpow2.f32 %v964_v41 }
 0x17b   :  { %v3927_v12 = vadd.f32 %v959_v25, %v957_v24 }
 0x17c   :  { %1402 = vrot.lane.b32.xlu1 %v1398_v49, %s3252_s27  ;;  %1372 = vrot.lane.b32.xlu0 %v1367_v54, %s3253_s28  ;;  %v1468_v49 = vmul.f32 %v3774_v38, %v1467_v7 }
 0x17d   :  { %v977_v11 = vsub.f32 0.0, %v3927_v12  ;;  %1404 = vrot.lane.b32.xlu2 %v1399_v8, %s3252_s27  ;;  %v1493_v8 = vstv %s2694_s11  ;;  %s2733_s11 = sld [smem:[#allocation2 + $0x49]] }
 0x17e   :  { %v951_v9 = vpop.permute.xlu1 %950 }
 0x17f   :  { %v941_v62 = vpop.permute.xlu0 %940  ;;  %v980_v61 = vmul.f32 1.442695, %v977_v11  ;;  %v956_v6 = vadd.f32 %v951_v9, %v930_v42  ;;  %v3127_v63 = vpop.eup %3126 }
 0x180   :  { %v945_v39 = vadd.f32 %v941_v62, %v919_v55  ;;  %v3936_v1 = vpop.permute.xlu2 %1087  ;;  %v968_v31 = vadd.f32 1.0, %v3127_v63 }
 0x181   :  { %v974_v50 = vadd.f32 %v959_v25, %v956_v6  ;;  %3128 = vpow2.f32 %v980_v61  ;;  %v1494_v6 = vmul.f32 %v3774_v38, %v1493_v8 }
 0x182   :  { %v961_v47 = vadd.f32 %v959_v25, %v945_v39  ;;  %v1425_v25 = vmul.f32 %v3743_v51, %v1423_v2  ;;  %v1481_v39 = vmul.f32 %v3791_v58, %v1467_v7 }
 0x183   :  { %v976_v26 = vsub.f32 0.0, %v974_v50 }
 0x184   :  { %v963_v59 = vsub.f32 0.0, %v961_v47  ;;  %1416 = vrot.lane.b32.xlu1 %v1411_v27, %s3252_s27  ;;  %1414 = vrot.lane.b32.xlu0 %v1410_v48, %s3252_s27 }
 0x185   :  { %v978_v18 = vmul.f32 1.442695, %v976_v26  ;;  %1428 = vrot.lane.b32.xlu2 %v1424_v29, %s3253_s28  ;;  %v1495_v29 = vmul.f32 %v3788_v60, %v1493_v8 }
 0x186   :  { %v966_v36 = vmul.f32 1.442695, %v963_v59  ;;  %v3941_v28 = vpop.permute.xlu1 %1019  ;;  %v1537_v59 = vstv %s2700_s12  ;;  %s2688_s12 = sld [smem:[#allocation2 + $0x36]] }
 0x187   :  { %v3943_v14 = vpop.permute.xlu0 %1017  ;;  %3130 = vpow2.f32 %v978_v18  ;;  %v3129_v40 = vpop.eup %3128  ;;  %v1538_v18 = vmul.f32 %v3834_v13, %v1537_v59 }
 0x188   :  { %3132 = vpow2.f32 %v966_v36  ;;  %v3948_v32 = vpop.permute.xlu2 %1101  ;;  %v983_v45 = vadd.f32 1.0, %v3129_v40  ;;  %v998_v36 = vstv %s2651_s17  ;;  %s2760_s17 = sld [smem:[#allocation2 + $0x55]] }
 0x189   :  { %3134 = vrcp.f32 %v968_v31  ;;  %v4626_v31 = vld [vmem:[#allocation8_spill] sm:$0xff] }
 0x18a   :  { %3136 = vrcp.f32 %v983_v45 }
 0x18c   :  { %1440 = vrot.lane.b32.xlu1 %v1436_v34, %s3253_s28  ;;  %1430 = vrot.lane.b32.xlu0 %v1425_v25, %s3253_s28  ;;  %v1000_v34 = vmul.f32 %v3673_v56, %v998_v36  ;;  %v1550_v25 = vmul.f32 %v3845_v43, %v1537_v59 }
 0x18d   :  { %v3131_v30 = vpop.eup %3130  ;;  %1442 = vrot.lane.b32.xlu2 %v1437_v44, %s3253_s28  ;;  %v1539_v44 = vmul.f32 %v4626_v31, %v1537_v59 }
 0x18e   :  { %v3133_v46 = vpop.eup %3132  ;;  %v982_v22 = vadd.f32 1.0, %v3131_v30  ;;  %v3953_v57 = vpop.permute.xlu1 %1043  ;;  %v1551_v30 = vmul.f32 %v3851_v3, %v1537_v59  ;;  %v1024_v7 = vadd.f32 %v3941_v28, %v1000_v34 }
 0x18f   :  { %v3955_v23 = vpop.permute.xlu0 %1031  ;;  %v969_v53 = vadd.f32 1.0, %v3133_v46  ;;  %v3135_v21 = vpop.eup %3134  ;;  %v999_v46 = vmul.f32 %v3675_v17, %v998_v36 }
 0x190   :  { %3138 = vrcp.f32 %v982_v22  ;;  %v3960_v54 = vpop.permute.xlu2 %1125  ;;  %v3137_v24 = vpop.eup %3136  ;;  %v972_v11 = vmul.f32 %v3135_v21, %v3916_v5  ;;  %v1563_v22 = vstv %s2701_s18  ;;  %s2695_s18 = sld [smem:[#allocation2 + $0x39]] }
 0x191   :  { %3140 = vrcp.f32 %v969_v53  ;;  %v987_v62 = vmul.f32 %v3137_v24, %v3927_v12  ;;  %v1068_v53 = vstv %s2654_s19  ;;  %v1565_v28 = vmul.f32 %v4626_v31, %v1563_v22  ;;  %s2702_s19 = sld [smem:[#allocation4 + $0x4]] }
 0x192   :  { %v1070_v21 = vmul.f32 %v3743_v51, %v1068_v53  ;;  %v1564_v24 = vmul.f32 %v3834_v13, %v1563_v22 }
 0x194   :  { %1474 = vrot.lane.b32.xlu1 %v1469_v33, %s3252_s27  ;;  %1472 = vrot.lane.b32.xlu0 %v1468_v49, %s3252_s27 }
 0x195   :  { %1484 = vrot.lane.b32.xlu2 %v1480_v35, %s3252_s27  ;;  %v1050_v35 = vadd.f32 %v3923_v16, %v1024_v7  ;;  %v1008_v16 = vmul.f32 %v3699_v52, %v998_v36 }
 0x196   :  { %v3139_v15 = vpop.eup %3138  ;;  %v3965_v55 = vpop.permute.xlu1 %1057 }
 0x197   :  { %v3967_v41 = vpop.permute.xlu0 %1055  ;;  %v3141_v42 = vpop.eup %3140  ;;  %v986_v9 = vmul.f32 %v3139_v15, %v974_v50  ;;  %v1507_v50 = vmul.f32 %v3791_v58, %v1493_v8  ;;  %v1023_v15 = vadd.f32 %v3943_v14, %v999_v46 }
 0x198   :  { %v973_v61 = vmul.f32 %v3141_v42, %v961_v47  ;;  %v3974_v27 = vpop.permute.xlu2 %1159  ;;  %v1506_v47 = vmul.f32 %v3795_v4, %v1493_v8  ;;  %v1576_v42 = vmul.f32 %v3845_v43, %v1563_v22 }
 0x199   :  { %v988_v48 = vmax.f32 %v972_v11, %v986_v9  ;;  %v1049_v11 = vadd.f32 %v3953_v57, %v1023_v15  ;;  %v1069_v9 = vmul.f32 %v3729_v19, %v1068_v53 }
 0x19a   :  { %v989_v2 = vmax.f32 %v973_v61, %v987_v62  ;;  %v1072_v62 = vadd.f32 %v1070_v21, %v1050_v35  ;;  %v1007_v61 = vmul.f32 %v3688_v20, %v998_v36  ;;  %v1036_v36 = vadd.f32 %v3955_v23, %v1008_v16 }
 0x19b   :  { %2649 = vst.msk [vmem:[%s4620_s4 + $0x20] sm:$0xff] %vm360_vm0, %v988_v48  ;;  %v1138_v48 = vstv %s2661_s21  ;;  %v1071_v57 = vadd.f32 %v1069_v9, %v1049_v11  ;;  %v1668_v9 = vstv %s2707_s23  ;;  %s2767_s21 = sld [smem:[#allocation2 + $0x58]] }
 0x19c   :  { %2650 = vst.msk [vmem:[%s4620_s4 + $0x28] sm:$0xff] %vm360_vm0, %v989_v2  ;;  %1498 = vrot.lane.b32.xlu1 %v1494_v6, %s3253_s28  ;;  %1486 = vrot.lane.b32.xlu0 %v1481_v39, %s3252_s27  ;;  %v1642_v39 = vstv %s2706_s20  ;;  %v1139_v23 = vmul.f32 %v3774_v38, %v1138_v48  ;;  %s2740_s20 = sld [smem:[#allocation2 + $0x4c]] }
 0x19d   :  { %1500 = vrot.lane.b32.xlu2 %v1495_v29, %s3253_s28  ;;  %v1643_v59 = vmul.f32 %v3675_v17, %v1642_v39  ;;  %s2774_s23 = sld [smem:[#allocation2 + $0x5b]] }
 0x19e   :  { %v3987_v5 = vpop.permute.xlu1 %1099 }
 0x19f   :  { %v1090_v12 = vpop.permute.xlu0 %1089 }
 0x1a0   :  { %v3992_v26 = vpop.permute.xlu2 %1183  ;;  %v1094_v6 = vadd.f32 %v1090_v12, %v1072_v62  ;;  %v1669_v62 = vmul.f32 %v3675_v17, %v1668_v9 }
 0x1a4   :  { %1512 = vrot.lane.b32.xlu1 %v1507_v50, %s3253_s28  ;;  %1510 = vrot.lane.b32.xlu0 %v1506_v47, %s3253_s28  ;;  %v1140_v50 = vmul.f32 %v3788_v60, %v1138_v48  ;;  %v1035_v47 = vadd.f32 %v3907_v0, %v1007_v61  ;;  %v1078_v0 = vmul.f32 %v3752_v10, %v1068_v53 }
 0x1a5   :  { %1542 = vrot.lane.b32.xlu2 %v1538_v18, %s3252_s27  ;;  %v1577_v18 = vmul.f32 %v3851_v3, %v1563_v22 }
 0x1a6   :  { %v1116_v63 = vpop.permute.xlu1 %1115  ;;  %v1061_v34 = vadd.f32 %v3967_v41, %v1035_v47 }
 0x1a7   :  { %v1114_v40 = vpop.permute.xlu0 %1113  ;;  %v1120_v29 = vadd.f32 %v1116_v63, %v1094_v6  ;;  %v1093_v63 = vadd.f32 %v3936_v1, %v1071_v57 }
 0x1a8   :  { %v4001_v45 = vpop.permute.xlu2 %1197 }
 0x1a9   :  { %v1142_v7 = vadd.f32 %v1140_v50, %v1120_v29  ;;  %v1119_v46 = vadd.f32 %v1114_v40, %v1093_v63 }
 0x1ab   :  { %v1164_v1 = vadd.f32 %v3974_v27, %v1142_v7  ;;  %v1141_v40 = vadd.f32 %v1139_v23, %v1119_v46  ;;  %v1712_v23 = vstv %s2713_s2  ;;  %s2741_s2 = sld [smem:[#allocation2 + $0x4d]] }
 0x1ac   :  { %1554 = vrot.lane.b32.xlu1 %v1550_v25, %s3252_s27  ;;  %1544 = vrot.lane.b32.xlu0 %v1539_v44, %s3252_s27  ;;  %v1077_v25 = vmul.f32 %v3741_v37, %v1068_v53  ;;  %v1644_v44 = vmul.f32 %v3673_v56, %v1642_v39  ;;  %v1656_v53 = vmul.f32 %v3699_v52, %v1642_v39 }
 0x1ad   :  { %1556 = vrot.lane.b32.xlu2 %v1551_v30, %s3252_s27  ;;  %v1062_v30 = vadd.f32 %v3965_v55, %v1036_v36 }
 0x1ae   :  { %v1158_v33 = vpop.permute.xlu1 %1157  ;;  %v1079_v22 = vadd.f32 %v1077_v25, %v1061_v34  ;;  %v1274_v34 = vstv %s2675_s24  ;;  %v1682_v25 = vmul.f32 %v3699_v52, %v1668_v9  ;;  %s2775_s24 = sld [smem:[#allocation2 + $0x5c]] }
 0x1af   :  { %v4008_v49 = vpop.permute.xlu0 %1127  ;;  %v1080_v21 = vadd.f32 %v1078_v0, %v1062_v30  ;;  %v1163_v27 = vadd.f32 %v1158_v33, %v1141_v40  ;;  %v1725_v40 = vmul.f32 %v3741_v37, %v1712_v23 }
 0x1b0   :  { %v4015_v8 = vpop.permute.xlu2 %1239  ;;  %v1105_v55 = vadd.f32 %v3987_v5, %v1079_v22  ;;  %v1147_v5 = vmul.f32 %v3795_v4, %v1138_v48 }
 0x1b1   :  { %v1106_v61 = vadd.f32 %v3948_v32, %v1080_v21  ;;  %v1189_v32 = vadd.f32 %v3992_v26, %v1163_v27  ;;  %v1714_v21 = vmul.f32 %v3743_v51, %v1712_v23 }
 0x1b2   :  { %v1131_v16 = vadd.f32 %v3960_v54, %v1105_v55 }
 0x1b3   :  { %v1132_v6 = vadd.f32 %v4008_v49, %v1106_v61 }
 0x1b4   :  { %1570 = vrot.lane.b32.xlu1 %v1565_v28, %s3253_s28  ;;  %1568 = vrot.lane.b32.xlu0 %v1564_v24, %s3253_s28  ;;  %v1208_v28 = vstv %s2668_s22  ;;  %v1655_v24 = vmul.f32 %v3688_v20, %v1642_v39  ;;  %v1148_v39 = vmul.f32 %v3791_v58, %v1138_v48  ;;  %v1149_v36 = vadd.f32 %v1147_v5, %v1131_v16  ;;  %s2768_s22 = sld [smem:[#allocation2 + $0x59]] }
 0x1b5   :  { %1580 = vrot.lane.b32.xlu2 %v1576_v42, %s3253_s28  ;;  %v1210_v11 = vmul.f32 %v4626_v31, %v1208_v28  ;;  %v1209_v47 = vmul.f32 %v3834_v13, %v1208_v28  ;;  %v1217_v30 = vmul.f32 %v3845_v43, %v1208_v28 }
 0x1b6   :  { %v4025_v2 = vpop.permute.xlu1 %1171  ;;  %v1150_v49 = vadd.f32 %v1148_v39, %v1132_v6 }
 0x1b7   :  { %v4027_v14 = vpop.permute.xlu0 %1169  ;;  %v1211_v26 = vadd.f32 %v1209_v47, %v1189_v32 }
 0x1b8   :  { %v1256_v12 = vpop.permute.xlu2 %1255  ;;  %v1175_v63 = vadd.f32 %v4027_v14, %v1149_v36 }
 0x1bc   :  { %1647 = vrot.lane.b32.xlu1 %v1643_v59, %s3252_s27  ;;  %1582 = vrot.lane.b32.xlu0 %v1577_v18, %s3253_s28  ;;  %v1681_v59 = vmul.f32 %v3688_v20, %v1668_v9  ;;  %v1670_v18 = vmul.f32 %v3673_v56, %v1668_v9 }
 0x1bd   :  { %1649 = vrot.lane.b32.xlu2 %v1644_v44, %s3252_s27  ;;  %v1176_v44 = vadd.f32 %v4025_v2, %v1150_v49 }
 0x1be   :  { %v1196_v41 = vpop.permute.xlu1 %1195 }
 0x1bf   :  { %v1186_v35 = vpop.permute.xlu0 %1185  ;;  %v1201_v0 = vadd.f32 %v1196_v41, %v1175_v63  ;;  %v1202_v2 = vadd.f32 %v4001_v45, %v1176_v44 }
 0x1c0   :  { %v4049_v15 = vpop.permute.xlu2 %1332  ;;  %v1190_v42 = vadd.f32 %v1186_v35, %v1164_v1  ;;  %v1218_v35 = vmul.f32 %v3851_v3, %v1208_v28  ;;  %v1713_v1 = vmul.f32 %v3729_v19, %v1712_v23 }
 0x1c1   :  { %v1219_v41 = vadd.f32 %v1217_v30, %v1201_v0 }
 0x1c2   :  { %v1212_v57 = vadd.f32 %v1210_v11, %v1190_v42  ;;  %v1220_v11 = vadd.f32 %v1218_v35, %v1202_v2 }
 0x1c3   :  { %v1245_v45 = vadd.f32 %v4015_v8, %v1219_v41 }
 0x1c4   :  { %1661 = vrot.lane.b32.xlu1 %v1656_v53, %s3252_s27  ;;  %1659 = vrot.lane.b32.xlu0 %v1655_v24, %s3252_s27 }
 0x1c5   :  { %1673 = vrot.lane.b32.xlu2 %v1669_v62, %s3253_s28  ;;  %v1738_v62 = vstv %s2714_s25  ;;  %s2747_s25 = sld [smem:[#allocation2 + $0x4f]] }
 0x1c6   :  { %v1230_v29 = vpop.permute.xlu1 %1229  ;;  %v1739_v39 = vmul.f32 %v3729_v19, %v1738_v62  ;;  %v1740_v8 = vmul.f32 %v3743_v51, %v1738_v62  ;;  %v1751_v44 = vmul.f32 %v3741_v37, %v1738_v62 }
 0x1c7   :  { %v1228_v50 = vpop.permute.xlu0 %1227  ;;  %v1234_v33 = vadd.f32 %v1230_v29, %v1212_v57  ;;  %v1726_v57 = vmul.f32 %v3752_v10, %v1712_v23 }
 0x1c8   :  { %v4065_v54 = vpop.permute.xlu2 %1346  ;;  %v1233_v7 = vadd.f32 %v1228_v50, %v1211_v26  ;;  %v1782_v26 = vstv %s2720_s26 }
 0x1c9   :  { %v1260_v48 = vadd.f32 %v1256_v12, %v1234_v33  ;;  %v1783_v0 = vmul.f32 %v3774_v38, %v1782_v26 }
 0x1cb   :  { %v4073_v46 = vadd.f32 %v1274_v34, %v1260_v48 }
 0x1cc   :  { %1685 = vrot.lane.b32.xlu1 %v1681_v59, %s3253_s28  ;;  %1675 = vrot.lane.b32.xlu0 %v1670_v18, %s3253_s28 }
 0x1cd   :  { %1687 = vrot.lane.b32.xlu2 %v1682_v25, %s3253_s28  ;;  %v1278_v53 = vsub.f32 0.0, %v4073_v46  ;;  %v1752_v25 = vmul.f32 %v3752_v10, %v1738_v62 }
 0x1ce   :  { %v1254_v12 = vpop.permute.xlu1 %1253 }
 0x1cf   :  { %v1242_v22 = vpop.permute.xlu0 %1241  ;;  %v1259_v14 = vadd.f32 %v1254_v12, %v1233_v7  ;;  %v1281_v28 = vmul.f32 1.442695, %v1278_v53  ;;  %v1796_v53 = vmul.f32 %v3791_v58, %v1782_v26 }
 0x1d0   :  { %v4080_v55 = vpop.permute.xlu2 %1370  ;;  %v1246_v9 = vadd.f32 %v1242_v22, %v1220_v11  ;;  %v1808_v11 = vstv %s2721_s3 }
 0x1d1   :  { %v4083_v24 = vadd.f32 %v1274_v34, %v1259_v14  ;;  %3142 = vpow2.f32 %v1281_v28 }
 0x1d3   :  { %v1277_v42 = vsub.f32 0.0, %v4083_v24 }
 0x1d4   :  { %1719 = vrot.lane.b32.xlu1 %v1714_v21, %s3252_s27  ;;  %1717 = vrot.lane.b32.xlu0 %v1713_v1, %s3252_s27  ;;  %v1795_v21 = vmul.f32 %v3795_v4, %v1782_v26  ;;  %v1784_v1 = vmul.f32 %v3788_v60, %v1782_v26 }
 0x1d5   :  { %v1279_v61 = vmul.f32 1.442695, %v1277_v42  ;;  %1729 = vrot.lane.b32.xlu2 %v1725_v40, %s3252_s27 }
 0x1d6   :  { %v1268_v27 = vpop.permute.xlu1 %1267 }
 0x1d7   :  { %v1266_v5 = vpop.permute.xlu0 %1265  ;;  %v1272_v16 = vadd.f32 %v1268_v27, %v1246_v9  ;;  %3144 = vpow2.f32 %v1279_v61  ;;  %v3143_v48 = vpop.eup %3142 }
 0x1d8   :  { %v1271_v6 = vadd.f32 %v1266_v5, %v1245_v45  ;;  %v4093_v29 = vpop.permute.xlu2 %1404  ;;  %v1284_v30 = vadd.f32 1.0, %v3143_v48  ;;  %v1810_v5 = vmul.f32 %v3788_v60, %v1808_v11 }
 0x1d9   :  { %v1290_v50 = vadd.f32 %v1274_v34, %v1272_v16  ;;  %v1809_v16 = vmul.f32 %v3774_v38, %v1808_v11 }
 0x1da   :  { %v1289_v32 = vadd.f32 %v1274_v34, %v1271_v6 }
 0x1db   :  { %v1292_v33 = vsub.f32 0.0, %v1290_v50 }
 0x1dc   :  { %v1291_v47 = vsub.f32 0.0, %v1289_v32  ;;  %1743 = vrot.lane.b32.xlu1 %v1739_v39, %s3253_s28  ;;  %1731 = vrot.lane.b32.xlu0 %v1726_v57, %s3252_s27 }
 0x1dd   :  { %v1295_v59 = vmul.f32 1.442695, %v1292_v33  ;;  %1745 = vrot.lane.b32.xlu2 %v1740_v8, %s3253_s28  ;;  %v3145_v34 = vpop.eup %3144  ;;  %v1821_v33 = vmul.f32 %v3795_v4, %v1808_v11 }
 0x1de   :  { %v1293_v18 = vmul.f32 1.442695, %v1291_v47  ;;  %v4098_v49 = vpop.permute.xlu1 %1344  ;;  %v1283_v7 = vadd.f32 1.0, %v3145_v34  ;;  %v1313_v34 = vstv %s2678_s8  ;;  %s2705_s8 = sld [smem:[#allocation2 + $0x3c]] }
 0x1df   :  { %v4100_v36 = vpop.permute.xlu0 %1334  ;;  %3146 = vpow2.f32 %v1295_v59  ;;  %v1822_v59 = vmul.f32 %v3791_v58, %v1808_v11  ;;  %v1322_v26 = vmul.f32 %v3688_v20, %v1313_v34 }
 0x1e0   :  { %v4105_v63 = vpop.permute.xlu2 %1428  ;;  %3148 = vpow2.f32 %v1293_v18 }
 0x1e1   :  { %3150 = vrcp.f32 %v1284_v30 }
 0x1e2   :  { %3152 = vrcp.f32 %v1283_v7 }
 0x1e4   :  { %1757 = vrot.lane.b32.xlu1 %v1752_v25, %s3253_s28  ;;  %1755 = vrot.lane.b32.xlu0 %v1751_v44, %s3253_s28 }
 0x1e5   :  { %v3147_v23 = vpop.eup %3146  ;;  %1787 = vrot.lane.b32.xlu2 %v1783_v0, %s3252_s27 }
 0x1e6   :  { %v1298_v12 = vadd.f32 1.0, %v3147_v23  ;;  %v4110_v22 = vpop.permute.xlu1 %1360  ;;  %v3149_v14 = vpop.eup %3148  ;;  %v1878_v23 = vstv %s2728_s9  ;;  %s2754_s9 = sld [smem:[#allocation2 + $0x52]] }
 0x1e7   :  { %v4112_v2 = vpop.permute.xlu0 %1358  ;;  %v1297_v35 = vadd.f32 1.0, %v3149_v14  ;;  %v3151_v40 = vpop.eup %3150  ;;  %v1350_v14 = vadd.f32 %v4098_v49, %v1322_v26 }
 0x1e8   :  { %3154 = vrcp.f32 %v1298_v12  ;;  %v4117_v41 = vpop.permute.xlu2 %1442  ;;  %v3153_v42 = vpop.eup %3152  ;;  %v1288_v62 = vmul.f32 %v3151_v40, %v4073_v46  ;;  %v1879_v12 = vmul.f32 %v3834_v13, %v1878_v23 }
 0x1e9   :  { %3156 = vrcp.f32 %v1297_v35  ;;  %v1287_v39 = vmul.f32 %v3153_v42, %v4083_v24  ;;  %v1852_v24 = vstv %s2727_s29  ;;  %v1314_v35 = vmul.f32 %v3675_v17, %v1313_v34 }
 0x1ea   :  { %v1853_v47 = vmul.f32 %v3834_v13, %v1852_v24  ;;  %v1854_v48 = vmul.f32 %v4626_v31, %v1852_v24  ;;  %v1866_v30 = vmul.f32 %v3851_v3, %v1852_v24  ;;  %v1865_v0 = vmul.f32 %v3845_v43, %v1852_v24 }
 0x1eb   :  { %v1376_v42 = vadd.f32 %v4080_v55, %v1350_v14  ;;  %v1338_v11 = vadd.f32 %v4049_v15, %v1314_v35  ;;  %v1957_v24 = vstv %s2733_s11 }
 0x1ec   :  { %1799 = vrot.lane.b32.xlu1 %v1795_v21, %s3252_s27  ;;  %1789 = vrot.lane.b32.xlu0 %v1784_v1, %s3252_s27  ;;  %v1315_v21 = vmul.f32 %v3673_v56, %v1313_v34  ;;  %v1383_v1 = vstv %s2681_s10 }
 0x1ed   :  { %1801 = vrot.lane.b32.xlu2 %v1796_v53, %s3252_s27  ;;  %v1392_v49 = vmul.f32 %v3741_v37, %v1383_v1  ;;  %v1384_v55 = vmul.f32 %v3729_v19, %v1383_v1 }
 0x1ee   :  { %v3155_v45 = vpop.eup %3154  ;;  %v4122_v28 = vpop.permute.xlu1 %1402 }
 0x1ef   :  { %v4124_v9 = vpop.permute.xlu0 %1372  ;;  %v1302_v61 = vmul.f32 %v3155_v45, %v1290_v50  ;;  %v3157_v27 = vpop.eup %3156  ;;  %v1891_v45 = vmul.f32 %v3845_v43, %v1878_v23 }
 0x1f0   :  { %v4130_v6 = vpop.permute.xlu2 %1484  ;;  %v1301_v8 = vmul.f32 %v3157_v27, %v1289_v32  ;;  %v1339_v27 = vadd.f32 %v4100_v36, %v1315_v21 }
 0x1f1   :  { %v1304_v57 = vmax.f32 %v1288_v62, %v1302_v61  ;;  %v1880_v62 = vmul.f32 %v4626_v31, %v1878_v23 }
 0x1f2   :  { %v1303_v46 = vmax.f32 %v1287_v39, %v1301_v8  ;;  %v1892_v39 = vmul.f32 %v3851_v3, %v1878_v23  ;;  %v1365_v15 = vadd.f32 %v4110_v22, %v1339_v27  ;;  %v1394_v8 = vadd.f32 %v1392_v49, %v1376_v42  ;;  %v2983_v23 = vld [vmem:[%s4617_s1] sm:$0xff]  }
 0x1f3   :  { %2677 = vst.msk [vmem:[%s4620_s4 + $0x38] sm:$0xff] %vm360_vm0, %v1304_v57  ;;  %v1385_v57 = vmul.f32 %v3743_v51, %v1383_v1  ;;  %v4206_v35 = vunpack.c.l.bf16 %v2983_v23  ;;  %v4217_v27 = vunpack.c.h.bf16 %v2983_v23 }
 0x1f4   :  { %1815 = vrot.lane.b32.xlu1 %v1810_v5, %s3253_s28  ;;  %1813 = vrot.lane.b32.xlu0 %v1809_v16, %s3253_s28  ;;  %2676 = vst.msk [vmem:[%s4620_s4 + $0x30] sm:$0xff] %vm360_vm0, %v1303_v46  ;;  %v2979_v5 = vld [vmem:[%s4616_s0] sm:$0xff]   ;;  %v1364_v16 = vadd.f32 %v4112_v2, %v1338_v11  ;;  %v1323_v46 = vmul.f32 %v3699_v52, %v1313_v34 }
 0x1f5   :  { %1825 = vrot.lane.b32.xlu2 %v1821_v33, %s3253_s28  ;;  %v4191_v36 = vunpack.c.h.bf16 %v2979_v5  ;;  %v4193_v33 = vunpack.c.l.bf16 %v2979_v5  ;;  %v1387_v26 = vadd.f32 %v1385_v57, %v1365_v15  ;;  %v1393_v11 = vmul.f32 %v3752_v10, %v1383_v1 }
 0x1f6   :  { %v4144_v50 = vpop.permute.xlu1 %1416  ;;  %v1351_v21 = vadd.f32 %v4065_v54, %v1323_v46  ;;  %v1971_v57 = vmul.f32 %v4217_v27, %v1957_v24 }
 0x1f7   :  { %v1415_v32 = vpop.permute.xlu0 %1414  ;;  %v1409_v42 = vadd.f32 %v4093_v29, %v1387_v26  ;;  %v1983_v29 = vstv %s2734_s15  ;;  %s2755_s15 = sld [smem:[#allocation2 + $0x53]] }
 0x1f8   :  { %v4149_v18 = vpop.permute.xlu2 %1500  ;;  %v1420_v2 = vadd.f32 %v1415_v32, %v1394_v8  ;;  %v1959_v32 = vmul.f32 %v4191_v36, %v1957_v24  ;;  %v1377_v49 = vadd.f32 %v4124_v9, %v1351_v21  ;;  %v1984_v15 = vmul.f32 %v4193_v33, %v1983_v29 }
 0x1f9   :  { %v1985_v26 = vmul.f32 %v4191_v36, %v1983_v29 }
 0x1fa   :  { %v1395_v1 = vadd.f32 %v1393_v11, %v1377_v49 }
 0x1fc   :  { %1857 = vrot.lane.b32.xlu1 %v1853_v47, %s3252_s27  ;;  %1827 = vrot.lane.b32.xlu0 %v1822_v59, %s3253_s28  ;;  %v1386_v47 = vadd.f32 %v1384_v55, %v1364_v16  ;;  %v1453_v59 = vstv %s2688_s12  ;;  %s2759_s12 = sld [smem:[#allocation2 + $0x54]] }
 0x1fd   :  { %1859 = vrot.lane.b32.xlu2 %v1854_v48, %s3252_s27  ;;  %v1455_v5 = vmul.f32 %v3788_v60, %v1453_v59 }
 0x1fe   :  { %v1441_v25 = vpop.permute.xlu1 %1440  ;;  %v1408_v34 = vadd.f32 %v4122_v28, %v1386_v47 }
 0x1ff   :  { %v4154_v44 = vpop.permute.xlu0 %1430 }
 0x200   :  { %v4160_v7 = vpop.permute.xlu2 %1542  ;;  %v1434_v28 = vadd.f32 %v4105_v63, %v1408_v34  ;;  %v1435_v54 = vadd.f32 %v4154_v44, %v1409_v42  ;;  %v1421_v44 = vadd.f32 %v4144_v50, %v1395_v1 }
 0x202   :  { %v1457_v46 = vadd.f32 %v1455_v5, %v1435_v54 }
 0x204   :  { %1871 = vrot.lane.b32.xlu1 %v1866_v30, %s3252_s27  ;;  %1869 = vrot.lane.b32.xlu0 %v1865_v0, %s3252_s27  ;;  %v1446_v30 = vadd.f32 %v1441_v25, %v1420_v2  ;;  %v1462_v0 = vmul.f32 %v3795_v4, %v1453_v59  ;;  %v1970_v25 = vmul.f32 %v4206_v35, %v1957_v24 }
 0x205   :  { %1883 = vrot.lane.b32.xlu2 %v1879_v12, %s3253_s28  ;;  %v1958_v12 = vmul.f32 %v4193_v33, %v1957_v24  ;;  %v1447_v24 = vadd.f32 %v4117_v41, %v1421_v44  ;;  %v1997_v41 = vmul.f32 %v4217_v27, %v1983_v29 }
 0x206   :  { %v4168_v53 = vpop.permute.xlu1 %1474 }
 0x207   :  { %v4170_v40 = vpop.permute.xlu0 %1472 }
 0x208   :  { %v4178_v61 = vpop.permute.xlu2 %1556 }
 0x20c   :  { %1895 = vrot.lane.b32.xlu1 %v1891_v45, %s3253_s28  ;;  %1885 = vrot.lane.b32.xlu0 %v1880_v62, %s3253_s28  ;;  %v1464_v45 = vadd.f32 %v1462_v0, %v1446_v30  ;;  %v1454_v62 = vmul.f32 %v3774_v38, %v1453_v59  ;;  %v1463_v0 = vmul.f32 %v3791_v58, %v1453_v59  ;;  %v3078_v59 = vld [vmem:[%s4616_s0 + $0x8] sm:$0xff]  }
 0x20d   :  { %1897 = vrot.lane.b32.xlu2 %v1892_v39, %s3253_s28  ;;  %v1523_v39 = vstv %s2695_s18  ;;  %v4247_v49 = vunpack.c.l.bf16 %v3078_v59  ;;  %s2722_s18 = sld [smem:[#allocation2 + $0x45]] }
 0x20e   :  { %v1499_v48 = vpop.permute.xlu1 %1498  ;;  %v1490_v63 = vadd.f32 %v4130_v6, %v1464_v45  ;;  %v1456_v55 = vadd.f32 %v1454_v62, %v1434_v28  ;;  %v1532_v47 = vmul.f32 %v3845_v43, %v1523_v39  ;;  %v1479_v6 = vadd.f32 %v4168_v53, %v1457_v46 }
 0x20f   :  { %v4196_v22 = vpop.permute.xlu0 %1486  ;;  %v1524_v23 = vmul.f32 %v3834_v13, %v1523_v39  ;;  %v1465_v11 = vadd.f32 %v1463_v0, %v1447_v24  ;;  %v2027_v62 = vstv %s2740_s20  ;;  %s2729_s20 = sld [smem:[#allocation4 + $0x5]] }
 0x210   :  { %v1581_v14 = vpop.permute.xlu2 %1580  ;;  %v1478_v30 = vadd.f32 %v4170_v40, %v1456_v55  ;;  %v1505_v53 = vadd.f32 %v4149_v18, %v1479_v6  ;;  %v1525_v40 = vmul.f32 %v4626_v31, %v1523_v39  ;;  %v3079_v18 = vld [vmem:[%s4617_s1 + $0x8] sm:$0xff]   ;;  %v2028_v54 = vmul.f32 %v4247_v49, %v2027_v62 }
 0x211   :  { %v1491_v5 = vadd.f32 %v4196_v22, %v1465_v11  ;;  %v4270_v0 = vunpack.c.h.bf16 %v3079_v18 }
 0x212   :  { %v1504_v50 = vadd.f32 %v1499_v48, %v1478_v30  ;;  %v1996_v48 = vmul.f32 %v4206_v35, %v1983_v29  ;;  %v1533_v29 = vmul.f32 %v3851_v3, %v1523_v39 }
 0x214   :  { %1964 = vrot.lane.b32.xlu1 %v1959_v32, %s3252_s27  ;;  %1962 = vrot.lane.b32.xlu0 %v1958_v12, %s3252_s27  ;;  %v1526_v45 = vadd.f32 %v1524_v23, %v1504_v50  ;;  %v2041_v50 = vmul.f32 %v4270_v0, %v2027_v62 }
 0x215   :  { %1974 = vrot.lane.b32.xlu2 %v1970_v25, %s3252_s27  ;;  %v1589_v25 = vstv %s2702_s19  ;;  %s2761_s19 = sld [smem:[#allocation2 + $0x56]] }
 0x216   :  { %v1513_v16 = vpop.permute.xlu1 %1512  ;;  %v1548_v55 = vadd.f32 %v4160_v7, %v1526_v45 }
 0x217   :  { %v1511_v9 = vpop.permute.xlu0 %1510 }
 0x218   :  { %v4225_v8 = vpop.permute.xlu2 %1649  ;;  %v1516_v2 = vadd.f32 %v1511_v9, %v1490_v63  ;;  %v1527_v9 = vadd.f32 %v1525_v40, %v1505_v53  ;;  %v4259_v63 = vunpack.c.l.bf16 %v3079_v18  ;;  %v3080_v18 = vld [vmem:[%s4616_s0 + $0x10] sm:$0xff]  }
 0x21a   :  { %v1534_v34 = vadd.f32 %v1532_v47, %v1516_v2 }
 0x21c   :  { %1988 = vrot.lane.b32.xlu1 %v1984_v15, %s3253_s28  ;;  %1976 = vrot.lane.b32.xlu0 %v1971_v57, %s3252_s27  ;;  %v1517_v15 = vadd.f32 %v1513_v16, %v1491_v5 }
 0x21d   :  { %1990 = vrot.lane.b32.xlu2 %v1985_v26, %s3253_s28  ;;  %v2040_v26 = vmul.f32 %v4259_v63, %v2027_v62 }
 0x21e   :  { %v1555_v32 = vpop.permute.xlu1 %1554  ;;  %v1535_v7 = vadd.f32 %v1533_v29, %v1517_v15 }
 0x21f   :  { %v1545_v12 = vpop.permute.xlu0 %1544  ;;  %v1560_v21 = vadd.f32 %v1555_v32, %v1534_v34 }
 0x220   :  { %v4245_v42 = vpop.permute.xlu2 %1673  ;;  %v1549_v57 = vadd.f32 %v1545_v12, %v1527_v9  ;;  %v1561_v32 = vadd.f32 %v4178_v61, %v1535_v7  ;;  %v4292_v9 = vunpack.c.l.bf16 %v3080_v18 }
 0x221   :  { %v1586_v28 = vadd.f32 %v1581_v14, %v1560_v21  ;;  %v4261_v14 = vunpack.c.h.bf16 %v3078_v59  ;;  %v2053_v21 = vstv %s2741_s2  ;;  %s2781_s2 = sld [smem:[#allocation2 + $0x5e]] }
 0x222   :  { %v2054_v45 = vmul.f32 %v4247_v49, %v2053_v21 }
 0x223   :  { %v4254_v1 = vadd.f32 %v1589_v25, %v1586_v28  ;;  %v2029_v6 = vmul.f32 %v4261_v14, %v2027_v62  ;;  %v2055_v11 = vmul.f32 %v4261_v14, %v2053_v21 }
 0x224   :  { %2002 = vrot.lane.b32.xlu1 %v1997_v41, %s3253_s28  ;;  %2000 = vrot.lane.b32.xlu0 %v1996_v48, %s3253_s28 }
 0x225   :  { %v1606_v44 = vsub.f32 0.0, %v4254_v1  ;;  %2032 = vrot.lane.b32.xlu2 %v2028_v54, %s3252_s27  ;;  %v2066_v54 = vmul.f32 %v4259_v63, %v2053_v21 }
 0x226   :  { %v1571_v22 = vpop.permute.xlu1 %1570 }
 0x227   :  { %v1569_v46 = vpop.permute.xlu0 %1568  ;;  %v1608_v39 = vmul.f32 1.442695, %v1606_v44  ;;  %v1575_v2 = vadd.f32 %v1571_v22, %v1549_v57 }
 0x228   :  { %v1574_v47 = vadd.f32 %v1569_v46, %v1548_v55  ;;  %v4268_v30 = vpop.permute.xlu2 %1687  ;;  %v2097_v55 = vstv %s2747_s25 }
 0x229   :  { %3158 = vpow2.f32 %v1608_v39  ;;  %v4272_v16 = vadd.f32 %v1589_v25, %v1575_v2  ;;  %v2098_v46 = vmul.f32 %v4292_v9, %v2097_v55  ;;  %v2067_v39 = vmul.f32 %v4270_v0, %v2053_v21  ;;  %v3081_v2 = vld [vmem:[%s4617_s1 + $0x10] sm:$0xff]  }
 0x22a   :  { %v1590_v24 = vadd.f32 %v1589_v25, %v1574_v47 }
 0x22b   :  { %v1593_v23 = vsub.f32 0.0, %v4272_v16 }
 0x22c   :  { %v1592_v34 = vsub.f32 0.0, %v1590_v24  ;;  %2044 = vrot.lane.b32.xlu1 %v2040_v26, %s3252_s27  ;;  %2034 = vrot.lane.b32.xlu0 %v2029_v6, %s3252_s27  ;;  %v4306_v26 = vunpack.c.h.bf16 %v3080_v18 }
 0x22d   :  { %v1596_v12 = vmul.f32 1.442695, %v1593_v23  ;;  %2046 = vrot.lane.b32.xlu2 %v2041_v50, %s3252_s27  ;;  %v4309_v50 = vunpack.c.h.bf16 %v3081_v2 }
 0x22e   :  { %v1594_v53 = vmul.f32 1.442695, %v1592_v34  ;;  %v4279_v40 = vpop.permute.xlu1 %1647  ;;  %v2099_v7 = vmul.f32 %v4306_v26, %v2097_v55  ;;  %v4313_v34 = vunpack.c.l.bf16 %v3081_v2 }
 0x22f   :  { %v1583_v59 = vpop.permute.xlu0 %1582  ;;  %v3159_v41 = vpop.eup %3158 }
 0x230   :  { %v1587_v48 = vadd.f32 %v1583_v59, %v1561_v32  ;;  %3160 = vpow2.f32 %v1594_v53  ;;  %v4284_v28 = vpop.permute.xlu2 %1729  ;;  %v1612_v62 = vadd.f32 1.0, %v3159_v41  ;;  %v2111_v41 = vmul.f32 %v4309_v50, %v2097_v55 }
 0x231   :  { %3162 = vpow2.f32 %v1596_v12 }
 0x232   :  { %v1605_v61 = vadd.f32 %v1589_v25, %v1587_v48  ;;  %3164 = vrcp.f32 %v1612_v62  ;;  %v2123_v62 = vstv %s2748_s5  ;;  %s2782_s5 = sld [smem:[#allocation2 + $0x5f]] }
 0x234   :  { %v1607_v5 = vsub.f32 0.0, %v1605_v61  ;;  %2060 = vrot.lane.b32.xlu1 %v2055_v11, %s3253_s28  ;;  %2058 = vrot.lane.b32.xlu0 %v2054_v45, %s3253_s28  ;;  %v2110_v45 = vmul.f32 %v4313_v34, %v2097_v55 }
 0x235   :  { %2070 = vrot.lane.b32.xlu2 %v2066_v54, %s3253_s28 }
 0x236   :  { %v1610_v29 = vmul.f32 1.442695, %v1607_v5  ;;  %v3161_v15 = vpop.eup %3160  ;;  %v4294_v57 = vpop.permute.xlu1 %1661  ;;  %v2124_v5 = vmul.f32 %v4292_v9, %v2123_v62 }
 0x237   :  { %v4296_v25 = vpop.permute.xlu0 %1659  ;;  %v3163_v44 = vpop.eup %3162  ;;  %v1598_v22 = vadd.f32 1.0, %v3161_v15 }
 0x238   :  { %3166 = vpow2.f32 %v1610_v29  ;;  %v4304_v47 = vpop.permute.xlu2 %1745  ;;  %v1599_v6 = vadd.f32 1.0, %v3163_v44  ;;  %v3165_v23 = vpop.eup %3164 }
 0x239   :  { %3168 = vrcp.f32 %v1598_v22  ;;  %v1616_v48 = vmul.f32 %v3165_v23, %v4254_v1  ;;  %v2136_v22 = vmul.f32 %v4313_v34, %v2123_v62 }
 0x23a   :  { %3170 = vrcp.f32 %v1599_v6  ;;  %v3082_v6 = vld [vmem:[%s4616_s0 + $0x18] sm:$0xff]   ;;  %s2783_s0 = sld [smem:[#allocation4 + $0x7]] }
 0x23b   :  { %v4352_v23 = vunpack.c.l.bf16 %v3082_v6 }
 0x23c   :  { %2102 = vrot.lane.b32.xlu1 %v2098_v46, %s3252_s27  ;;  %2072 = vrot.lane.b32.xlu0 %v2067_v39, %s3253_s28  ;;  %v2125_v46 = vmul.f32 %v4306_v26, %v2123_v62 }
 0x23d   :  { %2104 = vrot.lane.b32.xlu2 %v2099_v7, %s3252_s27  ;;  %v2137_v7 = vmul.f32 %v4309_v50, %v2123_v62 }
 0x23e   :  { %v3167_v32 = vpop.eup %3166  ;;  %v4315_v53 = vpop.permute.xlu1 %1685 }
 0x23f   :  { %v1613_v12 = vadd.f32 1.0, %v3167_v32  ;;  %v4317_v21 = vpop.permute.xlu0 %1675  ;;  %v3169_v59 = vpop.eup %3168  ;;  %v2167_v32 = vstv %s2754_s9 }
 0x240   :  { %v1602_v11 = vmul.f32 %v3169_v59, %v1590_v24  ;;  %v4323_v18 = vpop.permute.xlu2 %1787  ;;  %v3171_v29 = vpop.eup %3170 }
 0x241   :  { %3172 = vrcp.f32 %v1613_v12  ;;  %v1603_v15 = vmul.f32 %v3171_v29, %v4272_v16  ;;  %v1628_v16 = vstv %s2705_s8  ;;  %s2756_s8 = sld [smem:[#allocation4 + $0x6]] }
 0x242   :  { %v1618_v54 = vmax.f32 %v1602_v11, %v1616_v48  ;;  %v3083_v48 = vld [vmem:[%s4617_s1 + $0x18] sm:$0xff]   ;;  %s2715_s1 = sld [smem:[#allocation2 + $0x42]] }
 0x244   :  { %2703 = vst.msk [vmem:[%s4620_s4 + $0x40] sm:$0xff] %vm360_vm0, %v1618_v54  ;;  %2116 = vrot.lane.b32.xlu1 %v2111_v41, %s3252_s27  ;;  %2114 = vrot.lane.b32.xlu0 %v2110_v45, %s3252_s27  ;;  %v1629_v41 = vmul.f32 %v3675_v17, %v1628_v16  ;;  %v2168_v45 = vmul.f32 %v4352_v23, %v2167_v32  ;;  %v4363_v54 = vunpack.c.l.bf16 %v3083_v48  ;;  %v4369_v17 = vunpack.c.h.bf16 %v3083_v48 }
 0x245   :  { %2128 = vrot.lane.b32.xlu2 %v2124_v5, %s3253_s28 }
 0x246   :  { %v4332_v24 = vpop.permute.xlu1 %1719  ;;  %v2180_v5 = vmul.f32 %v4363_v54, %v2167_v32  ;;  %v1653_v29 = vadd.f32 %v4279_v40, %v1629_v41 }
 0x247   :  { %v3173_v1 = vpop.eup %3172  ;;  %v1718_v55 = vpop.permute.xlu0 %1717 }
 0x248   :  { %v1617_v44 = vmul.f32 %v3173_v1, %v1605_v61  ;;  %v4338_v39 = vpop.permute.xlu2 %1801  ;;  %v4350_v61 = vunpack.c.h.bf16 %v3082_v6  ;;  %v1698_v1 = vstv %s2708_s14  ;;  %s2769_s14 = sld [smem:[#allocation2 + $0x5a]] }
 0x249   :  { %v1699_v40 = vmul.f32 %v3729_v19, %v1698_v1 }
 0x24a   :  { %v1619_v2 = vmax.f32 %v1603_v15, %v1617_v44  ;;  %4627 = vst [vmem:[#allocation8_spill] sm:$0xff] %v4350_v61  ;;  %v2169_v11 = vmul.f32 %v4350_v61, %v2167_v32  ;;  %v2193_v15 = vstv %s2755_s15  ;;  %s2776_s15 = sld [smem:[#allocation2 + $0x5d]] }
 0x24b   :  { %v2194_v6 = vmul.f32 %v4352_v23, %v2193_v15  ;;  %v2195_v48 = vmul.f32 %v4350_v61, %v2193_v15 }
 0x24c   :  { %2704 = vst.msk [vmem:[%s4620_s4 + $0x48] sm:$0xff] %vm360_vm0, %v1619_v2  ;;  %2140 = vrot.lane.b32.xlu1 %v2136_v22, %s3253_s28  ;;  %2130 = vrot.lane.b32.xlu0 %v2125_v46, %s3253_s28  ;;  %v1679_v46 = vadd.f32 %v4245_v42, %v1653_v29  ;;  %v1638_v2 = vmul.f32 %v3699_v52, %v1628_v16  ;;  %v1768_v42 = vstv %s2715_s1 }
 0x24d   :  { %2142 = vrot.lane.b32.xlu2 %v2137_v7, %s3253_s28  ;;  %v2181_v7 = vmul.f32 %v4369_v17, %v2167_v32  ;;  %v1637_v52 = vmul.f32 %v3688_v20, %v1628_v16  ;;  %v2206_v20 = vmul.f32 %v4363_v54, %v2193_v15 }
 0x24e   :  { %v1744_v12 = vpop.permute.xlu1 %1743 }
 0x24f   :  { %v1732_v59 = vpop.permute.xlu0 %1731 }
 0x250   :  { %v4361_v62 = vpop.permute.xlu2 %1825 }
 0x254   :  { %2174 = vrot.lane.b32.xlu1 %v2169_v11, %s3252_s27  ;;  %2172 = vrot.lane.b32.xlu0 %v2168_v45, %s3252_s27  ;;  %v1666_v11 = vadd.f32 %v4294_v57, %v1638_v2  ;;  %v1701_v45 = vadd.f32 %v1699_v40, %v1679_v46  ;;  %v1708_v46 = vmul.f32 %v3752_v10, %v1698_v1 }
 0x255   :  { %2184 = vrot.lane.b32.xlu2 %v2180_v5, %s3252_s27  ;;  %v1630_v5 = vmul.f32 %v3673_v56, %v1628_v16  ;;  %v1769_v56 = vmul.f32 %v3774_v38, %v1768_v42  ;;  %v2207_v40 = vmul.f32 %v4369_v17, %v2193_v15  ;;  %v1665_v16 = vadd.f32 %v4296_v25, %v1637_v52 }
 0x256   :  { %v1758_v44 = vpop.permute.xlu1 %1757  ;;  %v1723_v19 = vadd.f32 %v1718_v55, %v1701_v45  ;;  %v1692_v61 = vadd.f32 %v4268_v30, %v1666_v11  ;;  %v1700_v30 = vmul.f32 %v3743_v51, %v1698_v1  ;;  %v1707_v38 = vmul.f32 %v3741_v37, %v1698_v1 }
 0x257   :  { %v4371_v22 = vpop.permute.xlu0 %1755  ;;  %v1654_v2 = vadd.f32 %v4225_v8, %v1630_v5  ;;  %v1691_v10 = vadd.f32 %v4315_v53, %v1665_v16  ;;  %v1778_v53 = vmul.f32 %v3791_v58, %v1768_v42  ;;  %v1770_v58 = vmul.f32 %v3788_v60, %v1768_v42 }
 0x258   :  { %v4379_v41 = vpop.permute.xlu2 %1859  ;;  %v1749_v57 = vadd.f32 %v1744_v12, %v1723_v19  ;;  %v1710_v8 = vadd.f32 %v1708_v46, %v1692_v61  ;;  %v1838_v61 = vstv %s2722_s18 }
 0x259   :  { %v1709_v51 = vadd.f32 %v1707_v38, %v1691_v10  ;;  %v1904_v10 = vstv %s2729_s20 }
 0x25a   :  { %v1736_v15 = vadd.f32 %v1732_v59, %v1710_v8 }
 0x25c   :  { %2198 = vrot.lane.b32.xlu1 %v2194_v6, %s3253_s28  ;;  %2186 = vrot.lane.b32.xlu0 %v2181_v7, %s3252_s27  ;;  %v2272_v6 = vstv %s2760_s17  ;;  %v1680_v7 = vadd.f32 %v4317_v21, %v1654_v2  ;;  %v1762_v5 = vadd.f32 %v1758_v44, %v1736_v15  ;;  %v1777_v2 = vmul.f32 %v3795_v4, %v1768_v42 }
 0x25d   :  { %2200 = vrot.lane.b32.xlu2 %v2195_v48, %s3253_s28  ;;  %v2273_v12 = vmul.f32 %v4193_v33, %v2272_v6  ;;  %v1771_v48 = vadd.f32 %v1769_v56, %v1749_v57  ;;  %v2285_v1 = vmul.f32 %v4206_v35, %v2272_v6  ;;  %v2274_v52 = vmul.f32 %v4191_v36, %v2272_v6 }
 0x25e   :  { %v4387_v29 = vpop.permute.xlu1 %1799  ;;  %v1702_v25 = vadd.f32 %v1700_v30, %v1680_v7  ;;  %v1839_v57 = vmul.f32 %v3834_v13, %v1838_v61  ;;  %v2286_v46 = vmul.f32 %v4217_v27, %v2272_v6  ;;  %v1735_v56 = vadd.f32 %v4284_v28, %v1709_v51 }
 0x25f   :  { %v4389_v32 = vpop.permute.xlu0 %1789  ;;  %v1793_v21 = vadd.f32 %v4323_v18, %v1771_v48  ;;  %v1780_v18 = vadd.f32 %v1778_v53, %v1762_v5  ;;  %v2298_v13 = vstv %s2761_s19  ;;  %v1848_v42 = vmul.f32 %v3851_v3, %v1838_v61 }
 0x260   :  { %v1884_v55 = vpop.permute.xlu2 %1883  ;;  %v1724_v37 = vadd.f32 %v4332_v24, %v1702_v25  ;;  %v1761_v24 = vadd.f32 %v4371_v22, %v1735_v56  ;;  %v2300_v60 = vmul.f32 %v4191_v36, %v2298_v13  ;;  %v2299_v7 = vmul.f32 %v4193_v33, %v2298_v13 }
 0x261   :  { %v1806_v28 = vadd.f32 %v4338_v39, %v1780_v18  ;;  %v2311_v38 = vmul.f32 %v4206_v35, %v2298_v13  ;;  %v1840_v48 = vmul.f32 %v4626_v31, %v1838_v61  ;;  %v2312_v5 = vmul.f32 %v4217_v27, %v2298_v13 }
 0x262   :  { %v1750_v44 = vadd.f32 %v4304_v47, %v1724_v37  ;;  %v1779_v22 = vadd.f32 %v1777_v2, %v1761_v24 }
 0x264   :  { %2212 = vrot.lane.b32.xlu1 %v2207_v40, %s3253_s28  ;;  %2210 = vrot.lane.b32.xlu0 %v2206_v20, %s3253_s28  ;;  %v1772_v6 = vadd.f32 %v1770_v58, %v1750_v44  ;;  %v1805_v8 = vadd.f32 %v4387_v29, %v1779_v22 }
 0x265   :  { %2277 = vrot.lane.b32.xlu2 %v2273_v12, %s3252_s27 }
 0x266   :  { %v1816_v11 = vpop.permute.xlu1 %1815  ;;  %v1794_v39 = vadd.f32 %v4389_v32, %v1772_v6  ;;  %v1847_v32 = vmul.f32 %v3845_v43, %v1838_v61 }
 0x267   :  { %v1814_v45 = vpop.permute.xlu0 %1813 }
 0x268   :  { %v1898_v59 = vpop.permute.xlu2 %1897  ;;  %v1819_v19 = vadd.f32 %v1814_v45, %v1793_v21  ;;  %v1820_v15 = vadd.f32 %v1816_v11, %v1794_v39  ;;  %v1831_v21 = vadd.f32 %v4361_v62, %v1805_v8 }
 0x26a   :  { %v1841_v40 = vadd.f32 %v1839_v57, %v1819_v19  ;;  %v1842_v11 = vadd.f32 %v1840_v48, %v1820_v15  ;;  %v1849_v19 = vadd.f32 %v1847_v32, %v1831_v21 }
 0x26c   :  { %2289 = vrot.lane.b32.xlu1 %v2285_v1, %s3252_s27  ;;  %2279 = vrot.lane.b32.xlu0 %v2274_v52, %s3252_s27  ;;  %v1864_v43 = vadd.f32 %v4379_v41, %v1842_v11 }
 0x26d   :  { %2291 = vrot.lane.b32.xlu2 %v2286_v46, %s3252_s27 }
 0x26e   :  { %v1858_v20 = vpop.permute.xlu1 %1857 }
 0x26f   :  { %v1828_v16 = vpop.permute.xlu0 %1827  ;;  %v1863_v47 = vadd.f32 %v1858_v20, %v1841_v40  ;;  %v2368_v20 = vstv %s2768_s22 }
 0x270   :  { %v4425_v30 = vpop.permute.xlu2 %1974  ;;  %v1832_v12 = vadd.f32 %v1828_v16, %v1806_v28  ;;  %v2369_v16 = vmul.f32 %v4247_v49, %v2368_v20  ;;  %v2382_v39 = vmul.f32 %v4270_v0, %v2368_v20 }
 0x271   :  { %v1889_v4 = vadd.f32 %v1884_v55, %v1863_v47  ;;  %v2342_v55 = vstv %s2767_s21 }
 0x272   :  { %v1850_v45 = vadd.f32 %v1848_v42, %v1832_v12  ;;  %v2343_v31 = vmul.f32 %v4247_v49, %v2342_v55  ;;  %v2344_v52 = vmul.f32 %v4261_v14, %v2342_v55  ;;  %v2356_v24 = vmul.f32 %v4270_v0, %v2342_v55 }
 0x273   :  { %v4434_v25 = vadd.f32 %v1904_v10, %v1889_v4  ;;  %v2355_v2 = vmul.f32 %v4259_v63, %v2342_v55  ;;  %v2381_v42 = vmul.f32 %v4259_v63, %v2368_v20 }
 0x274   :  { %2305 = vrot.lane.b32.xlu1 %v2300_v60, %s3253_s28  ;;  %2303 = vrot.lane.b32.xlu0 %v2299_v7, %s3253_s28 }
 0x275   :  { %2315 = vrot.lane.b32.xlu2 %v2311_v38, %s3253_s28  ;;  %v1907_v37 = vsub.f32 0.0, %v4434_v25 }
 0x276   :  { %v1872_v51 = vpop.permute.xlu1 %1871 }
 0x277   :  { %v1870_v3 = vpop.permute.xlu0 %1869  ;;  %v1876_v29 = vadd.f32 %v1872_v51, %v1850_v45  ;;  %v1909_v62 = vmul.f32 1.442695, %v1907_v37  ;;  %v2412_v45 = vstv %s2774_s23 }
 0x278   :  { %v4441_v53 = vpop.permute.xlu2 %1990  ;;  %v1875_v61 = vadd.f32 %v1870_v3, %v1849_v19  ;;  %v2414_v32 = vmul.f32 %v4306_v26, %v2412_v45  ;;  %v2425_v11 = vmul.f32 %v4313_v34, %v2412_v45 }
 0x279   :  { %v1902_v1 = vadd.f32 %v1898_v59, %v1876_v29  ;;  %3174 = vpow2.f32 %v1909_v62 }
 0x27b   :  { %v4445_v57 = vadd.f32 %v1904_v10, %v1902_v1 }
 0x27c   :  { %2347 = vrot.lane.b32.xlu1 %v2343_v31, %s3252_s27  ;;  %2317 = vrot.lane.b32.xlu0 %v2312_v5, %s3253_s28  ;;  %v2413_v31 = vmul.f32 %v4292_v9, %v2412_v45 }
 0x27d   :  { %v1922_v46 = vsub.f32 0.0, %v4445_v57  ;;  %2349 = vrot.lane.b32.xlu2 %v2344_v52, %s3252_s27  ;;  %v2438_v52 = vstv %s2775_s24 }
 0x27e   :  { %v1896_v56 = vpop.permute.xlu1 %1895 }
 0x27f   :  { %v1886_v18 = vpop.permute.xlu0 %1885  ;;  %v1925_v59 = vmul.f32 1.442695, %v1922_v46  ;;  %v1901_v44 = vadd.f32 %v1896_v56, %v1875_v61  ;;  %v3175_v12 = vpop.eup %3174 }
 0x280   :  { %v1890_v58 = vadd.f32 %v1886_v18, %v1864_v43  ;;  %v4454_v40 = vpop.permute.xlu2 %2032  ;;  %v1913_v8 = vadd.f32 1.0, %v3175_v12 }
 0x281   :  { %v1919_v13 = vadd.f32 %v1904_v10, %v1901_v44  ;;  %3176 = vpow2.f32 %v1925_v59  ;;  %v2439_v44 = vmul.f32 %v4292_v9, %v2438_v52 }
 0x282   :  { %v1906_v41 = vadd.f32 %v1904_v10, %v1890_v58  ;;  %v2370_v10 = vmul.f32 %v4261_v14, %v2368_v20  ;;  %v2426_v58 = vmul.f32 %v4309_v50, %v2412_v45 }
 0x283   :  { %v1921_v28 = vsub.f32 0.0, %v1919_v13 }
 0x284   :  { %v1908_v47 = vsub.f32 0.0, %v1906_v41  ;;  %2361 = vrot.lane.b32.xlu1 %v2356_v24, %s3252_s27  ;;  %2359 = vrot.lane.b32.xlu0 %v2355_v2, %s3252_s27 }
 0x285   :  { %v1923_v6 = vmul.f32 1.442695, %v1921_v28  ;;  %2373 = vrot.lane.b32.xlu2 %v2369_v16, %s3253_s28  ;;  %v2440_v16 = vmul.f32 %v4306_v26, %v2438_v52 }
 0x286   :  { %v1911_v60 = vmul.f32 1.442695, %v1908_v47  ;;  %v4459_v7 = vpop.permute.xlu1 %1964  ;;  %v2482_v47 = vstv %s2781_s2 }
 0x287   :  { %v4461_v22 = vpop.permute.xlu0 %1962  ;;  %3178 = vpow2.f32 %v1923_v6  ;;  %v3177_v4 = vpop.eup %3176  ;;  %v2483_v6 = vmul.f32 %v4352_v23, %v2482_v47 }
 0x288   :  { %3180 = vpow2.f32 %v1911_v60  ;;  %v4466_v38 = vpop.permute.xlu2 %2046  ;;  %v1928_v48 = vadd.f32 1.0, %v3177_v4  ;;  %v1943_v60 = vstv %s2732_s30 }
 0x289   :  { %3182 = vrcp.f32 %v1913_v8  ;;  %v4628_v8 = vld [vmem:[#allocation8_spill] sm:$0xff] }
 0x28a   :  { %3184 = vrcp.f32 %v1928_v48 }
 0x28c   :  { %2385 = vrot.lane.b32.xlu1 %v2381_v42, %s3253_s28  ;;  %2375 = vrot.lane.b32.xlu0 %v2370_v10, %s3253_s28  ;;  %v1945_v42 = vmul.f32 %v4191_v36, %v1943_v60  ;;  %v2495_v10 = vmul.f32 %v4363_v54, %v2482_v47 }
 0x28d   :  { %v3179_v15 = vpop.eup %3178  ;;  %2387 = vrot.lane.b32.xlu2 %v2382_v39, %s3253_s28  ;;  %v2484_v39 = vmul.f32 %v4628_v8, %v2482_v47 }
 0x28e   :  { %v3181_v55 = vpop.eup %3180  ;;  %v1927_v51 = vadd.f32 1.0, %v3179_v15  ;;  %v4471_v3 = vpop.permute.xlu1 %1988  ;;  %v2496_v15 = vmul.f32 %v4369_v17, %v2482_v47  ;;  %v1969_v45 = vadd.f32 %v4459_v7, %v1945_v42 }
 0x28f   :  { %v4473_v21 = vpop.permute.xlu0 %1976  ;;  %v1914_v29 = vadd.f32 1.0, %v3181_v55  ;;  %v3183_v37 = vpop.eup %3182  ;;  %v1944_v55 = vmul.f32 %v4193_v33, %v1943_v60 }
 0x290   :  { %3186 = vrcp.f32 %v1927_v51  ;;  %v4478_v5 = vpop.permute.xlu2 %2070  ;;  %v3185_v1 = vpop.eup %3184  ;;  %v1917_v46 = vmul.f32 %v3183_v37, %v4434_v25  ;;  %v2508_v51 = vstv %s2782_s5 }
 0x291   :  { %3188 = vrcp.f32 %v1914_v29  ;;  %v1932_v18 = vmul.f32 %v3185_v1, %v4445_v57  ;;  %v2013_v29 = vstv %s2735_s6  ;;  %v2510_v1 = vmul.f32 %v4628_v8, %v2508_v51 }
 0x292   :  { %v2015_v37 = vmul.f32 %v4261_v14, %v2013_v29  ;;  %v2509_v7 = vmul.f32 %v4352_v23, %v2508_v51 }
 0x294   :  { %2419 = vrot.lane.b32.xlu1 %v2414_v32, %s3252_s27  ;;  %2417 = vrot.lane.b32.xlu0 %v2413_v31, %s3252_s27 }
 0x295   :  { %2429 = vrot.lane.b32.xlu2 %v2425_v11, %s3252_s27  ;;  %v1995_v11 = vadd.f32 %v4441_v53, %v1969_v45  ;;  %v1952_v53 = vmul.f32 %v4206_v35, %v1943_v60 }
 0x296   :  { %v3187_v19 = vpop.eup %3186  ;;  %v4483_v43 = vpop.permute.xlu1 %2002 }
 0x297   :  { %v4485_v62 = vpop.permute.xlu0 %2000  ;;  %v3189_v61 = vpop.eup %3188  ;;  %v1931_v56 = vmul.f32 %v3187_v19, %v1919_v13  ;;  %v2452_v13 = vmul.f32 %v4309_v50, %v2438_v52  ;;  %v1968_v19 = vadd.f32 %v4461_v22, %v1944_v55  ;;  %v1980_v47 = vadd.f32 %v4425_v30, %v1952_v53 }
 0x298   :  { %v1918_v59 = vmul.f32 %v3189_v61, %v1906_v41  ;;  %v4492_v24 = vpop.permute.xlu2 %2104  ;;  %v2451_v41 = vmul.f32 %v4313_v34, %v2438_v52  ;;  %v2521_v61 = vmul.f32 %v4363_v54, %v2508_v51 }
 0x299   :  { %v1933_v2 = vmax.f32 %v1917_v46, %v1931_v56  ;;  %v1994_v46 = vadd.f32 %v4471_v3, %v1968_v19  ;;  %v2014_v56 = vmul.f32 %v4247_v49, %v2013_v29 }
 0x29a   :  { %v1934_v20 = vmax.f32 %v1918_v59, %v1932_v18  ;;  %v2017_v18 = vadd.f32 %v2015_v37, %v1995_v11  ;;  %v1953_v59 = vmul.f32 %v4217_v27, %v1943_v60  ;;  %v2023_v60 = vmul.f32 %v4270_v0, %v2013_v29 }
 0x29b   :  { %2730 = vst.msk [vmem:[%s4620_s4 + $0x50] sm:$0xff] %vm360_vm0, %v1933_v2  ;;  %v2016_v22 = vadd.f32 %v2014_v56, %v1994_v46 }
 0x29c   :  { %2731 = vst.msk [vmem:[%s4620_s4 + $0x58] sm:$0xff] %vm360_vm0, %v1934_v20  ;;  %2443 = vrot.lane.b32.xlu1 %v2439_v44, %s3253_s28  ;;  %2431 = vrot.lane.b32.xlu0 %v2426_v58, %s3252_s27  ;;  %v2083_v58 = vstv %s2742_s7 }
 0x29d   :  { %2445 = vrot.lane.b32.xlu2 %v2440_v16, %s3253_s28  ;;  %v2085_v3 = vmul.f32 %v4306_v26, %v2083_v58  ;;  %v2038_v42 = vadd.f32 %v4454_v40, %v2016_v22  ;;  %v2084_v45 = vmul.f32 %v4292_v9, %v2083_v58  ;;  %v2092_v19 = vmul.f32 %v4313_v34, %v2083_v58 }
 0x29e   :  { %v4505_v25 = vpop.permute.xlu1 %2044 }
 0x29f   :  { %v2035_v57 = vpop.permute.xlu0 %2034 }
 0x2a0   :  { %v4510_v28 = vpop.permute.xlu2 %2128  ;;  %v2039_v44 = vadd.f32 %v2035_v57, %v2017_v18  ;;  %v2022_v57 = vmul.f32 %v4259_v63, %v2013_v29 }
 0x2a4   :  { %2457 = vrot.lane.b32.xlu1 %v2452_v13, %s3253_s28  ;;  %2455 = vrot.lane.b32.xlu0 %v2451_v41, %s3253_s28  ;;  %v2522_v13 = vmul.f32 %v4369_v17, %v2508_v51 }
 0x2a5   :  { %2487 = vrot.lane.b32.xlu2 %v2483_v6, %s3252_s27  ;;  %v1981_v6 = vadd.f32 %v4473_v21, %v1953_v59 }
 0x2a6   :  { %v2061_v12 = vpop.permute.xlu1 %2060 }
 0x2a7   :  { %v2059_v4 = vpop.permute.xlu0 %2058  ;;  %v2065_v16 = vadd.f32 %v2061_v12, %v2039_v44  ;;  %v2006_v12 = vadd.f32 %v4485_v62, %v1980_v47 }
 0x2a8   :  { %v4519_v48 = vpop.permute.xlu2 %2142 }
 0x2a9   :  { %v2024_v21 = vadd.f32 %v2022_v57, %v2006_v12 }
 0x2ab   :  { %v2050_v40 = vadd.f32 %v4505_v25, %v2024_v21 }
 0x2ac   :  { %2499 = vrot.lane.b32.xlu1 %v2495_v10, %s3252_s27  ;;  %2489 = vrot.lane.b32.xlu0 %v2484_v39, %s3252_s27  ;;  %v2007_v10 = vadd.f32 %v4483_v43, %v1981_v6  ;;  %v2087_v39 = vadd.f32 %v2085_v3, %v2065_v16  ;;  %v2219_v3 = vstv %s2756_s8 }
 0x2ad   :  { %2501 = vrot.lane.b32.xlu2 %v2496_v15, %s3252_s27  ;;  %s2749_s27 = sld [smem:[#allocation2 + $0x51]]  ;;  %v2064_v15 = vadd.f32 %v2059_v4, %v2038_v42 }
 0x2ae   :  { %v2103_v32 = vpop.permute.xlu1 %2102  ;;  %v2025_v51 = vadd.f32 %v2023_v60, %v2007_v10  ;;  %v2109_v11 = vadd.f32 %v4492_v24, %v2087_v39  ;;  %v2093_v24 = vmul.f32 %v4309_v50, %v2083_v58 }
 0x2af   :  { %v2073_v31 = vpop.permute.xlu0 %2072  ;;  %v2086_v43 = vadd.f32 %v2084_v45, %v2064_v15 }
 0x2b0   :  { %v4531_v52 = vpop.permute.xlu2 %2184  ;;  %v2051_v4 = vadd.f32 %v4466_v38, %v2025_v51 }
 0x2b2   :  { %v2077_v46 = vadd.f32 %v2073_v31, %v2051_v4 }
 0x2b3   :  { %v2153_v37 = vstv %s2749_s27 }
 0x2b4   :  { %2515 = vrot.lane.b32.xlu1 %v2510_v1, %s3253_s28  ;;  %2513 = vrot.lane.b32.xlu0 %v2509_v7, %s3253_s28  ;;  %v2155_v62 = vmul.f32 %v4628_v8, %v2153_v37  ;;  %v2108_v7 = vadd.f32 %v2103_v32, %v2086_v43  ;;  %v2154_v44 = vmul.f32 %v4352_v23, %v2153_v37 }
 0x2b5   :  { %2525 = vrot.lane.b32.xlu2 %v2521_v61, %s3253_s28  ;;  %v2076_v61 = vadd.f32 %v4478_v5, %v2050_v40  ;;  %v2095_v16 = vadd.f32 %v2093_v24, %v2077_v46  ;;  %v2162_v58 = vmul.f32 %v4363_v54, %v2153_v37  ;;  %v2163_v12 = vmul.f32 %v4369_v17, %v2153_v37 }
 0x2b6   :  { %v2117_v2 = vpop.permute.xlu1 %2116  ;;  %v2134_v25 = vadd.f32 %v4510_v28, %v2108_v7 }
 0x2b7   :  { %v2115_v20 = vpop.permute.xlu0 %2114  ;;  %v2094_v38 = vadd.f32 %v2092_v19, %v2076_v61 }
 0x2b8   :  { %v2201_v41 = vpop.permute.xlu2 %2200  ;;  %v2156_v5 = vadd.f32 %v2154_v44, %v2134_v25 }
 0x2b9   :  { %v2120_v47 = vadd.f32 %v2115_v20, %v2094_v38 }
 0x2bc   :  { %2527 = vrot.lane.b32.xlu0 %v2522_v13, %s3253_s28  ;;  %v2121_v13 = vadd.f32 %v2117_v2, %v2095_v16 }
 0x2be   :  { %v2141_v55 = vpop.permute.xlu1 %2140  ;;  %v2147_v28 = vadd.f32 %v4519_v48, %v2121_v13 }
 0x2bf   :  { %v2131_v30 = vpop.permute.xlu0 %2130  ;;  %v2146_v31 = vadd.f32 %v2141_v55, %v2120_v47 }
 0x2c0   :  { %v4554_v29 = vpop.permute.xlu2 %2277  ;;  %v2135_v1 = vadd.f32 %v2131_v30, %v2109_v11  ;;  %v2165_v20 = vadd.f32 %v2163_v12, %v2147_v28 }
 0x2c1   :  { %v2164_v15 = vadd.f32 %v2162_v58, %v2146_v31 }
 0x2c2   :  { %v2157_v56 = vadd.f32 %v2155_v62, %v2135_v1 }
 0x2c3   :  { %v2190_v55 = vadd.f32 %v4531_v52, %v2164_v15 }
 0x2c6   :  { %v2175_v18 = vpop.permute.xlu1 %2174 }
 0x2c7   :  { %v2173_v53 = vpop.permute.xlu0 %2172  ;;  %v2179_v59 = vadd.f32 %v2175_v18, %v2157_v56 }
 0x2c8   :  { %v4564_v22 = vpop.permute.xlu2 %2291  ;;  %v2178_v6 = vadd.f32 %v2173_v53, %v2156_v5 }
 0x2c9   :  { %v2205_v32 = vadd.f32 %v2201_v41, %v2179_v59 }
 0x2cb   :  { %v2221_v60 = vadd.f32 %v2219_v3, %v2205_v32 }
 0x2cd   :  { %v2223_v41 = vsub.f32 0.0, %v2221_v60 }
 0x2ce   :  { %v2199_v57 = vpop.permute.xlu1 %2198 }
 0x2cf   :  { %v2187_v42 = vpop.permute.xlu0 %2186  ;;  %v2204_v10 = vadd.f32 %v2199_v57, %v2178_v6  ;;  %v2226_v30 = vmul.f32 1.442695, %v2223_v41 }
 0x2d0   :  { %v4569_v39 = vpop.permute.xlu2 %2315  ;;  %v2191_v51 = vadd.f32 %v2187_v42, %v2165_v20 }
 0x2d1   :  { %v2220_v45 = vadd.f32 %v2219_v3, %v2204_v10  ;;  %3190 = vpow2.f32 %v2226_v30 }
 0x2d3   :  { %v2222_v2 = vsub.f32 0.0, %v2220_v45 }
 0x2d5   :  { %v2224_v21 = vmul.f32 1.442695, %v2222_v2 }
 0x2d6   :  { %v2213_v11 = vpop.permute.xlu1 %2212 }
 0x2d7   :  { %v2211_v40 = vpop.permute.xlu0 %2210  ;;  %v2217_v43 = vadd.f32 %v2213_v11, %v2191_v51  ;;  %3192 = vpow2.f32 %v2224_v21  ;;  %v3191_v52 = vpop.eup %3190 }
 0x2d8   :  { %v2216_v1 = vadd.f32 %v2211_v40, %v2190_v55  ;;  %v4572_v48 = vpop.permute.xlu2 %2349  ;;  %v2229_v53 = vadd.f32 1.0, %v3191_v52  ;;  %v2258_v55 = vstv %s2759_s12 }
 0x2d9   :  { %v2235_v37 = vadd.f32 %v2219_v3, %v2217_v43  ;;  %v2267_v51 = vmul.f32 %v4206_v35, %v2258_v55  ;;  %v2259_v40 = vmul.f32 %v4193_v33, %v2258_v55  ;;  %v2260_v43 = vmul.f32 %v4191_v36, %v2258_v55 }
 0x2da   :  { %v2234_v62 = vadd.f32 %v2219_v3, %v2216_v1  ;;  %v2328_v1 = vstv %s2762_s13  ;;  %v2268_v36 = vmul.f32 %v4217_v27, %v2258_v55 }
 0x2db   :  { %v2237_v4 = vsub.f32 0.0, %v2235_v37  ;;  %v2329_v35 = vmul.f32 %v4247_v49, %v2328_v1  ;;  %v2330_v33 = vmul.f32 %v4261_v14, %v2328_v1  ;;  %v2338_v14 = vmul.f32 %v4270_v0, %v2328_v1 }
 0x2dc   :  { %v2236_v7 = vsub.f32 0.0, %v2234_v62 }
 0x2dd   :  { %v2240_v19 = vmul.f32 1.442695, %v2237_v4  ;;  %v3193_v56 = vpop.eup %3192 }
 0x2de   :  { %v2238_v61 = vmul.f32 1.442695, %v2236_v7  ;;  %v2290_v46 = vpop.permute.xlu1 %2289  ;;  %v2228_v25 = vadd.f32 1.0, %v3193_v56  ;;  %v2337_v7 = vmul.f32 %v4259_v63, %v2328_v1 }
 0x2df   :  { %v2280_v24 = vpop.permute.xlu0 %2279  ;;  %3194 = vpow2.f32 %v2240_v19  ;;  %v2295_v11 = vadd.f32 %v2290_v46, %v2267_v51  ;;  %v2283_v19 = vadd.f32 %v4554_v29, %v2259_v40 }
 0x2e0   :  { %3196 = vpow2.f32 %v2238_v61  ;;  %v4574_v18 = vpop.permute.xlu2 %2373  ;;  %v2284_v61 = vadd.f32 %v2280_v24, %v2260_v43  ;;  %v2534_v43 = vstv %s2783_s0 }
 0x2e1   :  { %3198 = vrcp.f32 %v2229_v53  ;;  %v2321_v4 = vadd.f32 %v4569_v39, %v2295_v11 }
 0x2e2   :  { %3200 = vrcp.f32 %v2228_v25 }
 0x2e3   :  { %v2339_v53 = vadd.f32 %v2337_v7, %v2321_v4 }
 0x2e5   :  { %v3195_v59 = vpop.eup %3194 }
 0x2e6   :  { %v2243_v44 = vadd.f32 1.0, %v3195_v59  ;;  %v2306_v16 = vpop.permute.xlu1 %2305  ;;  %v3197_v32 = vpop.eup %3196 }
 0x2e7   :  { %v2304_v38 = vpop.permute.xlu0 %2303  ;;  %v2242_v3 = vadd.f32 1.0, %v3197_v32  ;;  %v3199_v47 = vpop.eup %3198  ;;  %v2310_v46 = vadd.f32 %v2306_v16, %v2284_v61 }
 0x2e8   :  { %3202 = vrcp.f32 %v2243_v44  ;;  %v4576_v13 = vpop.permute.xlu2 %2387  ;;  %v3201_v5 = vpop.eup %3200  ;;  %v2233_v57 = vmul.f32 %v3199_v47, %v2221_v60  ;;  %v2309_v56 = vadd.f32 %v2304_v38, %v2283_v19  ;;  %v2398_v44 = vstv %s2769_s14 }
 0x2e9   :  { %3204 = vrcp.f32 %v2242_v3  ;;  %v2232_v10 = vmul.f32 %v3201_v5, %v2220_v45  ;;  %v2332_v3 = vadd.f32 %v2330_v33, %v2310_v46  ;;  %v2407_v29 = vmul.f32 %v4313_v34, %v2398_v44 }
 0x2ea   :  { %v2331_v59 = vadd.f32 %v2329_v35, %v2309_v56  ;;  %v2296_v38 = vadd.f32 %v4564_v22, %v2268_v36  ;;  %v2468_v22 = vstv %s2776_s15 }
 0x2eb   :  { %v2354_v49 = vadd.f32 %v4572_v48, %v2332_v3  ;;  %v2477_v0 = vmul.f32 %v4363_v54, %v2468_v22 }
 0x2ee   :  { %v3203_v31 = vpop.eup %3202  ;;  %v2348_v58 = vpop.permute.xlu1 %2347 }
 0x2ef   :  { %v2318_v6 = vpop.permute.xlu0 %2317  ;;  %v2247_v42 = vmul.f32 %v3203_v31, %v2235_v37  ;;  %v3205_v28 = vpop.eup %3204  ;;  %v2353_v24 = vadd.f32 %v2348_v58, %v2331_v59  ;;  %v2399_v31 = vmul.f32 %v4292_v9, %v2398_v44 }
 0x2f0   :  { %v2246_v15 = vmul.f32 %v3205_v28, %v2234_v62  ;;  %v2430_v2 = vpop.permute.xlu2 %2429  ;;  %v2322_v16 = vadd.f32 %v2318_v6, %v2296_v38 }
 0x2f1   :  { %v2249_v12 = vmax.f32 %v2233_v57, %v2247_v42  ;;  %v2379_v5 = vadd.f32 %v4574_v18, %v2353_v24  ;;  %v2400_v42 = vmul.f32 %v4306_v26, %v2398_v44  ;;  %v2408_v18 = vmul.f32 %v4309_v50, %v2398_v44 }
 0x2f2   :  { %v2248_v41 = vmax.f32 %v2232_v10, %v2246_v15  ;;  %v2340_v58 = vadd.f32 %v2338_v14, %v2322_v16  ;;  %v2469_v26 = vmul.f32 %v4352_v23, %v2468_v22 }
 0x2f3   :  { %2758 = vst.msk [vmem:[%s4620_s4 + $0x68] sm:$0xff] %vm360_vm0, %v2249_v12  ;;  %v2401_v12 = vadd.f32 %v2399_v31, %v2379_v5 }
 0x2f4   :  { %2757 = vst.msk [vmem:[%s4620_s4 + $0x60] sm:$0xff] %vm360_vm0, %v2248_v41 }
 0x2f6   :  { %v2362_v20 = vpop.permute.xlu1 %2361 }
 0x2f7   :  { %v2360_v60 = vpop.permute.xlu0 %2359  ;;  %v2366_v48 = vadd.f32 %v2362_v20, %v2340_v58  ;;  %v2470_v20 = vmul.f32 %v4628_v8, %v2468_v22 }
 0x2f8   :  { %v2446_v21 = vpop.permute.xlu2 %2445  ;;  %v2365_v25 = vadd.f32 %v2360_v60, %v2339_v53 }
 0x2f9   :  { %v2392_v9 = vadd.f32 %v4576_v13, %v2366_v48  ;;  %v2478_v13 = vmul.f32 %v4369_v17, %v2468_v22 }
 0x2fb   :  { %v2410_v1 = vadd.f32 %v2408_v18, %v2392_v9 }
 0x2fe   :  { %v2386_v45 = vpop.permute.xlu1 %2385 }
 0x2ff   :  { %v2376_v30 = vpop.permute.xlu0 %2375  ;;  %v2391_v63 = vadd.f32 %v2386_v45, %v2365_v25 }
 0x300   :  { %v2488_v52 = vpop.permute.xlu2 %2487  ;;  %v2380_v57 = vadd.f32 %v2376_v30, %v2354_v49 }
 0x301   :  { %v2409_v47 = vadd.f32 %v2407_v29, %v2391_v63 }
 0x302   :  { %v2402_v6 = vadd.f32 %v2400_v42, %v2380_v57 }
 0x303   :  { %v2435_v10 = vadd.f32 %v2430_v2, %v2409_v47 }
 0x306   :  { %v2420_v37 = vpop.permute.xlu1 %2419 }
 0x307   :  { %v2418_v62 = vpop.permute.xlu0 %2417  ;;  %v2424_v41 = vadd.f32 %v2420_v37, %v2402_v6 }
 0x308   :  { %v2502_v27 = vpop.permute.xlu2 %2501  ;;  %v2423_v60 = vadd.f32 %v2418_v62, %v2401_v12 }
 0x309   :  { %v2450_v11 = vadd.f32 %v2446_v21, %v2424_v41 }
 0x30b   :  { %v2472_v4 = vadd.f32 %v2470_v20, %v2450_v11 }
 0x30e   :  { %v2444_v32 = vpop.permute.xlu1 %2443 }
 0x30f   :  { %v2432_v39 = vpop.permute.xlu0 %2431  ;;  %v2449_v55 = vadd.f32 %v2444_v32, %v2423_v60 }
 0x310   :  { %v2526_v30 = vpop.permute.xlu2 %2525  ;;  %v2436_v62 = vadd.f32 %v2432_v39, %v2410_v1 }
 0x311   :  { %v2471_v54 = vadd.f32 %v2469_v26, %v2449_v55 }
 0x313   :  { %v2493_v7 = vadd.f32 %v2488_v52, %v2471_v54 }
 0x316   :  { %v2458_v28 = vpop.permute.xlu1 %2457 }
 0x317   :  { %v2456_v34 = vpop.permute.xlu0 %2455  ;;  %v2462_v19 = vadd.f32 %v2458_v28, %v2436_v62 }
 0x318   :  { %v2461_v15 = vadd.f32 %v2456_v34, %v2435_v10 }
 0x319   :  { %v2480_v53 = vadd.f32 %v2478_v13, %v2462_v19 }
 0x31a   :  { %v2479_v45 = vadd.f32 %v2477_v0, %v2461_v15 }
 0x31b   :  { %v2506_v44 = vadd.f32 %v2502_v27, %v2480_v53 }
 0x31e   :  { %v2500_v2 = vpop.permute.xlu1 %2499 }
 0x31f   :  { %v2490_v51 = vpop.permute.xlu0 %2489  ;;  %v2505_v40 = vadd.f32 %v2500_v2, %v2479_v45 }
 0x320   :  { %v2494_v23 = vadd.f32 %v2490_v51, %v2472_v4 }
 0x321   :  { %v2531_v37 = vadd.f32 %v2526_v30, %v2505_v40 }
 0x323   :  { %v2549_v50 = vadd.f32 %v2534_v43, %v2531_v37 }
 0x325   :  { %v2551_v61 = vsub.f32 0.0, %v2549_v50 }
 0x326   :  { %v2516_v56 = vpop.permute.xlu1 %2515 }
 0x327   :  { %v2514_v35 = vpop.permute.xlu0 %2513  ;;  %v2553_v46 = vmul.f32 1.442695, %v2551_v61  ;;  %v2520_v21 = vadd.f32 %v2516_v56, %v2494_v23 }
 0x328   :  { %v2519_v33 = vadd.f32 %v2514_v35, %v2493_v7 }
 0x329   :  { %3206 = vpow2.f32 %v2553_v46  ;;  %v2536_v8 = vadd.f32 %v2534_v43, %v2520_v21 }
 0x32a   :  { %v2535_v36 = vadd.f32 %v2534_v43, %v2519_v33 }
 0x32b   :  { %v2538_v25 = vsub.f32 0.0, %v2536_v8 }
 0x32c   :  { %v2537_v59 = vsub.f32 0.0, %v2535_v36 }
 0x32d   :  { %v2541_v32 = vmul.f32 1.442695, %v2538_v25 }
 0x32e   :  { %v2539_v39 = vmul.f32 1.442695, %v2537_v59 }
 0x32f   :  { %v2528_v3 = vpop.permute.xlu0 %2527  ;;  %v3207_v17 = vpop.eup %3206 }
 0x330   :  { %v2532_v52 = vadd.f32 %v2528_v3, %v2506_v44  ;;  %3208 = vpow2.f32 %v2539_v39  ;;  %v2557_v29 = vadd.f32 1.0, %v3207_v17 }
 0x331   :  { %3210 = vpow2.f32 %v2541_v32 }
 0x332   :  { %v2550_v63 = vadd.f32 %v2534_v43, %v2532_v52  ;;  %3212 = vrcp.f32 %v2557_v29 }
 0x334   :  { %v2552_v24 = vsub.f32 0.0, %v2550_v63 }
 0x336   :  { %v2555_v38 = vmul.f32 1.442695, %v2552_v24  ;;  %v3209_v49 = vpop.eup %3208 }
 0x337   :  { %v3211_v16 = vpop.eup %3210  ;;  %v2543_v14 = vadd.f32 1.0, %v3209_v49 }
 0x338   :  { %3214 = vpow2.f32 %v2555_v38  ;;  %v2544_v47 = vadd.f32 1.0, %v3211_v16  ;;  %v3213_v5 = vpop.eup %3212 }
 0x339   :  { %3216 = vrcp.f32 %v2543_v14  ;;  %v2561_v42 = vmul.f32 %v3213_v5, %v2549_v50 }
 0x33a   :  { %3218 = vrcp.f32 %v2544_v47 }
 0x33e   :  { %v3215_v27 = vpop.eup %3214 }
 0x33f   :  { %v2558_v31 = vadd.f32 1.0, %v3215_v27  ;;  %v3217_v57 = vpop.eup %3216 }
 0x340   :  { %v2547_v28 = vmul.f32 %v3217_v57, %v2535_v36  ;;  %v3219_v58 = vpop.eup %3218 }
 0x341   :  { %3220 = vrcp.f32 %v2558_v31  ;;  %v2548_v12 = vmul.f32 %v3219_v58, %v2536_v8 }
 0x342   :  { %v2563_v34 = vmax.f32 %v2547_v28, %v2561_v42 }
 0x344   :  { %2784 = vst.msk [vmem:[%s4620_s4 + $0x70] sm:$0xff] %vm360_vm0, %v2563_v34 }
 0x347   :  { %v3221_v10 = vpop.eup %3220 }
 0x348   :  { %v2562_v22 = vmul.f32 %v3221_v10, %v2550_v63 }
 0x34a   :  { %v2564_v48 = vmax.f32 %v2548_v12, %v2562_v22 }
 0x34c   :  { %2785 = vst.msk [vmem:[%s4620_s4 + $0x78] sm:$0xff] %vm360_vm0, %v2564_v48 }
 0x34d   :  { %2572 = vsyncpa [#allocation3], 1 }
 0x34e   :  { %2573 = vsyncpa [#allocation5], 1 }

</bundles_post_ra>
